<compile_context>
chip_gen: v7x
topology: tpu7x:2x2x1
jax: 0.10.0
libtpu: 0.0.40
codegen_flags: <defaults>
</compile_context>

<pallas_src>
import functools

import jax
import jax.numpy as jnp
from jax.experimental import pallas as pl
from jax.experimental.pallas import tpu as pltpu


def _cdiv(a, b):
    return -(-a // b)


def _round_up(a, b):
    return _cdiv(a, b) * b


def _tpu_info():
    """Returns (vmem_capacity_bytes, tensorcores_per_device) with safe fallbacks."""
    kind = ""
    try:
        kind = jax.devices()[0].device_kind.lower()
    except Exception:
        pass
    # v7x has 64 MiB VMEM per TC; v5e/v6e have 128 MiB.
    vmem = 64 * 2**20 if "7" in kind else 128 * 2**20
    try:
        info = pltpu.get_tpu_info()
        vmem = int(getattr(info, "vmem_capacity_bytes", vmem))
    except Exception:
        pass
    # v4/v5p (megacore) and v7x expose 2 TensorCores that a "parallel" grid
    # axis is sharded across; v5e/v6e are single-TC (splitting is a serial loop).
    num_tc = 2 if ("v4" in kind or "v5p" in kind or "7" in kind) else 1
    return vmem, num_tc


def mlp_kernel(x_ref, w1_ref, b1_ref, w2_ref, b2_ref, w3_ref, b3_ref, o_ref,
               acc_ref, *, fc3_as_reduce):
    k = pl.program_id(1)

    @pl.when(k == 0)
    def _init():
        acc_ref[...] = jnp.zeros_like(acc_ref)

    # fc1 (this K-block of hidden columns) + ReLU. Splitting fc1 by output
    # columns is exact because bias-add/ReLU are per-column.
    x = x_ref[...]
    h1 = jnp.dot(x.astype(w1_ref.dtype), w1_ref[...],
                 preferred_element_type=jnp.float32)
    h1 = jnp.maximum(h1 + b1_ref[...].astype(jnp.float32), 0.0)

    # fc2 partial contraction over this K-block, accumulated in f32 VMEM.
    acc_ref[...] += jnp.dot(h1.astype(w2_ref.dtype), w2_ref[...],
                            preferred_element_type=jnp.float32)

    @pl.when(k == pl.num_programs(1) - 1)
    def _finalize():
        h2 = jnp.maximum(acc_ref[...] + b2_ref[...].astype(jnp.float32), 0.0)
        if fc3_as_reduce:
            # output_size == 1: an N=1 MXU matmul wastes nearly every result
            # column — use a VPU multiply + XLU lane-reduce (idle slots) instead.
            w3_row = w3_ref[...].astype(jnp.float32)              # (1, H)
            out = jnp.sum(h2 * w3_row, axis=-1, keepdims=True)
        else:
            out = jnp.dot(h2.astype(w3_ref.dtype), w3_ref[...],
                          preferred_element_type=jnp.float32)
        out = out + b3_ref[...].astype(jnp.float32)
        # (tb, 1) masked 1-lane store: writeback is only B*4 bytes total, so a
        # lane-dense padded output would cost 128x more HBM traffic for nothing.
        o_ref[...] = out.astype(o_ref.dtype)


def _vmem_estimate(tb, D_in, H, D_out, tk, x_bytes, w_bytes):
    """Rough scoped-VMEM footprint (bytes) for the chosen tiling."""
    if tk == H:
        # All six parameter tensors are resident and single-buffered.
        streamed = 0
        resident = (D_in * H + H + H * H + H + H * D_out + D_out) * w_bytes
    else:
        # w1/b1/w2 blocks stream along K (double-buffered); b2/w3/b3 resident.
        streamed = 2 * (D_in * tk + tk + tk * H) * w_bytes
        resident = (H + H * D_out + D_out) * w_bytes
    io = 2 * tb * D_in * x_bytes + 2 * tb * D_out * 4     # x / out tiles (2 bufs)
    acc = tb * H * 4                                       # f32 accumulator scratch
    slack = 2 * 2**20                                      # compiler internal scratch
    return resident + streamed + io + acc + slack


def net_forward(x, w1, b1, w2, b2, w3, b3, *, tb=None, k_tiles=None):
    B, D_in = x.shape
    H = w1.shape[1]
    D_out = w3.shape[1]
    x_bytes = jnp.dtype(x.dtype).itemsize
    w_bytes = jnp.dtype(w1.dtype).itemsize

    vmem_cap, num_tc = _tpu_info()

    # ---- batch-tile selection (generation-aware) -----------------------------
    MAX_TB = 512
    if tb is None:
        if B <= MAX_TB:
            # Single-TC (v5e/v6e): one tile — no wasted grid step, widest DMA.
            # 2-TC (v7x/megacore): split mid-size batches so both cores work.
            n_tiles = 2 if (num_tc > 1 and B >= 256) else 1
        else:
            n_tiles = _cdiv(B, MAX_TB)
            if num_tc > 1 and n_tiles % 2:
                n_tiles += 1                    # even step count -> balanced cores
        tb = B if n_tiles == 1 else _round_up(_cdiv(B, n_tiles), 8)
    n_tiles = _cdiv(B, tb)
    Bp = n_tiles * tb
    if Bp != B:
        assert tb % 8 == 0, "padded batch tile must be a multiple of 8 (f32 sublanes)"
    # Balanced tiles cap padding at < 8*n_tiles rows, so this extra HBM pass
    # over x is rare and tiny when it happens at all.
    xp = x if Bp == B else jnp.pad(x, ((0, Bp - B), (0, 0)))

    # ---- K-tiling of the hidden dim (fc1 output cols / fc2 contraction) ------
    budget = int(0.80 * vmem_cap)
    if k_tiles is None:
        k_tiles = 1
        while (_vmem_estimate(tb, D_in, H, D_out, H // k_tiles, x_bytes, w_bytes)
               > budget
               and H % (2 * k_tiles) == 0
               and (H // (2 * k_tiles)) % 128 == 0):
            k_tiles *= 2
    assert H % k_tiles == 0, "k_tiles must divide hidden_size"
    tk = H // k_tiles
    if k_tiles > 1:
        assert tk % 128 == 0, "hidden K-tile must be a multiple of 128 lanes"
    # TODO(synk): if even tk == 128 cannot fit the VMEM budget (huge batch tile
    # or hidden size), additionally tile fc2's output columns.

    fc3_as_reduce = (D_out == 1)
    w3_in = w3.T if fc3_as_reduce else w3            # (1, H) row for lane-reduce

    est = _vmem_estimate(tb, D_in, H, D_out, tk, x_bytes, w_bytes)
    vmem_limit = int(min(max(int(1.25 * est), 32 * 2**20),
                         int(0.875 * vmem_cap)))     # never exceed physical VMEM

    flops = 2 * Bp * (D_in * H + H * H + H * D_out)
    weight_bytes = (D_in * H + H * H + H * D_out + 2 * H + D_out) * w_bytes
    bytes_accessed = int(Bp * D_in * x_bytes + weight_bytes + Bp * D_out * 4)
    cost = pl.CostEstimate(flops=flops, transcendentals=0,
                           bytes_accessed=bytes_accessed)

    def build(single_buffer_weights):
        def spec(shape, index_map, *, resident):
            if resident and single_buffer_weights:
                # Constant index_map -> the second pipeline buffer is pure waste.
                return pl.BlockSpec(shape, index_map, pipeline_mode=pl.Buffered(1))
            return pl.BlockSpec(shape, index_map)

        k_const = (k_tiles == 1)
        in_specs = [
            # TODO(synk): raise x to pl.Buffered(3) if profiling shows its DMA
            # exposed in a very large-B / small-D_in mem-bound regime.
            pl.BlockSpec((tb, D_in), lambda i, k: (i, 0)),               # x
            spec((D_in, tk), lambda i, k: (0, k), resident=k_const),     # w1
            spec((1, tk),    lambda i, k: (0, k), resident=k_const),     # b1
            spec((tk, H),    lambda i, k: (k, 0), resident=k_const),     # w2
            spec((1, H),     lambda i, k: (0, 0), resident=True),        # b2
            spec(((1, H) if fc3_as_reduce else (H, D_out)),
                 lambda i, k: (0, 0), resident=True),                    # w3
            spec((1, D_out), lambda i, k: (0, 0), resident=True),        # b3
        ]
        return pl.pallas_call(
            functools.partial(mlp_kernel, fc3_as_reduce=fc3_as_reduce),
            out_shape=jax.ShapeDtypeStruct((Bp, D_out), jnp.float32),
            grid_spec=pltpu.PrefetchScalarGridSpec(
                num_scalar_prefetch=0,
                grid=(n_tiles, k_tiles),
                in_specs=in_specs,
                out_specs=pl.BlockSpec((tb, D_out), lambda i, k: (i, 0)),
                scratch_shapes=[pltpu.VMEM((tb, H), jnp.float32)],
            ),
            compiler_params=pltpu.CompilerParams(
                dimension_semantics=("parallel", "arbitrary"),
                vmem_limit_bytes=vmem_limit,
            ),
            cost_estimate=cost,
        )

    try:
        out = build(True)(xp, w1, b1, w2, b2, w3_in, b3)
    except Exception:
        # Fallback if this JAX build rejects single-buffered input BlockSpecs.
        out = build(False)(xp, w1, b1, w2, b2, w3_in, b3)

    return out[:B] if Bp != B else out


def init_params(key, input_size, hidden_size, output_size, *, dtype=jnp.float32):
    """PyTorch-style uniform init: U(-1/sqrt(fan_in), 1/sqrt(fan_in)).

    Weights are (in_features, out_features). Pass dtype=jnp.bfloat16 for the
    fast MXU path (the kernel accumulates in f32; biases stay f32).
    """
    ks = jax.random.split(key, 6)

    def lin(kw, kb, fan_in, fan_out):
        bound = 1.0 / jnp.sqrt(fan_in)
        w = jax.random.uniform(kw, (fan_in, fan_out), jnp.float32, -bound, bound)
        b = jax.random.uniform(kb, (1, fan_out), jnp.float32, -bound, bound)
        return w.astype(dtype), b

    w1, b1 = lin(ks[0], ks[1], input_size, hidden_size)
    w2, b2 = lin(ks[2], ks[3], hidden_size, hidden_size)
    w3, b3 = lin(ks[4], ks[5], hidden_size, output_size)
    return w1, b1, w2, b2, w3, b3


if __name__ == "__main__":
    # Small shapes consistent with the module: x is (batch, input_size),
    # output_size = 1; hidden kept modest for the demo.
    batch, input_size, hidden_size, output_size = 256, 32, 256, 1

    key = jax.random.PRNGKey(0)
    kx, kp = jax.random.split(key)
    x = jax.random.normal(kx, (batch, input_size), jnp.float32)

    # ---- f32 weights, default tiling -------------------------------------
    w1, b1, w2, b2, w3, b3 = init_params(kp, input_size, hidden_size, output_size)
    out = net_forward(x, w1, b1, w2, b2, w3, b3)
    jax.block_until_ready(out)

    hi = jax.lax.Precision.HIGHEST
    ref = jnp.maximum(jnp.dot(x, w1, precision=hi) + b1, 0.0)
    ref = jnp.maximum(jnp.dot(ref, w2, precision=hi) + b2, 0.0)
    ref = jnp.dot(ref, w3, precision=hi) + b3
    assert out.shape == (batch, output_size)
    assert jnp.allclose(out, ref, atol=1e-4, rtol=1e-4), float(
        jnp.max(jnp.abs(out - ref)))

    # ---- f32 weights, forced K-tiled fc2 accumulator path ----------------
    out_kt = net_forward(x, w1, b1, w2, b2, w3, b3, k_tiles=2)
    jax.block_until_ready(out_kt)
    assert jnp.allclose(out_kt, ref, atol=1e-4, rtol=1e-4), float(
        jnp.max(jnp.abs(out_kt - ref)))

    # ---- bf16 weights (fast MXU path) vs a bf16-aware reference ----------
    w1b, w2b, w3b = (w.astype(jnp.bfloat16) for w in (w1, w2, w3))
    out_bf = net_forward(x, w1b, b1, w2b, b2, w3b, b3)
    jax.block_until_ready(out_bf)
    rbf = jnp.maximum(jnp.dot(x.astype(jnp.bfloat16), w1b,
                              preferred_element_type=jnp.float32) + b1, 0.0)
    rbf = jnp.maximum(jnp.dot(rbf.astype(jnp.bfloat16), w2b,
                              preferred_element_type=jnp.float32) + b2, 0.0)
    rbf = jnp.sum(rbf * w3b.astype(jnp.float32).T, axis=-1, keepdims=True) + b3
    assert out_bf.shape == (batch, output_size)
    assert jnp.allclose(out_bf, rbf, atol=2e-2, rtol=2e-2), float(
        jnp.max(jnp.abs(out_bf - rbf)))

    print("KERNEL_OK")
</pallas_src>

<mosaic_0001>
module attributes {stable_mosaic.version = 11 : i64} {
  func.func @mlp_kernel(%arg0: i32, %arg1: i32, %arg2: memref<256x32xf32, #tpu.memory_space<vmem>>, %arg3: memref<32x256xf32, #tpu.memory_space<vmem>>, %arg4: memref<1x256xf32, #tpu.memory_space<vmem>>, %arg5: memref<256x256xf32, #tpu.memory_space<vmem>>, %arg6: memref<1x256xf32, #tpu.memory_space<vmem>>, %arg7: memref<1x256xf32, #tpu.memory_space<vmem>>, %arg8: memref<1x1xf32, #tpu.memory_space<vmem>>, %arg9: memref<256x1xf32, #tpu.memory_space<vmem>>, %arg10: memref<256x256xf32, #tpu.memory_space<vmem>>) attributes {dimension_semantics = [#tpu.dimension_semantics<parallel>, #tpu.dimension_semantics<arbitrary>], iteration_bounds = array<i64: 1, 1>, scalar_prefetch = 0 : i64, scratch_operands = 1 : i64, tpu.core_type = #tpu.core_type<tc>, window_params = [{transform_indices = @transform_0, window_bounds = array<i64: 256, 32>}, {pipeline_mode = #tpu.pipeline_mode<synchronous>, transform_indices = @transform_1, window_bounds = array<i64: 32, 256>}, {pipeline_mode = #tpu.pipeline_mode<synchronous>, transform_indices = @transform_2, window_bounds = array<i64: 1, 256>}, {pipeline_mode = #tpu.pipeline_mode<synchronous>, transform_indices = @transform_3, window_bounds = array<i64: 256, 256>}, {pipeline_mode = #tpu.pipeline_mode<synchronous>, transform_indices = @transform_4, window_bounds = array<i64: 1, 256>}, {pipeline_mode = #tpu.pipeline_mode<synchronous>, transform_indices = @transform_5, window_bounds = array<i64: 1, 256>}, {pipeline_mode = #tpu.pipeline_mode<synchronous>, transform_indices = @transform_6, window_bounds = array<i64: 1, 1>}, {transform_indices = @transform_7, window_bounds = array<i64: 256, 1>}]} {
    %c0_i32 = arith.constant 0 : i32
    %0 = arith.cmpi eq, %arg1, %c0_i32 : i32
    %1 = arith.extui %0 : i1 to i32
    %c0_i32_0 = arith.constant 0 : i32
    %2 = arith.cmpi ne, %1, %c0_i32_0 : i32
    scf.if %2 {
      %cst_16 = arith.constant 0.000000e+00 : f32
      %19 = vector.broadcast %cst_16 : f32 to vector<256x256xf32>
      %c0_17 = arith.constant 0 : index
      %c0_18 = arith.constant 0 : index
      %20 = vector.load %arg10[%c0_17, %c0_18] : memref<256x256xf32, #tpu.memory_space<vmem>>, vector<256x256xf32>
      tpu.vector_store %arg10[%c0_17, %c0_18], %19 {strides = array<i32>} : memref<256x256xf32, #tpu.memory_space<vmem>>, vector<256x256xf32>,
    } else {
    }
    %c0 = arith.constant 0 : index
    %c0_1 = arith.constant 0 : index
    %3 = vector.load %arg2[%c0, %c0_1] : memref<256x32xf32, #tpu.memory_space<vmem>>, vector<256x32xf32>
    %c0_2 = arith.constant 0 : index
    %c0_3 = arith.constant 0 : index
    %4 = vector.load %arg3[%c0_2, %c0_3] : memref<32x256xf32, #tpu.memory_space<vmem>>, vector<32x256xf32>
    %cst = arith.constant dense<0.000000e+00> : vector<256x256xf32>
    %5 = tpu.matmul %3, %4, %cst {dimension_numbers = #tpu.dot_dimension_numbers<[1], [0], [0], [1], [0, 0, 1, 1], [], []>} : vector<256x32xf32>, vector<32x256xf32>, vector<256x256xf32> -> vector<256x256xf32>
    %c0_4 = arith.constant 0 : index
    %c0_5 = arith.constant 0 : index
    %6 = vector.load %arg4[%c0_4, %c0_5] : memref<1x256xf32, #tpu.memory_space<vmem>>, vector<1x256xf32>
    %7 = vector.broadcast %6 : vector<1x256xf32> to vector<256x256xf32>
    %8 = arith.addf %5, %7 : vector<256x256xf32>
    %cst_6 = arith.constant 0.000000e+00 : f32
    %9 = vector.broadcast %cst_6 : f32 to vector<256x256xf32>
    %10 = arith.maximumf %8, %9 : vector<256x256xf32>
    %c0_7 = arith.constant 0 : index
    %c0_8 = arith.constant 0 : index
    %11 = vector.load %arg10[%c0_7, %c0_8] : memref<256x256xf32, #tpu.memory_space<vmem>>, vector<256x256xf32>
    %c0_9 = arith.constant 0 : index
    %c0_10 = arith.constant 0 : index
    %12 = vector.load %arg5[%c0_9, %c0_10] : memref<256x256xf32, #tpu.memory_space<vmem>>, vector<256x256xf32>
    %cst_11 = arith.constant dense<0.000000e+00> : vector<256x256xf32>
    %13 = tpu.matmul %10, %12, %cst_11 {dimension_numbers = #tpu.dot_dimension_numbers<[1], [0], [0], [1], [0, 0, 1, 1], [], []>} : vector<256x256xf32>, vector<256x256xf32>, vector<256x256xf32> -> vector<256x256xf32>
    %14 = arith.addf %11, %13 : vector<256x256xf32>
    %c0_12 = arith.constant 0 : index
    %c0_13 = arith.constant 0 : index
    %15 = vector.load %arg10[%c0_12, %c0_13] : memref<256x256xf32, #tpu.memory_space<vmem>>, vector<256x256xf32>
    tpu.vector_store %arg10[%c0_12, %c0_13], %14 {strides = array<i32>} : memref<256x256xf32, #tpu.memory_space<vmem>>, vector<256x256xf32>,
    %c0_i32_14 = arith.constant 0 : i32
    %16 = arith.cmpi eq, %arg1, %c0_i32_14 : i32
    %17 = arith.extui %16 : i1 to i32
    %c0_i32_15 = arith.constant 0 : i32
    %18 = arith.cmpi ne, %17, %c0_i32_15 : i32
    scf.if %18 {
      %c0_16 = arith.constant 0 : index
      %c0_17 = arith.constant 0 : index
      %19 = vector.load %arg10[%c0_16, %c0_17] : memref<256x256xf32, #tpu.memory_space<vmem>>, vector<256x256xf32>
      %c0_18 = arith.constant 0 : index
      %c0_19 = arith.constant 0 : index
      %20 = vector.load %arg6[%c0_18, %c0_19] : memref<1x256xf32, #tpu.memory_space<vmem>>, vector<1x256xf32>
      %21 = vector.broadcast %20 : vector<1x256xf32> to vector<256x256xf32>
      %22 = arith.addf %19, %21 : vector<256x256xf32>
      %cst_20 = arith.constant 0.000000e+00 : f32
      %23 = vector.broadcast %cst_20 : f32 to vector<256x256xf32>
      %24 = arith.maximumf %22, %23 : vector<256x256xf32>
      %c0_21 = arith.constant 0 : index
      %c0_22 = arith.constant 0 : index
      %25 = vector.load %arg7[%c0_21, %c0_22] : memref<1x256xf32, #tpu.memory_space<vmem>>, vector<1x256xf32>
      %26 = vector.broadcast %25 : vector<1x256xf32> to vector<256x256xf32>
      %27 = arith.mulf %24, %26 : vector<256x256xf32>
      %cst_23 = arith.constant dense<0.000000e+00> : vector<256xf32>
      %28 = vector.multi_reduction <add>, %27, %cst_23 [1] : vector<256x256xf32> to vector<256xf32>
      %29 = vector.shape_cast %28 : vector<256xf32> to vector<256x1xf32>
      %c0_24 = arith.constant 0 : index
      %c0_25 = arith.constant 0 : index
      %30 = vector.load %arg8[%c0_24, %c0_25] : memref<1x1xf32, #tpu.memory_space<vmem>>, vector<1x1xf32>
      %31 = vector.broadcast %30 : vector<1x1xf32> to vector<256x1xf32>
      %32 = arith.addf %29, %31 : vector<256x1xf32>
      %c0_26 = arith.constant 0 : index
      %c0_27 = arith.constant 0 : index
      %33 = vector.load %arg9[%c0_26, %c0_27] : memref<256x1xf32, #tpu.memory_space<vmem>>, vector<256x1xf32>
      tpu.vector_store %arg9[%c0_26, %c0_27], %32 {strides = array<i32>} : memref<256x1xf32, #tpu.memory_space<vmem>>, vector<256x1xf32>,
    } else {
    }
    return
  }
  func.func @transform_0(%arg0: i32, %arg1: i32) -> (i32, i32) {
    %c0_i32 = arith.constant 0 : i32
    %c0_i32_0 = arith.constant 0 : i32
    return %arg0, %c0_i32 : i32, i32
  }
  func.func @transform_1(%arg0: i32, %arg1: i32) -> (i32, i32) {
    %c0_i32 = arith.constant 0 : i32
    %c0_i32_0 = arith.constant 0 : i32
    return %c0_i32, %arg1 : i32, i32
  }
  func.func @transform_2(%arg0: i32, %arg1: i32) -> (i32, i32) {
    %c0_i32 = arith.constant 0 : i32
    %c0_i32_0 = arith.constant 0 : i32
    return %c0_i32, %arg1 : i32, i32
  }
  func.func @transform_3(%arg0: i32, %arg1: i32) -> (i32, i32) {
    %c0_i32 = arith.constant 0 : i32
    %c0_i32_0 = arith.constant 0 : i32
    return %arg1, %c0_i32 : i32, i32
  }
  func.func @transform_4(%arg0: i32, %arg1: i32) -> (i32, i32) {
    %c0_i32 = arith.constant 0 : i32
    %c0_i32_0 = arith.constant 0 : i32
    %c0_i32_1 = arith.constant 0 : i32
    return %c0_i32, %c0_i32_0 : i32, i32
  }
  func.func @transform_5(%arg0: i32, %arg1: i32) -> (i32, i32) {
    %c0_i32 = arith.constant 0 : i32
    %c0_i32_0 = arith.constant 0 : i32
    %c0_i32_1 = arith.constant 0 : i32
    return %c0_i32, %c0_i32_0 : i32, i32
  }
  func.func @transform_6(%arg0: i32, %arg1: i32) -> (i32, i32) {
    %c0_i32 = arith.constant 0 : i32
    %c0_i32_0 = arith.constant 0 : i32
    %c0_i32_1 = arith.constant 0 : i32
    return %c0_i32, %c0_i32_0 : i32, i32
  }
  func.func @transform_7(%arg0: i32, %arg1: i32) -> (i32, i32) {
    %c0_i32 = arith.constant 0 : i32
    %c0_i32_0 = arith.constant 0 : i32
    return %arg0, %c0_i32 : i32, i32
  }
}

module attributes {stable_mosaic.version = 11 : i64} {
  func.func @mlp_kernel(%arg0: i32, %arg1: i32, %arg2: memref<256x32xf32, #tpu.memory_space<vmem>>, %arg3: memref<32x256xf32, #tpu.memory_space<vmem>>, %arg4: memref<1x256xf32, #tpu.memory_space<vmem>>, %arg5: memref<256x256xf32, #tpu.memory_space<vmem>>, %arg6: memref<1x256xf32, #tpu.memory_space<vmem>>, %arg7: memref<1x256xf32, #tpu.memory_space<vmem>>, %arg8: memref<1x1xf32, #tpu.memory_space<vmem>>, %arg9: memref<256x1xf32, #tpu.memory_space<vmem>>, %arg10: memref<256x256xf32, #tpu.memory_space<vmem>>) attributes {dimension_semantics = [#tpu.dimension_semantics<parallel>, #tpu.dimension_semantics<arbitrary>], iteration_bounds = array<i64: 1, 1>, scalar_prefetch = 0 : i64, scratch_operands = 1 : i64, tpu.core_type = #tpu.core_type<tc>, window_params = [{transform_indices = @transform_0, window_bounds = array<i64: 256, 32>}, {transform_indices = @transform_1, window_bounds = array<i64: 32, 256>}, {transform_indices = @transform_2, window_bounds = array<i64: 1, 256>}, {transform_indices = @transform_3, window_bounds = array<i64: 256, 256>}, {pipeline_mode = #tpu.pipeline_mode<synchronous>, transform_indices = @transform_4, window_bounds = array<i64: 1, 256>}, {pipeline_mode = #tpu.pipeline_mode<synchronous>, transform_indices = @transform_5, window_bounds = array<i64: 1, 256>}, {pipeline_mode = #tpu.pipeline_mode<synchronous>, transform_indices = @transform_6, window_bounds = array<i64: 1, 1>}, {transform_indices = @transform_7, window_bounds = array<i64: 256, 1>}]} {
    %c0_i32 = arith.constant 0 : i32
    %0 = arith.cmpi eq, %arg1, %c0_i32 : i32
    %1 = arith.extui %0 : i1 to i32
    %c0_i32_0 = arith.constant 0 : i32
    %2 = arith.cmpi ne, %1, %c0_i32_0 : i32
    scf.if %2 {
      %cst_16 = arith.constant 0.000000e+00 : f32
      %19 = vector.broadcast %cst_16 : f32 to vector<256x256xf32>
      %c0_17 = arith.constant 0 : index
      %c0_18 = arith.constant 0 : index
      %20 = vector.load %arg10[%c0_17, %c0_18] : memref<256x256xf32, #tpu.memory_space<vmem>>, vector<256x256xf32>
      tpu.vector_store %arg10[%c0_17, %c0_18], %19 {strides = array<i32>} : memref<256x256xf32, #tpu.memory_space<vmem>>, vector<256x256xf32>,
    } else {
    }
    %c0 = arith.constant 0 : index
    %c0_1 = arith.constant 0 : index
    %3 = vector.load %arg2[%c0, %c0_1] : memref<256x32xf32, #tpu.memory_space<vmem>>, vector<256x32xf32>
    %c0_2 = arith.constant 0 : index
    %c0_3 = arith.constant 0 : index
    %4 = vector.load %arg3[%c0_2, %c0_3] : memref<32x256xf32, #tpu.memory_space<vmem>>, vector<32x256xf32>
    %cst = arith.constant dense<0.000000e+00> : vector<256x256xf32>
    %5 = tpu.matmul %3, %4, %cst {dimension_numbers = #tpu.dot_dimension_numbers<[1], [0], [0], [1], [0, 0, 1, 1], [], []>} : vector<256x32xf32>, vector<32x256xf32>, vector<256x256xf32> -> vector<256x256xf32>
    %c0_4 = arith.constant 0 : index
    %c0_5 = arith.constant 0 : index
    %6 = vector.load %arg4[%c0_4, %c0_5] : memref<1x256xf32, #tpu.memory_space<vmem>>, vector<1x256xf32>
    %7 = vector.broadcast %6 : vector<1x256xf32> to vector<256x256xf32>
    %8 = arith.addf %5, %7 : vector<256x256xf32>
    %cst_6 = arith.constant 0.000000e+00 : f32
    %9 = vector.broadcast %cst_6 : f32 to vector<256x256xf32>
    %10 = arith.maximumf %8, %9 : vector<256x256xf32>
    %c0_7 = arith.constant 0 : index
    %c0_8 = arith.constant 0 : index
    %11 = vector.load %arg10[%c0_7, %c0_8] : memref<256x256xf32, #tpu.memory_space<vmem>>, vector<256x256xf32>
    %c0_9 = arith.constant 0 : index
    %c0_10 = arith.constant 0 : index
    %12 = vector.load %arg5[%c0_9, %c0_10] : memref<256x256xf32, #tpu.memory_space<vmem>>, vector<256x256xf32>
    %cst_11 = arith.constant dense<0.000000e+00> : vector<256x256xf32>
    %13 = tpu.matmul %10, %12, %cst_11 {dimension_numbers = #tpu.dot_dimension_numbers<[1], [0], [0], [1], [0, 0, 1, 1], [], []>} : vector<256x256xf32>, vector<256x256xf32>, vector<256x256xf32> -> vector<256x256xf32>
    %14 = arith.addf %11, %13 : vector<256x256xf32>
    %c0_12 = arith.constant 0 : index
    %c0_13 = arith.constant 0 : index
    %15 = vector.load %arg10[%c0_12, %c0_13] : memref<256x256xf32, #tpu.memory_space<vmem>>, vector<256x256xf32>
    tpu.vector_store %arg10[%c0_12, %c0_13], %14 {strides = array<i32>} : memref<256x256xf32, #tpu.memory_space<vmem>>, vector<256x256xf32>,
    %c0_i32_14 = arith.constant 0 : i32
    %16 = arith.cmpi eq, %arg1, %c0_i32_14 : i32
    %17 = arith.extui %16 : i1 to i32
    %c0_i32_15 = arith.constant 0 : i32
    %18 = arith.cmpi ne, %17, %c0_i32_15 : i32
    scf.if %18 {
      %c0_16 = arith.constant 0 : index
      %c0_17 = arith.constant 0 : index
      %19 = vector.load %arg10[%c0_16, %c0_17] : memref<256x256xf32, #tpu.memory_space<vmem>>, vector<256x256xf32>
      %c0_18 = arith.constant 0 : index
      %c0_19 = arith.constant 0 : index
      %20 = vector.load %arg6[%c0_18, %c0_19] : memref<1x256xf32, #tpu.memory_space<vmem>>, vector<1x256xf32>
      %21 = vector.broadcast %20 : vector<1x256xf32> to vector<256x256xf32>
      %22 = arith.addf %19, %21 : vector<256x256xf32>
      %cst_20 = arith.constant 0.000000e+00 : f32
      %23 = vector.broadcast %cst_20 : f32 to vector<256x256xf32>
      %24 = arith.maximumf %22, %23 : vector<256x256xf32>
      %c0_21 = arith.constant 0 : index
      %c0_22 = arith.constant 0 : index
      %25 = vector.load %arg7[%c0_21, %c0_22] : memref<1x256xf32, #tpu.memory_space<vmem>>, vector<1x256xf32>
      %26 = vector.broadcast %25 : vector<1x256xf32> to vector<256x256xf32>
      %27 = arith.mulf %24, %26 : vector<256x256xf32>
      %cst_23 = arith.constant dense<0.000000e+00> : vector<256xf32>
      %28 = vector.multi_reduction <add>, %27, %cst_23 [1] : vector<256x256xf32> to vector<256xf32>
      %29 = vector.shape_cast %28 : vector<256xf32> to vector<256x1xf32>
      %c0_24 = arith.constant 0 : index
      %c0_25 = arith.constant 0 : index
      %30 = vector.load %arg8[%c0_24, %c0_25] : memref<1x1xf32, #tpu.memory_space<vmem>>, vector<1x1xf32>
      %31 = vector.broadcast %30 : vector<1x1xf32> to vector<256x1xf32>
      %32 = arith.addf %29, %31 : vector<256x1xf32>
      %c0_26 = arith.constant 0 : index
      %c0_27 = arith.constant 0 : index
      %33 = vector.load %arg9[%c0_26, %c0_27] : memref<256x1xf32, #tpu.memory_space<vmem>>, vector<256x1xf32>
      tpu.vector_store %arg9[%c0_26, %c0_27], %32 {strides = array<i32>} : memref<256x1xf32, #tpu.memory_space<vmem>>, vector<256x1xf32>,
    } else {
    }
    return
  }
  func.func @transform_0(%arg0: i32, %arg1: i32) -> (i32, i32) {
    %c0_i32 = arith.constant 0 : i32
    %c0_i32_0 = arith.constant 0 : i32
    return %arg0, %c0_i32 : i32, i32
  }
  func.func @transform_1(%arg0: i32, %arg1: i32) -> (i32, i32) {
    %c0_i32 = arith.constant 0 : i32
    %c0_i32_0 = arith.constant 0 : i32
    return %c0_i32, %arg1 : i32, i32
  }
  func.func @transform_2(%arg0: i32, %arg1: i32) -> (i32, i32) {
    %c0_i32 = arith.constant 0 : i32
    %c0_i32_0 = arith.constant 0 : i32
    return %c0_i32, %arg1 : i32, i32
  }
  func.func @transform_3(%arg0: i32, %arg1: i32) -> (i32, i32) {
    %c0_i32 = arith.constant 0 : i32
    %c0_i32_0 = arith.constant 0 : i32
    return %arg1, %c0_i32 : i32, i32
  }
  func.func @transform_4(%arg0: i32, %arg1: i32) -> (i32, i32) {
    %c0_i32 = arith.constant 0 : i32
    %c0_i32_0 = arith.constant 0 : i32
    %c0_i32_1 = arith.constant 0 : i32
    return %c0_i32, %c0_i32_0 : i32, i32
  }
  func.func @transform_5(%arg0: i32, %arg1: i32) -> (i32, i32) {
    %c0_i32 = arith.constant 0 : i32
    %c0_i32_0 = arith.constant 0 : i32
    %c0_i32_1 = arith.constant 0 : i32
    return %c0_i32, %c0_i32_0 : i32, i32
  }
  func.func @transform_6(%arg0: i32, %arg1: i32) -> (i32, i32) {
    %c0_i32 = arith.constant 0 : i32
    %c0_i32_0 = arith.constant 0 : i32
    %c0_i32_1 = arith.constant 0 : i32
    return %c0_i32, %c0_i32_0 : i32, i32
  }
  func.func @transform_7(%arg0: i32, %arg1: i32) -> (i32, i32) {
    %c0_i32 = arith.constant 0 : i32
    %c0_i32_0 = arith.constant 0 : i32
    return %arg0, %c0_i32 : i32, i32
  }
}

</mosaic_0001>

<bundles_post_ra>
// kernel: tpu_custom_call.1
= control target key start
LH: loop header
LB: loop body
LE: loop exit
PB: predicated region body
PF: predicated region fallthrough
CT: control target
= control target key end

     0   :  { %s2342_s0 = inlined_call_operand.vmem [shape: f32[256,32], index: 0, kind: input, shape index: {}]   ;;  %s2343_s1 = inlined_call_operand.vmem [shape: f32[32,256], index: 1, kind: input, shape index: {}]   ;;  %s2344_s2 = inlined_call_operand.vmem [shape: f32[1,256], index: 2, kind: input, shape index: {}]   ;;  %s2345_s3 = inlined_call_operand.hbm [shape: f32[256,256], index: 3, kind: input, shape index: {}]   ;;  %s2346_s4 = inlined_call_operand.vmem [shape: f32[1,256], index: 4, kind: input, shape index: {}]   ;;  %s2347_s5 = inlined_call_operand.vmem [shape: f32[1,256], index: 5, kind: input, shape index: {}]   ;;  %s2348_s6 = inlined_call_operand.<no memory space> [shape: f32[1,1], index: 6, kind: input, shape index: {}]   ;;  %s2349_s7 = inlined_call_operand.vmem [shape: f32[256,1], index: 7, kind: output, shape index: {}]  }
   0x1   :  { %v12_v0 = vstv %s2348_s6 }
   0x2   :  { %13 = vst [vmem:[#allocation3] sm:$0x1] %v12_v0 }
   0x3   :  { %14 = vsyncpa [#allocation5], 0  ;;  %s1714_s26 = smov [#allocation4]   ;;  %s1690_s30 = scalar_lea.hbm %s2345_s3, 8192 }
   0x4   :  { %s26_s27 = sshll.u32 %s1714_s26, 4  ;;  %p1691_p0 = scmp.ne.s32.totalorder %s2345_s3, %s1690_s30  ;;  %s27_s27 = int_to_ptr.vmem [resolvable:$true] %s26_s27 }
   0x5   :  { %p1694_p1 = scmp.lt.u32.totalorder %s1690_s30, %s2345_s3 }
   0x7   :  { %p1696_p2 = pnand %p1694_p1, %p1691_p0 }
   0x9   :  { %1699 = shalt.err (!%p1696_p2)
}
   0xa   :  { %s1700_s6 = scalar_lea.vmem %s27_s27, 8192  ;;  %p1705_p4 = scmp.lt.s32.totalorder %s27_s27, %s27_s27 }
   0xb   :  { %p1701_p3 = scmp.ne.s32.totalorder %s27_s27, %s1700_s6  ;;  %p1706_p5 = scmp.lt.s32.totalorder %s1700_s6, %s1700_s6 }
   0xd   :  { %p1707_p6 = por %p1706_p5, %p1705_p4 }
   0xf   :  { %p1708_p7 = pnand %p1707_p6, %p1701_p3 }
  0x11   :  { %1711 = shalt.err (!%p1708_p7)
}
  0x12   :  { %s1715_s12 = smov 256   ;;  %s1716_s13 = smov 16  }
  0x13   :  { %32 = dma.hbm_to_vmem [thread:$0]  %s2345_s3, 8192, %s27_s27, [#allocation5], %s1715_s12, %s1715_s12, %s1716_s13  }
  0x14   :  { %1712 = dma.done.wait [#allocation5], 8192  }
  0x15   :  { %1713 = vsyncadd [#allocation5], 4294959104  ;;  %v1717_v1 = vmov 0.0   ;;  %v143_v2 = vld [vmem:[%s2343_s1 + $0x8] sm:$0xff]  ;;  %v145_v3 = vld [vmem:[%s2343_s1 + $0x18] sm:$0xff]  ;;  %vm162_vm0 = vcmask 261120  }
  0x16   :  { %323 = vmatprep.mubr.f32.mxu0 %v1717_v1  ;;  %v142_v4 = vld [vmem:[%s2343_s1] sm:$0xff]  ;;  %v1582_v5 = vpack.c.bf16 %v145_v3, %v143_v2  ;;  %v144_v6 = vld [vmem:[%s2343_s1 + $0x10] sm:$0xff]  ;;  %v147_v7 = vld [vmem:[%s2343_s1 + $0x28] sm:$0xff]  ;;  %vm1511_vm1 = vcmask 7168  }
  0x17   :  { %v149_v8 = vld [vmem:[%s2343_s1 + $0x38] sm:$0xff]  ;;  %v1584_v9 = vpack.c.bf16 %v144_v6, %v142_v4  ;;  %v146_v11 = vld [vmem:[%s2343_s1 + $0x20] sm:$0xff]  ;;  %v148_v12 = vld [vmem:[%s2343_s1 + $0x30] sm:$0xff] }
  0x18   :  { %v1586_v10 = vpack.c.bf16 %v149_v8, %v147_v7  ;;  %1583 = vmatprep.subr.bf16.mxu0 %v1582_v5  ;;  %v1588_v13 = vpack.c.bf16 %v148_v12, %v146_v11  ;;  %v110_v14 = vld [vmem:[%s2342_s0] sm:$0xff]  ;;  %v111_v15 = vld [vmem:[%s2342_s0 + $0x8] sm:$0xff]  ;;  %v646_v20 = vld [vmem:[#allocation4 + $0x10] sm:$0xff] }
  0x19   :  { %1585 = vmatpush1.bf16.msra.mxu0 %v1584_v9  ;;  %v645_v16 = vld [vmem:[#allocation4 + $0x8] sm:$0xff]  ;;  %v647_v17 = vld [vmem:[#allocation4 + $0x18] sm:$0xff]  ;;  %v644_v19 = vld [vmem:[#allocation4] sm:$0xff] }
  0x1a   :  { %1587 = vmatprep.subr.bf16.mxu0 %v1586_v10  ;;  %v1590_v18 = vpack.c.bf16 %v647_v17, %v645_v16  ;;  %v649_v21 = vld [vmem:[#allocation4 + $0x28] sm:$0xff]  ;;  %v1592_v22 = vpack.c.bf16 %v646_v20, %v644_v19  ;;  %v651_v23 = vld [vmem:[#allocation4 + $0x38] sm:$0xff]  ;;  %v648_v24 = vld [vmem:[#allocation4 + $0x20] sm:$0xff] }
  0x1b   :  { %v650_v25 = vld [vmem:[#allocation4 + $0x30] sm:$0xff]  ;;  %v1594_v27 = vpack.c.bf16 %v651_v23, %v649_v21  ;;  %v653_v28 = vld [vmem:[#allocation4 + $0x48] sm:$0xff]  ;;  %v655_v29 = vld [vmem:[#allocation4 + $0x58] sm:$0xff] }
  0x1c   :  { %v112_v26 = vld [vmem:[%s2342_s0 + $0x10] sm:$0xff]  ;;  %v1596_v30 = vpack.c.bf16 %v650_v25, %v648_v24  ;;  %1654 = vmatprep.subr.bf16.mxu1 %v1590_v18  ;;  %v1598_v31 = vpack.c.bf16 %v655_v29, %v653_v28  ;;  %v652_v32 = vld [vmem:[#allocation4 + $0x40] sm:$0xff]  ;;  %v659_v35 = vld [vmem:[#allocation4 + $0x78] sm:$0xff] }
  0x1d   :  { %1589 = vmatpush1.bf16.msra.mxu0 %v1588_v13  ;;  %v654_v33 = vld [vmem:[#allocation4 + $0x50] sm:$0xff]  ;;  %1670 = vmatpush1.bf16.msra.mxu1 %v1592_v22  ;;  %v657_v34 = vld [vmem:[#allocation4 + $0x68] sm:$0xff]  ;;  %v656_v39 = vld [vmem:[#allocation4 + $0x60] sm:$0xff] }
  0x1e   :  { %1591 = vmatprep.subr.bf16.mxu0 %v1590_v18  ;;  %1655 = vmatprep.subr.bf16.mxu1 %v1594_v27  ;;  %v113_v36 = vld [vmem:[%s2342_s0 + $0x18] sm:$0xff]  ;;  %v1600_v37 = vpack.c.bf16 %v654_v33, %v652_v32  ;;  %v1602_v38 = vpack.c.bf16 %v659_v35, %v657_v34  ;;  %v661_v41 = vld [vmem:[#allocation4 + $0x88] sm:$0xff]  ;;  %v114_v43 = vld [vmem:[%s2342_s0 + $0x20] sm:$0xff] }
  0x1f   :  { %v658_v40 = vld [vmem:[#allocation4 + $0x70] sm:$0xff]  ;;  %v663_v42 = vld [vmem:[#allocation4 + $0x98] sm:$0xff]  ;;  %v660_v46 = vld [vmem:[#allocation4 + $0x80] sm:$0xff] }
  0x20   :  { %1549 = vmatmul.mubr.msk.f32.vlgmr.msra.gmra.mrb[0].mxu0 %vm162_vm0, %v110_v14  ;;  %v1604_v44 = vpack.c.bf16 %v658_v40, %v656_v39  ;;  %v1606_v45 = vpack.c.bf16 %v663_v42, %v661_v41  ;;  %v662_v47 = vld [vmem:[#allocation4 + $0x90] sm:$0xff]  ;;  %v665_v48 = vld [vmem:[#allocation4 + $0xa8] sm:$0xff]  ;;  %v667_v49 = vld [vmem:[#allocation4 + $0xb8] sm:$0xff] }
  0x21   :  { %329 = vmatprep.mubr.f32.mxu0 %v1717_v1  ;;  %1593 = vmatpush1.bf16.msra.mxu0 %v1592_v22  ;;  %v115_v50 = vld [vmem:[%s2342_s0 + $0x28] sm:$0xff]  ;;  %v1608_v51 = vpack.c.bf16 %v662_v47, %v660_v46  ;;  %v1610_v52 = vpack.c.bf16 %v667_v49, %v665_v48  ;;  %v666_v54 = vld [vmem:[#allocation4 + $0xb0] sm:$0xff]  ;;  %v671_v56 = vld [vmem:[#allocation4 + $0xd8] sm:$0xff] }
  0x22   :  { %1595 = vmatprep.subr.bf16.mxu0 %v1594_v27  ;;  %1671 = vmatpush1.bf16.msra.mxu1 %v1596_v30  ;;  %v664_v53 = vld [vmem:[#allocation4 + $0xa0] sm:$0xff]  ;;  %v669_v55 = vld [vmem:[#allocation4 + $0xc8] sm:$0xff]  ;;  %v670_v61 = vld [vmem:[#allocation4 + $0xd0] sm:$0xff] }
  0x23   :  { %1656 = vmatprep.subr.bf16.mxu1 %v1598_v31  ;;  %v116_v57 = vld [vmem:[%s2342_s0 + $0x30] sm:$0xff]  ;;  %v1612_v58 = vpack.c.bf16 %v666_v54, %v664_v53  ;;  %v1614_v59 = vpack.c.bf16 %v671_v56, %v669_v55  ;;  %v668_v60 = vld [vmem:[#allocation4 + $0xc0] sm:$0xff]  ;;  %v675_v63 = vld [vmem:[#allocation4 + $0xf8] sm:$0xff] }
  0x24   :  { %1550 = vmatmul.mubr.msk.f32.gmra.mrb[2].mxu0 %vm162_vm0, %v111_v15  ;;  %v673_v62 = vld [vmem:[#allocation4 + $0xe8] sm:$0xff]  ;;  %v117_v0 = vld [vmem:[%s2342_s0 + $0x38] sm:$0xff]  ;;  %v1616_v2 = vpack.c.bf16 %v670_v61, %v668_v60  ;;  %v672_v4 = vld [vmem:[#allocation4 + $0xe0] sm:$0xff] }
  0x25   :  { %335 = vmatprep.mubr.f32.mxu0 %v1717_v1  ;;  %1597 = vmatpush1.bf16.msra.mxu0 %v1596_v30  ;;  %v1618_v3 = vpack.c.bf16 %v675_v63, %v673_v62  ;;  %v674_v5 = vld [vmem:[#allocation4 + $0xf0] sm:$0xff]  ;;  %v677_v6 = vld [vmem:[#allocation4 + $0x108] sm:$0xff]  ;;  %v679_v7 = vld [vmem:[#allocation4 + $0x118] sm:$0xff] }
  0x26   :  { %1599 = vmatprep.subr.bf16.mxu0 %v1598_v31  ;;  %1672 = vmatpush1.bf16.msra.mxu1 %v1600_v37  ;;  %v118_v8 = vld [vmem:[%s2342_s0 + $0x40] sm:$0xff]  ;;  %v1620_v9 = vpack.c.bf16 %v674_v5, %v672_v4  ;;  %v1622_v10 = vpack.c.bf16 %v679_v7, %v677_v6  ;;  %v678_v12 = vld [vmem:[#allocation4 + $0x110] sm:$0xff]  ;;  %v681_v13 = vld [vmem:[#allocation4 + $0x128] sm:$0xff] }
  0x27   :  { %1657 = vmatprep.subr.bf16.mxu1 %v1602_v38  ;;  %v676_v11 = vld [vmem:[#allocation4 + $0x100] sm:$0xff]  ;;  %v683_v14 = vld [vmem:[#allocation4 + $0x138] sm:$0xff]  ;;  %v682_v19 = vld [vmem:[#allocation4 + $0x130] sm:$0xff] }
  0x28   :  { %1551 = vmatmul.mubr.msk.f32.gmra.mrb[4].mxu0 %vm162_vm0, %v112_v26  ;;  %v119_v15 = vld [vmem:[%s2342_s0 + $0x48] sm:$0xff]  ;;  %v1624_v16 = vpack.c.bf16 %v678_v12, %v676_v11  ;;  %v1626_v17 = vpack.c.bf16 %v683_v14, %v681_v13  ;;  %v687_v21 = vld [vmem:[#allocation4 + $0x158] sm:$0xff]  ;;  %v120_v22 = vld [vmem:[%s2342_s0 + $0x50] sm:$0xff] }
  0x29   :  { %341 = vmatprep.mubr.f32.mxu0 %v1717_v1  ;;  %1601 = vmatpush1.bf16.msra.mxu0 %v1600_v37  ;;  %v680_v18 = vld [vmem:[#allocation4 + $0x120] sm:$0xff]  ;;  %v685_v20 = vld [vmem:[#allocation4 + $0x148] sm:$0xff]  ;;  %v686_v26 = vld [vmem:[#allocation4 + $0x150] sm:$0xff] }
  0x2a   :  { %1603 = vmatprep.subr.bf16.mxu0 %v1602_v38  ;;  %1673 = vmatpush1.bf16.msra.mxu1 %v1604_v44  ;;  %v1628_v23 = vpack.c.bf16 %v682_v19, %v680_v18  ;;  %v1630_v24 = vpack.c.bf16 %v687_v21, %v685_v20  ;;  %v684_v25 = vld [vmem:[#allocation4 + $0x140] sm:$0xff]  ;;  %v689_v27 = vld [vmem:[#allocation4 + $0x168] sm:$0xff]  ;;  %v691_v28 = vld [vmem:[#allocation4 + $0x178] sm:$0xff] }
  0x2b   :  { %1658 = vmatprep.subr.bf16.mxu1 %v1606_v45  ;;  %v121_v29 = vld [vmem:[%s2342_s0 + $0x58] sm:$0xff]  ;;  %v1632_v30 = vpack.c.bf16 %v686_v26, %v684_v25  ;;  %v1634_v31 = vpack.c.bf16 %v691_v28, %v689_v27  ;;  %v688_v32 = vld [vmem:[#allocation4 + $0x160] sm:$0xff]  ;;  %v693_v34 = vld [vmem:[#allocation4 + $0x188] sm:$0xff] }
  0x2c   :  { %1552 = vmatmul.mubr.msk.f32.gmra.mrb[6].mxu0 %vm162_vm0, %v113_v36  ;;  %v690_v33 = vld [vmem:[#allocation4 + $0x170] sm:$0xff]  ;;  %v695_v35 = vld [vmem:[#allocation4 + $0x198] sm:$0xff]  ;;  %v692_v39 = vld [vmem:[#allocation4 + $0x180] sm:$0xff] }
  0x2d   :  { %347 = vmatprep.mubr.f32.mxu0 %v1717_v1  ;;  %1605 = vmatpush1.bf16.msra.mxu0 %v1604_v44  ;;  %v122_v36 = vld [vmem:[%s2342_s0 + $0x60] sm:$0xff]  ;;  %v1636_v37 = vpack.c.bf16 %v690_v33, %v688_v32  ;;  %v1638_v38 = vpack.c.bf16 %v695_v35, %v693_v34  ;;  %v694_v40 = vld [vmem:[#allocation4 + $0x190] sm:$0xff]  ;;  %v697_v41 = vld [vmem:[#allocation4 + $0x1a8] sm:$0xff] }
  0x2e   :  { %1607 = vmatprep.subr.bf16.mxu0 %v1606_v45  ;;  %1674 = vmatpush1.bf16.msra.mxu1 %v1608_v51  ;;  %v699_v42 = vld [vmem:[#allocation4 + $0x1b8] sm:$0xff]  ;;  %v1640_v44 = vpack.c.bf16 %v694_v40, %v692_v39  ;;  %v696_v46 = vld [vmem:[#allocation4 + $0x1a0] sm:$0xff]  ;;  %v698_v47 = vld [vmem:[#allocation4 + $0x1b0] sm:$0xff] }
  0x2f   :  { %1659 = vmatprep.subr.bf16.mxu1 %v1610_v52  ;;  %v1642_v45 = vpack.c.bf16 %v699_v42, %v697_v41  ;;  %v701_v48 = vld [vmem:[#allocation4 + $0x1c8] sm:$0xff]  ;;  %v703_v49 = vld [vmem:[#allocation4 + $0x1d8] sm:$0xff]  ;;  %v702_v60 = vld [vmem:[#allocation4 + $0x1d0] sm:$0xff] }
  0x30   :  { %1553 = vmatmul.mubr.msk.f32.gmra.mrb[8].mxu0 %vm162_vm0, %v114_v43  ;;  %v123_v43 = vld [vmem:[%s2342_s0 + $0x68] sm:$0xff]  ;;  %v125_v53 = vld [vmem:[%s2342_s0 + $0x78] sm:$0xff]  ;;  %v126_v54 = vld [vmem:[%s2342_s0 + $0x80] sm:$0xff] }
  0x31   :  { %353 = vmatprep.mubr.f32.mxu0 %v1717_v1  ;;  %1609 = vmatpush1.bf16.msra.mxu0 %v1608_v51  ;;  %v1644_v51 = vpack.c.bf16 %v698_v47, %v696_v46  ;;  %v127_v55 = vld [vmem:[%s2342_s0 + $0x88] sm:$0xff]  ;;  %v128_v56 = vld [vmem:[%s2342_s0 + $0x90] sm:$0xff]  ;;  %v133_v7 = vld [vmem:[%s2342_s0 + $0xb8] sm:$0xff] }
  0x32   :  { %1611 = vmatprep.subr.bf16.mxu0 %v1610_v52  ;;  %1675 = vmatpush1.bf16.msra.mxu1 %v1612_v58  ;;  %v1646_v52 = vpack.c.bf16 %v703_v49, %v701_v48  ;;  %v131_v61 = vld [vmem:[%s2342_s0 + $0xa8] sm:$0xff]  ;;  %v706_v4 = vld [vmem:[#allocation4 + $0x1f0] sm:$0xff]  ;;  %v138_v12 = vld [vmem:[%s2342_s0 + $0xe0] sm:$0xff] }
  0x33   :  { %1660 = vmatprep.subr.bf16.mxu1 %v1614_v59  ;;  %v705_v63 = vld [vmem:[#allocation4 + $0x1e8] sm:$0xff]  ;;  %v137_v11 = vld [vmem:[%s2342_s0 + $0xd8] sm:$0xff]  ;;  %v150_v19 = vld [vmem:[%s2344_s2] sm:$0x3] }
  0x34   :  { %1554 = vmatmul.mubr.msk.f32.gmra.mrb[10].mxu0 %vm162_vm0, %v115_v50  ;;  %v124_v50 = vld [vmem:[%s2342_s0 + $0x70] sm:$0xff]  ;;  %v139_v13 = vld [vmem:[%s2342_s0 + $0xe8] sm:$0xff] }
  0x35   :  { %359 = vmatprep.mubr.f32.mxu0 %v1717_v1  ;;  %1613 = vmatpush1.bf16.msra.mxu0 %v1612_v58  ;;  %v130_v58 = vld [vmem:[%s2342_s0 + $0xa0] sm:$0xff]  ;;  %v132_v5 = vld [vmem:[%s2342_s0 + $0xb0] sm:$0xff] }
  0x36   :  { %1615 = vmatprep.subr.bf16.mxu0 %v1614_v59  ;;  %1676 = vmatpush1.bf16.msra.mxu1 %v1616_v2  ;;  %v700_v59 = vld [vmem:[#allocation4 + $0x1c0] sm:$0xff]  ;;  %v140_v14 = vld [vmem:[%s2342_s0 + $0xf0] sm:$0xff] }
  0x37   :  { %1661 = vmatprep.subr.bf16.mxu1 %v1618_v3  ;;  %v1648_v62 = vpack.c.bf16 %v702_v60, %v700_v59 }
  0x38   :  { %1555 = vmatmul.mubr.msk.f32.gmra.mrb[12].mxu0 %vm162_vm0, %v116_v57  ;;  %v129_v57 = vld [vmem:[%s2342_s0 + $0x98] sm:$0xff] }
  0x39   :  { %365 = vmatprep.mubr.f32.mxu0 %v1717_v1  ;;  %1617 = vmatpush1.bf16.msra.mxu0 %v1616_v2 }
  0x3a   :  { %1619 = vmatprep.subr.bf16.mxu0 %v1618_v3  ;;  %1677 = vmatpush1.bf16.msra.mxu1 %v1620_v9  ;;  %v704_v3 = vld [vmem:[#allocation4 + $0x1e0] sm:$0xff] }
  0x3b   :  { %1662 = vmatprep.subr.bf16.mxu1 %v1622_v10  ;;  %v1652_v6 = vpack.c.bf16 %v706_v4, %v704_v3 }
  0x3c   :  { %1556 = vmatmul.mubr.msk.f32.gmra.mrb[14].mxu0 %vm162_vm0, %v117_v0  ;;  %v707_v0 = vld [vmem:[#allocation4 + $0x1f8] sm:$0xff] }
  0x3d   :  { %371 = vmatprep.mubr.f32.mxu0 %v1717_v1  ;;  %1621 = vmatpush1.bf16.msra.mxu0 %v1620_v9  ;;  %v1650_v2 = vpack.c.bf16 %v707_v0, %v705_v63  ;;  %v135_v9 = vld [vmem:[%s2342_s0 + $0xc8] sm:$0xff] }
  0x3e   :  { %1623 = vmatprep.subr.bf16.mxu0 %v1622_v10  ;;  %1678 = vmatpush1.bf16.msra.mxu1 %v1624_v16  ;;  %v136_v10 = vld [vmem:[%s2342_s0 + $0xd0] sm:$0xff] }
  0x3f   :  { %1663 = vmatprep.subr.bf16.mxu1 %v1626_v17 }
  0x40   :  { %1557 = vmatmul.mubr.msk.f32.gmra.mrb[16].mxu0 %vm162_vm0, %v118_v8  ;;  %v134_v8 = vld [vmem:[%s2342_s0 + $0xc0] sm:$0xff] }
  0x41   :  { %377 = vmatprep.mubr.f32.mxu0 %v1717_v1  ;;  %1625 = vmatpush1.bf16.msra.mxu0 %v1624_v16  ;;  %v152_v16 = vlaneseq }
  0x42   :  { %1627 = vmatprep.subr.bf16.mxu0 %v1626_v17  ;;  %1679 = vmatpush1.bf16.msra.mxu1 %v1628_v23 }
  0x43   :  { %1664 = vmatprep.subr.bf16.mxu1 %v1630_v24  ;;  %v153_v17 = vshrl.u32 %v152_v16, 7 }
  0x44   :  { %1558 = vmatmul.mubr.msk.f32.gmra.mrb[18].mxu0 %vm162_vm0, %v119_v15  ;;  %v141_v15 = vld [vmem:[%s2342_s0 + $0xf8] sm:$0xff] }
  0x45   :  { %383 = vmatprep.mubr.f32.mxu0 %v1717_v1  ;;  %1629 = vmatpush1.bf16.msra.mxu0 %v1628_v23  ;;  %v1957_v18 = vsub.s32 0, %v153_v17  ;;  %v1962_v20 = vsub.s32 1, %v153_v17 }
  0x46   :  { %1631 = vmatprep.subr.bf16.mxu0 %v1630_v24  ;;  %1680 = vmatpush1.bf16.msra.mxu1 %v1632_v30 }
  0x47   :  { %1665 = vmatprep.subr.bf16.mxu1 %v1634_v31  ;;  %v1965_v21 = vrot.slane %v150_v19, %v1957_v18 }
  0x48   :  { %1559 = vmatmul.mubr.msk.f32.gmra.mrb[20].mxu0 %vm162_vm0, %v120_v22 }
  0x49   :  { %389 = vmatprep.mubr.f32.mxu0 %v1717_v1  ;;  %1633 = vmatpush1.bf16.msra.mxu0 %v1632_v30 }
  0x4a   :  { %1635 = vmatprep.subr.bf16.mxu0 %v1634_v31  ;;  %1681 = vmatpush1.bf16.msra.mxu1 %v1636_v37 }
  0x4b   :  { %1666 = vmatprep.subr.bf16.mxu1 %v1638_v38 }
  0x4c   :  { %1560 = vmatmul.mubr.msk.f32.gmra.mrb[22].mxu0 %vm162_vm0, %v121_v29 }
  0x4d   :  { %395 = vmatprep.mubr.f32.mxu0 %v1717_v1  ;;  %1637 = vmatpush1.bf16.msra.mxu0 %v1636_v37 }
  0x4e   :  { %1639 = vmatprep.subr.bf16.mxu0 %v1638_v38  ;;  %1682 = vmatpush1.bf16.msra.mxu1 %v1640_v44 }
  0x4f   :  { %1667 = vmatprep.subr.bf16.mxu1 %v1642_v45 }
  0x50   :  { %1561 = vmatmul.mubr.msk.f32.gmra.mrb[24].mxu0 %vm162_vm0, %v122_v36 }
  0x51   :  { %401 = vmatprep.mubr.f32.mxu0 %v1717_v1  ;;  %1641 = vmatpush1.bf16.msra.mxu0 %v1640_v44 }
  0x52   :  { %1643 = vmatprep.subr.bf16.mxu0 %v1642_v45  ;;  %1683 = vmatpush1.bf16.msra.mxu1 %v1644_v51 }
  0x53   :  { %1668 = vmatprep.subr.bf16.mxu1 %v1646_v52 }
  0x54   :  { %1562 = vmatmul.mubr.msk.f32.gmra.mrb[26].mxu0 %vm162_vm0, %v123_v43 }
  0x55   :  { %407 = vmatprep.mubr.f32.mxu0 %v1717_v1  ;;  %1645 = vmatpush1.bf16.msra.mxu0 %v1644_v51 }
  0x56   :  { %1647 = vmatprep.subr.bf16.mxu0 %v1646_v52  ;;  %1684 = vmatpush1.bf16.msra.mxu1 %v1648_v62 }
  0x57   :  { %1669 = vmatprep.subr.bf16.mxu1 %v1650_v2 }
  0x58   :  { %1563 = vmatmul.mubr.msk.f32.gmra.mrb[28].mxu0 %vm162_vm0, %v124_v50 }
  0x59   :  { %413 = vmatprep.mubr.f32.mxu0 %v1717_v1  ;;  %1649 = vmatpush1.bf16.msra.mxu0 %v1648_v62 }
  0x5a   :  { %1651 = vmatprep.subr.bf16.mxu0 %v1650_v2  ;;  %1685 = vmatpush1.bf16.msra.mxu1 %v1652_v6 }
  0x5c   :  { %1564 = vmatmul.mubr.msk.f32.gmra.mrb[30].mxu0 %vm162_vm0, %v125_v53 }
  0x5d   :  { %419 = vmatprep.mubr.f32.mxu0 %v1717_v1  ;;  %1653 = vmatpush1.bf16.msra.mxu0 %v1652_v6 }
  0x60   :  { %1565 = vmatmul.mubr.msk.f32.gmra.mrb[32].mxu0 %vm162_vm0, %v126_v54 }
  0x61   :  { %425 = vmatprep.mubr.f32.mxu0 %v1717_v1 }
  0x64   :  { %1566 = vmatmul.mubr.msk.f32.gmra.mrb[34].mxu0 %vm162_vm0, %v127_v55 }
  0x65   :  { %431 = vmatprep.mubr.f32.mxu0 %v1717_v1 }
  0x68   :  { %1567 = vmatmul.mubr.msk.f32.gmra.mrb[36].mxu0 %vm162_vm0, %v128_v56 }
  0x69   :  { %437 = vmatprep.mubr.f32.mxu0 %v1717_v1 }
  0x6c   :  { %1568 = vmatmul.mubr.msk.f32.gmra.mrb[38].mxu0 %vm162_vm0, %v129_v57 }
  0x6d   :  { %443 = vmatprep.mubr.f32.mxu0 %v1717_v1 }
  0x70   :  { %1569 = vmatmul.mubr.msk.f32.gmra.mrb[40].mxu0 %vm162_vm0, %v130_v58 }
  0x71   :  { %449 = vmatprep.mubr.f32.mxu0 %v1717_v1 }
  0x74   :  { %1570 = vmatmul.mubr.msk.f32.gmra.mrb[42].mxu0 %vm162_vm0, %v131_v61 }
  0x75   :  { %455 = vmatprep.mubr.f32.mxu0 %v1717_v1 }
  0x78   :  { %1571 = vmatmul.mubr.msk.f32.gmra.mrb[44].mxu0 %vm162_vm0, %v132_v5 }
  0x79   :  { %461 = vmatprep.mubr.f32.mxu0 %v1717_v1 }
  0x7c   :  { %1572 = vmatmul.mubr.msk.f32.gmra.mrb[46].mxu0 %vm162_vm0, %v133_v7 }
  0x7d   :  { %467 = vmatprep.mubr.f32.mxu0 %v1717_v1 }
  0x80   :  { %1573 = vmatmul.mubr.msk.f32.gmra.mrb[48].mxu0 %vm162_vm0, %v134_v8 }
  0x81   :  { %473 = vmatprep.mubr.f32.mxu0 %v1717_v1 }
  0x84   :  { %1574 = vmatmul.mubr.msk.f32.gmra.mrb[50].mxu0 %vm162_vm0, %v135_v9 }
  0x85   :  { %479 = vmatprep.mubr.f32.mxu0 %v1717_v1 }
  0x88   :  { %1575 = vmatmul.mubr.msk.f32.gmra.mrb[52].mxu0 %vm162_vm0, %v136_v10 }
  0x89   :  { %485 = vmatprep.mubr.f32.mxu0 %v1717_v1 }
  0x8c   :  { %1576 = vmatmul.mubr.msk.f32.gmra.mrb[54].mxu0 %vm162_vm0, %v137_v11 }
  0x8d   :  { %491 = vmatprep.mubr.f32.mxu0 %v1717_v1 }
  0x90   :  { %1577 = vmatmul.mubr.msk.f32.gmra.mrb[56].mxu0 %vm162_vm0, %v138_v12 }
  0x91   :  { %497 = vmatprep.mubr.f32.mxu0 %v1717_v1 }
  0x94   :  { %1578 = vmatmul.mubr.msk.f32.gmra.mrb[58].mxu0 %vm162_vm0, %v139_v13 }
  0x95   :  { %503 = vmatprep.mubr.f32.mxu0 %v1717_v1 }
  0x98   :  { %1579 = vmatmul.mubr.msk.f32.gmra.mrb[60].mxu0 %vm162_vm0, %v140_v14 }
  0x99   :  { %509 = vmatprep.mubr.f32.mxu0 %v1717_v1  ;;  %v1968_v1 = vrot.slane %v150_v19, %v1962_v20 }
  0x9c   :  { %1580 = vmatmul.mubr.msk.f32.gmra.mrb[62].mxu0 %vm162_vm0, %v141_v15 }
  0xf3   :  { %v325_v22 = vpop.f32.mrb[0].mxu0 }
  0xf4   :  { %v326_v23 = vadd.f32 %v325_v22, %v1965_v21  ;;  %v327_v24 = vpop.f32.mrb[1].mxu0 }
  0xf5   :  { %v328_v25 = vadd.f32 %v327_v24, %v1968_v1 }
  0xf6   :  { %v516_v28 = vmax.f32 %v326_v23, 0.0 }
  0xf7   :  { %v517_v26 = vmax.f32 %v328_v25, 0.0  ;;  %v331_v27 = vpop.f32.mrb[2].mxu0 }
  0xf8   :  { %v332_v29 = vadd.f32 %v331_v27, %v1965_v21  ;;  %v333_v30 = vpop.f32.mrb[3].mxu0 }
  0xf9   :  { %v334_v31 = vadd.f32 %v333_v30, %v1968_v1  ;;  %772 = vmatprep.mubr.f32.mxu0 %v517_v26 }
  0xfa   :  { %773 = vmatmul.mubr.f32.vlgmr.msra.gmra.mrb[64].mxu0 %v516_v28  ;;  %v518_v34 = vmax.f32 %v332_v29, 0.0 }
  0xfb   :  { %v519_v32 = vmax.f32 %v334_v31, 0.0  ;;  %v337_v33 = vpop.f32.mrb[4].mxu0 }
  0xfc   :  { %v338_v35 = vadd.f32 %v337_v33, %v1965_v21  ;;  %v339_v36 = vpop.f32.mrb[5].mxu0 }
  0xfd   :  { %v340_v37 = vadd.f32 %v339_v36, %v1968_v1  ;;  %778 = vmatprep.mubr.f32.mxu0 %v519_v32 }
  0xfe   :  { %779 = vmatmul.mubr.f32.gmra.mrb[66].mxu0 %v518_v34  ;;  %v520_v40 = vmax.f32 %v338_v35, 0.0 }
  0xff   :  { %v521_v38 = vmax.f32 %v340_v37, 0.0  ;;  %v343_v39 = vpop.f32.mrb[6].mxu0 }
 0x100   :  { %v344_v41 = vadd.f32 %v343_v39, %v1965_v21  ;;  %v345_v42 = vpop.f32.mrb[7].mxu0 }
 0x101   :  { %v346_v43 = vadd.f32 %v345_v42, %v1968_v1  ;;  %784 = vmatprep.mubr.f32.mxu0 %v521_v38 }
 0x102   :  { %785 = vmatmul.mubr.f32.gmra.mrb[68].mxu0 %v520_v40  ;;  %v522_v46 = vmax.f32 %v344_v41, 0.0 }
 0x103   :  { %v523_v44 = vmax.f32 %v346_v43, 0.0  ;;  %v349_v45 = vpop.f32.mrb[8].mxu0 }
 0x104   :  { %v350_v47 = vadd.f32 %v349_v45, %v1965_v21  ;;  %v351_v48 = vpop.f32.mrb[9].mxu0 }
 0x105   :  { %v352_v49 = vadd.f32 %v351_v48, %v1968_v1  ;;  %790 = vmatprep.mubr.f32.mxu0 %v523_v44 }
 0x106   :  { %791 = vmatmul.mubr.f32.gmra.mrb[70].mxu0 %v522_v46  ;;  %v524_v52 = vmax.f32 %v350_v47, 0.0 }
 0x107   :  { %v525_v50 = vmax.f32 %v352_v49, 0.0  ;;  %v355_v51 = vpop.f32.mrb[10].mxu0 }
 0x108   :  { %v356_v53 = vadd.f32 %v355_v51, %v1965_v21  ;;  %v357_v54 = vpop.f32.mrb[11].mxu0 }
 0x109   :  { %v358_v55 = vadd.f32 %v357_v54, %v1968_v1  ;;  %796 = vmatprep.mubr.f32.mxu0 %v525_v50 }
 0x10a   :  { %797 = vmatmul.mubr.f32.gmra.mrb[72].mxu0 %v524_v52  ;;  %v526_v58 = vmax.f32 %v356_v53, 0.0 }
 0x10b   :  { %v527_v56 = vmax.f32 %v358_v55, 0.0  ;;  %v361_v57 = vpop.f32.mrb[12].mxu0 }
 0x10c   :  { %v362_v59 = vadd.f32 %v361_v57, %v1965_v21  ;;  %v363_v60 = vpop.f32.mrb[13].mxu0 }
 0x10d   :  { %v364_v61 = vadd.f32 %v363_v60, %v1968_v1  ;;  %802 = vmatprep.mubr.f32.mxu0 %v527_v56 }
 0x10e   :  { %803 = vmatmul.mubr.f32.gmra.mrb[74].mxu0 %v526_v58  ;;  %v528_v0 = vmax.f32 %v362_v59, 0.0 }
 0x10f   :  { %v529_v62 = vmax.f32 %v364_v61, 0.0  ;;  %v367_v63 = vpop.f32.mrb[14].mxu0 }
 0x110   :  { %v368_v2 = vadd.f32 %v367_v63, %v1965_v21  ;;  %v369_v3 = vpop.f32.mrb[15].mxu0 }
 0x111   :  { %808 = vmatprep.mubr.f32.mxu0 %v529_v62  ;;  %v370_v4 = vadd.f32 %v369_v3, %v1968_v1 }
 0x112   :  { %809 = vmatmul.mubr.f32.gmra.mrb[76].mxu0 %v528_v0  ;;  %v530_v7 = vmax.f32 %v368_v2, 0.0 }
 0x113   :  { %v373_v5 = vpop.f32.mrb[16].mxu0  ;;  %v531_v6 = vmax.f32 %v370_v4, 0.0 }
 0x114   :  { %v374_v8 = vadd.f32 %v373_v5, %v1965_v21  ;;  %v375_v9 = vpop.f32.mrb[17].mxu0 }
 0x115   :  { %v376_v10 = vadd.f32 %v375_v9, %v1968_v1  ;;  %814 = vmatprep.mubr.f32.mxu1 %v531_v6 }
 0x116   :  { %815 = vmatmul.mubr.f32.vlgmr.msra.gmra.mrb[0].mxu1 %v530_v7  ;;  %v532_v13 = vmax.f32 %v374_v8, 0.0 }
 0x117   :  { %v533_v11 = vmax.f32 %v376_v10, 0.0  ;;  %v379_v12 = vpop.f32.mrb[18].mxu0 }
 0x118   :  { %v380_v14 = vadd.f32 %v379_v12, %v1965_v21  ;;  %v381_v15 = vpop.f32.mrb[19].mxu0 }
 0x119   :  { %v382_v16 = vadd.f32 %v381_v15, %v1968_v1  ;;  %820 = vmatprep.mubr.f32.mxu1 %v533_v11 }
 0x11a   :  { %821 = vmatmul.mubr.f32.gmra.mrb[2].mxu1 %v532_v13  ;;  %v534_v22 = vmax.f32 %v380_v14, 0.0 }
 0x11b   :  { %v535_v17 = vmax.f32 %v382_v16, 0.0  ;;  %v385_v19 = vpop.f32.mrb[20].mxu0 }
 0x11c   :  { %v386_v23 = vadd.f32 %v385_v19, %v1965_v21  ;;  %v387_v24 = vpop.f32.mrb[21].mxu0 }
 0x11d   :  { %v388_v25 = vadd.f32 %v387_v24, %v1968_v1  ;;  %826 = vmatprep.mubr.f32.mxu1 %v535_v17 }
 0x11e   :  { %827 = vmatmul.mubr.f32.gmra.mrb[4].mxu1 %v534_v22  ;;  %v536_v28 = vmax.f32 %v386_v23, 0.0 }
 0x11f   :  { %v537_v26 = vmax.f32 %v388_v25, 0.0  ;;  %v391_v27 = vpop.f32.mrb[22].mxu0 }
 0x120   :  { %v392_v29 = vadd.f32 %v391_v27, %v1965_v21  ;;  %v393_v30 = vpop.f32.mrb[23].mxu0 }
 0x121   :  { %v394_v31 = vadd.f32 %v393_v30, %v1968_v1  ;;  %832 = vmatprep.mubr.f32.mxu1 %v537_v26 }
 0x122   :  { %833 = vmatmul.mubr.f32.gmra.mrb[6].mxu1 %v536_v28  ;;  %v538_v34 = vmax.f32 %v392_v29, 0.0 }
 0x123   :  { %v539_v32 = vmax.f32 %v394_v31, 0.0  ;;  %v397_v33 = vpop.f32.mrb[24].mxu0 }
 0x124   :  { %v398_v35 = vadd.f32 %v397_v33, %v1965_v21  ;;  %v399_v36 = vpop.f32.mrb[25].mxu0 }
 0x125   :  { %v400_v37 = vadd.f32 %v399_v36, %v1968_v1  ;;  %838 = vmatprep.mubr.f32.mxu1 %v539_v32 }
 0x126   :  { %839 = vmatmul.mubr.f32.gmra.mrb[8].mxu1 %v538_v34  ;;  %v540_v40 = vmax.f32 %v398_v35, 0.0 }
 0x127   :  { %v541_v38 = vmax.f32 %v400_v37, 0.0  ;;  %v403_v39 = vpop.f32.mrb[26].mxu0 }
 0x128   :  { %v404_v41 = vadd.f32 %v403_v39, %v1965_v21  ;;  %v405_v42 = vpop.f32.mrb[27].mxu0 }
 0x129   :  { %v406_v43 = vadd.f32 %v405_v42, %v1968_v1  ;;  %844 = vmatprep.mubr.f32.mxu1 %v541_v38 }
 0x12a   :  { %845 = vmatmul.mubr.f32.gmra.mrb[10].mxu1 %v540_v40  ;;  %v542_v46 = vmax.f32 %v404_v41, 0.0 }
 0x12b   :  { %v543_v44 = vmax.f32 %v406_v43, 0.0  ;;  %v409_v45 = vpop.f32.mrb[28].mxu0 }
 0x12c   :  { %v410_v47 = vadd.f32 %v409_v45, %v1965_v21  ;;  %v411_v48 = vpop.f32.mrb[29].mxu0 }
 0x12d   :  { %v412_v49 = vadd.f32 %v411_v48, %v1968_v1  ;;  %850 = vmatprep.mubr.f32.mxu1 %v543_v44 }
 0x12e   :  { %851 = vmatmul.mubr.f32.gmra.mrb[12].mxu1 %v542_v46  ;;  %v544_v52 = vmax.f32 %v410_v47, 0.0 }
 0x12f   :  { %v545_v50 = vmax.f32 %v412_v49, 0.0  ;;  %v415_v51 = vpop.f32.mrb[30].mxu0 }
 0x130   :  { %v416_v53 = vadd.f32 %v415_v51, %v1965_v21  ;;  %v417_v54 = vpop.f32.mrb[31].mxu0 }
 0x131   :  { %v418_v55 = vadd.f32 %v417_v54, %v1968_v1  ;;  %856 = vmatprep.mubr.f32.mxu1 %v545_v50 }
 0x132   :  { %857 = vmatmul.mubr.f32.gmra.mrb[14].mxu1 %v544_v52  ;;  %v546_v58 = vmax.f32 %v416_v53, 0.0 }
 0x133   :  { %v547_v56 = vmax.f32 %v418_v55, 0.0  ;;  %v421_v57 = vpop.f32.mrb[32].mxu0 }
 0x134   :  { %v422_v59 = vadd.f32 %v421_v57, %v1965_v21  ;;  %v423_v60 = vpop.f32.mrb[33].mxu0 }
 0x135   :  { %v424_v61 = vadd.f32 %v423_v60, %v1968_v1  ;;  %862 = vmatprep.mubr.f32.mxu1 %v547_v56 }
 0x136   :  { %863 = vmatmul.mubr.f32.gmra.mrb[16].mxu1 %v546_v58  ;;  %v548_v0 = vmax.f32 %v422_v59, 0.0 }
 0x137   :  { %v549_v62 = vmax.f32 %v424_v61, 0.0  ;;  %v427_v63 = vpop.f32.mrb[34].mxu0 }
 0x138   :  { %v428_v2 = vadd.f32 %v427_v63, %v1965_v21  ;;  %v429_v3 = vpop.f32.mrb[35].mxu0 }
 0x139   :  { %v430_v4 = vadd.f32 %v429_v3, %v1968_v1  ;;  %868 = vmatprep.mubr.f32.mxu1 %v549_v62 }
 0x13a   :  { %869 = vmatmul.mubr.f32.gmra.mrb[18].mxu1 %v548_v0  ;;  %v550_v7 = vmax.f32 %v428_v2, 0.0 }
 0x13b   :  { %v551_v5 = vmax.f32 %v430_v4, 0.0  ;;  %v433_v6 = vpop.f32.mrb[36].mxu0 }
 0x13c   :  { %v434_v8 = vadd.f32 %v433_v6, %v1965_v21  ;;  %v435_v9 = vpop.f32.mrb[37].mxu0 }
 0x13d   :  { %v436_v10 = vadd.f32 %v435_v9, %v1968_v1  ;;  %874 = vmatprep.mubr.f32.mxu1 %v551_v5 }
 0x13e   :  { %875 = vmatmul.mubr.f32.gmra.mrb[20].mxu1 %v550_v7  ;;  %v552_v13 = vmax.f32 %v434_v8, 0.0 }
 0x13f   :  { %v553_v11 = vmax.f32 %v436_v10, 0.0  ;;  %v439_v12 = vpop.f32.mrb[38].mxu0 }
 0x140   :  { %v440_v14 = vadd.f32 %v439_v12, %v1965_v21  ;;  %v441_v15 = vpop.f32.mrb[39].mxu0 }
 0x141   :  { %v442_v16 = vadd.f32 %v441_v15, %v1968_v1  ;;  %880 = vmatprep.mubr.f32.mxu1 %v553_v11 }
 0x142   :  { %881 = vmatmul.mubr.f32.gmra.mrb[22].mxu1 %v552_v13  ;;  %v554_v22 = vmax.f32 %v440_v14, 0.0 }
 0x143   :  { %v555_v17 = vmax.f32 %v442_v16, 0.0  ;;  %v445_v19 = vpop.f32.mrb[40].mxu0 }
 0x144   :  { %v446_v23 = vadd.f32 %v445_v19, %v1965_v21  ;;  %v447_v24 = vpop.f32.mrb[41].mxu0 }
 0x145   :  { %v448_v25 = vadd.f32 %v447_v24, %v1968_v1  ;;  %886 = vmatprep.mubr.f32.mxu1 %v555_v17 }
 0x146   :  { %887 = vmatmul.mubr.f32.gmra.mrb[24].mxu1 %v554_v22  ;;  %v556_v28 = vmax.f32 %v446_v23, 0.0 }
 0x147   :  { %v557_v26 = vmax.f32 %v448_v25, 0.0  ;;  %v451_v27 = vpop.f32.mrb[42].mxu0 }
 0x148   :  { %v452_v29 = vadd.f32 %v451_v27, %v1965_v21  ;;  %v453_v30 = vpop.f32.mrb[43].mxu0 }
 0x149   :  { %v454_v31 = vadd.f32 %v453_v30, %v1968_v1  ;;  %892 = vmatprep.mubr.f32.mxu1 %v557_v26 }
 0x14a   :  { %893 = vmatmul.mubr.f32.gmra.mrb[26].mxu1 %v556_v28  ;;  %v558_v34 = vmax.f32 %v452_v29, 0.0 }
 0x14b   :  { %v559_v32 = vmax.f32 %v454_v31, 0.0  ;;  %v457_v33 = vpop.f32.mrb[44].mxu0 }
 0x14c   :  { %v458_v35 = vadd.f32 %v457_v33, %v1965_v21  ;;  %v459_v36 = vpop.f32.mrb[45].mxu0 }
 0x14d   :  { %v460_v37 = vadd.f32 %v459_v36, %v1968_v1  ;;  %898 = vmatprep.mubr.f32.mxu1 %v559_v32 }
 0x14e   :  { %899 = vmatmul.mubr.f32.gmra.mrb[28].mxu1 %v558_v34  ;;  %v560_v40 = vmax.f32 %v458_v35, 0.0  ;;  %v1160_v34 = vld [vmem:[%s2346_s4] sm:$0x3] }
 0x14f   :  { %v561_v38 = vmax.f32 %v460_v37, 0.0  ;;  %v463_v39 = vpop.f32.mrb[46].mxu0  ;;  %v2038_v35 = vrot.slane %v1160_v34, %v1957_v18  ;;  %v2041_v36 = vrot.slane %v1160_v34, %v1962_v20 }
 0x150   :  { %v464_v41 = vadd.f32 %v463_v39, %v1965_v21  ;;  %v465_v42 = vpop.f32.mrb[47].mxu0 }
 0x151   :  { %v466_v43 = vadd.f32 %v465_v42, %v1968_v1  ;;  %904 = vmatprep.mubr.f32.mxu1 %v561_v38 }
 0x152   :  { %905 = vmatmul.mubr.f32.gmra.mrb[30].mxu1 %v560_v40  ;;  %v562_v46 = vmax.f32 %v464_v41, 0.0 }
 0x153   :  { %v563_v44 = vmax.f32 %v466_v43, 0.0  ;;  %v469_v45 = vpop.f32.mrb[48].mxu0 }
 0x154   :  { %v470_v47 = vadd.f32 %v469_v45, %v1965_v21  ;;  %v471_v48 = vpop.f32.mrb[49].mxu0 }
 0x155   :  { %v472_v49 = vadd.f32 %v471_v48, %v1968_v1  ;;  %910 = vmatprep.mubr.f32.mxu1 %v563_v44 }
 0x156   :  { %911 = vmatmul.mubr.f32.gmra.mrb[32].mxu1 %v562_v46  ;;  %v564_v52 = vmax.f32 %v470_v47, 0.0 }
 0x157   :  { %v565_v50 = vmax.f32 %v472_v49, 0.0  ;;  %v475_v51 = vpop.f32.mrb[50].mxu0 }
 0x158   :  { %v476_v53 = vadd.f32 %v475_v51, %v1965_v21  ;;  %v477_v54 = vpop.f32.mrb[51].mxu0 }
 0x159   :  { %v478_v55 = vadd.f32 %v477_v54, %v1968_v1  ;;  %916 = vmatprep.mubr.f32.mxu1 %v565_v50 }
 0x15a   :  { %917 = vmatmul.mubr.f32.gmra.mrb[34].mxu1 %v564_v52  ;;  %v566_v58 = vmax.f32 %v476_v53, 0.0 }
 0x15b   :  { %v567_v56 = vmax.f32 %v478_v55, 0.0  ;;  %v481_v57 = vpop.f32.mrb[52].mxu0 }
 0x15c   :  { %v482_v59 = vadd.f32 %v481_v57, %v1965_v21  ;;  %v483_v60 = vpop.f32.mrb[53].mxu0 }
 0x15d   :  { %v484_v61 = vadd.f32 %v483_v60, %v1968_v1  ;;  %922 = vmatprep.mubr.f32.mxu1 %v567_v56 }
 0x15e   :  { %923 = vmatmul.mubr.f32.gmra.mrb[36].mxu1 %v566_v58  ;;  %v568_v0 = vmax.f32 %v482_v59, 0.0 }
 0x15f   :  { %v569_v62 = vmax.f32 %v484_v61, 0.0  ;;  %v487_v63 = vpop.f32.mrb[54].mxu0 }
 0x160   :  { %v488_v2 = vadd.f32 %v487_v63, %v1965_v21  ;;  %v489_v3 = vpop.f32.mrb[55].mxu0 }
 0x161   :  { %v490_v4 = vadd.f32 %v489_v3, %v1968_v1  ;;  %928 = vmatprep.mubr.f32.mxu1 %v569_v62 }
 0x162   :  { %929 = vmatmul.mubr.f32.gmra.mrb[38].mxu1 %v568_v0  ;;  %v570_v7 = vmax.f32 %v488_v2, 0.0 }
 0x163   :  { %v571_v5 = vmax.f32 %v490_v4, 0.0  ;;  %v493_v6 = vpop.f32.mrb[56].mxu0 }
 0x164   :  { %v494_v8 = vadd.f32 %v493_v6, %v1965_v21  ;;  %v495_v9 = vpop.f32.mrb[57].mxu0 }
 0x165   :  { %v496_v10 = vadd.f32 %v495_v9, %v1968_v1  ;;  %934 = vmatprep.mubr.f32.mxu1 %v571_v5 }
 0x166   :  { %935 = vmatmul.mubr.f32.gmra.mrb[40].mxu1 %v570_v7  ;;  %v572_v13 = vmax.f32 %v494_v8, 0.0 }
 0x167   :  { %v573_v11 = vmax.f32 %v496_v10, 0.0  ;;  %v499_v12 = vpop.f32.mrb[58].mxu0 }
 0x168   :  { %v500_v14 = vadd.f32 %v499_v12, %v1965_v21  ;;  %v501_v15 = vpop.f32.mrb[59].mxu0 }
 0x169   :  { %v502_v16 = vadd.f32 %v501_v15, %v1968_v1  ;;  %940 = vmatprep.mubr.f32.mxu1 %v573_v11 }
 0x16a   :  { %941 = vmatmul.mubr.f32.gmra.mrb[42].mxu1 %v572_v13  ;;  %v574_v22 = vmax.f32 %v500_v14, 0.0 }
 0x16b   :  { %v575_v17 = vmax.f32 %v502_v16, 0.0  ;;  %v505_v19 = vpop.f32.mrb[60].mxu0 }
 0x16c   :  { %v506_v23 = vadd.f32 %v505_v19, %v1965_v21  ;;  %v507_v24 = vpop.f32.mrb[61].mxu0 }
 0x16d   :  { %v508_v25 = vadd.f32 %v507_v24, %v1968_v1  ;;  %946 = vmatprep.mubr.f32.mxu1 %v575_v17 }
 0x16e   :  { %947 = vmatmul.mubr.f32.gmra.mrb[44].mxu1 %v574_v22  ;;  %v576_v28 = vmax.f32 %v506_v23, 0.0 }
 0x16f   :  { %v577_v26 = vmax.f32 %v508_v25, 0.0  ;;  %v511_v27 = vpop.f32.mrb[62].mxu0 }
 0x170   :  { %v512_v29 = vadd.f32 %v511_v27, %v1965_v21  ;;  %v513_v30 = vpop.f32.mrb[63].mxu0  ;;  %v1300_v21 = vld [vmem:[%s2347_s5] sm:$0x3] }
 0x171   :  { %v514_v31 = vadd.f32 %v513_v30, %v1968_v1  ;;  %952 = vmatprep.mubr.f32.mxu1 %v577_v26  ;;  %v2048_v39 = vrot.slane %v1300_v21, %v1957_v18  ;;  %v2052_v41 = vrot.slane %v1300_v21, %v1962_v20 }
 0x172   :  { %953 = vmatmul.mubr.f32.gmra.mrb[46].mxu1 %v576_v28  ;;  %v578_v33 = vmax.f32 %v512_v29, 0.0 }
 0x173   :  { %v579_v32 = vmax.f32 %v514_v31, 0.0 }
 0x175   :  { %958 = vmatprep.mubr.f32.mxu1 %v579_v32 }
 0x176   :  { %959 = vmatmul.mubr.f32.gmra.mrb[48].mxu1 %v578_v33 }
 0x1cd   :  { %v774_v1 = vpop.f32.mrb[64].mxu0 }
 0x1ce   :  { %v1172_v37 = vadd.f32 %v2038_v35, %v774_v1  ;;  %v776_v38 = vpop.f32.mrb[65].mxu0 }
 0x1cf   :  { %v1173_v40 = vadd.f32 %v2041_v36, %v776_v38 }
 0x1d0   :  { %v1236_v42 = vmax.f32 %v1172_v37, 0.0 }
 0x1d1   :  { %v1237_v43 = vmax.f32 %v1173_v40, 0.0  ;;  %v780_v44 = vpop.f32.mrb[66].mxu0 }
 0x1d2   :  { %v1174_v45 = vadd.f32 %v2038_v35, %v780_v44  ;;  %v782_v46 = vpop.f32.mrb[67].mxu0  ;;  %v1312_v47 = vmul.f32 %v2048_v39, %v1236_v42 }
 0x1d3   :  { %v1175_v48 = vadd.f32 %v2041_v36, %v782_v46  ;;  %v1313_v49 = vmul.f32 %v2052_v41, %v1237_v43 }
 0x1d4   :  { %v1238_v50 = vmax.f32 %v1174_v45, 0.0 }
 0x1d5   :  { %v1239_v18 = vmax.f32 %v1175_v48, 0.0  ;;  %v786_v51 = vpop.f32.mrb[68].mxu0  ;;  %v1376_v52 = vadd.f32 %v1313_v49, %v1312_v47 }
 0x1d6   :  { %v1314_v53 = vmul.f32 %v2048_v39, %v1238_v50  ;;  %v1176_v20 = vadd.f32 %v2038_v35, %v786_v51  ;;  %v788_v54 = vpop.f32.mrb[69].mxu0 }
 0x1d7   :  { %v1315_v55 = vmul.f32 %v2052_v41, %v1239_v18  ;;  %v1177_v56 = vadd.f32 %v2041_v36, %v788_v54  ;;  %1377 = vadd.xlane.f32.xlu0 %v1376_v52 }
 0x1d8   :  { %v1240_v57 = vmax.f32 %v1176_v20, 0.0 }
 0x1d9   :  { %v1241_v58 = vmax.f32 %v1177_v56, 0.0  ;;  %v792_v59 = vpop.f32.mrb[70].mxu0  ;;  %v1379_v60 = vadd.f32 %v1315_v55, %v1314_v53 }
 0x1da   :  { %v1178_v61 = vadd.f32 %v2038_v35, %v792_v59  ;;  %v794_v62 = vpop.f32.mrb[71].mxu0  ;;  %v1316_v63 = vmul.f32 %v2048_v39, %v1240_v57 }
 0x1db   :  { %v1179_v0 = vadd.f32 %v2041_v36, %v794_v62  ;;  %1380 = vadd.xlane.f32.xlu0 %v1379_v60  ;;  %v1317_v2 = vmul.f32 %v2052_v41, %v1241_v58 }
 0x1dc   :  { %v1242_v3 = vmax.f32 %v1178_v61, 0.0 }
 0x1dd   :  { %v1243_v4 = vmax.f32 %v1179_v0, 0.0  ;;  %v798_v5 = vpop.f32.mrb[72].mxu0  ;;  %v1382_v6 = vadd.f32 %v1317_v2, %v1316_v63 }
 0x1de   :  { %v1318_v7 = vmul.f32 %v2048_v39, %v1242_v3  ;;  %v1180_v8 = vadd.f32 %v2038_v35, %v798_v5  ;;  %v800_v9 = vpop.f32.mrb[73].mxu0 }
 0x1df   :  { %v1319_v10 = vmul.f32 %v2052_v41, %v1243_v4  ;;  %v1181_v11 = vadd.f32 %v2041_v36, %v800_v9  ;;  %1383 = vadd.xlane.f32.xlu1 %v1382_v6 }
 0x1e0   :  { %v1244_v12 = vmax.f32 %v1180_v8, 0.0 }
 0x1e1   :  { %v1245_v13 = vmax.f32 %v1181_v11, 0.0  ;;  %v804_v14 = vpop.f32.mrb[74].mxu0  ;;  %v1385_v15 = vadd.f32 %v1319_v10, %v1318_v7 }
 0x1e2   :  { %v1320_v16 = vmul.f32 %v2048_v39, %v1244_v12  ;;  %v1182_v17 = vadd.f32 %v2038_v35, %v804_v14  ;;  %v806_v19 = vpop.f32.mrb[75].mxu0 }
 0x1e3   :  { %v1321_v22 = vmul.f32 %v2052_v41, %v1245_v13  ;;  %v1183_v23 = vadd.f32 %v2041_v36, %v806_v19  ;;  %1386 = vadd.xlane.f32.xlu1 %v1385_v15 }
 0x1e4   :  { %v1246_v24 = vmax.f32 %v1182_v17, 0.0 }
 0x1e5   :  { %v1247_v25 = vmax.f32 %v1183_v23, 0.0  ;;  %v810_v26 = vpop.f32.mrb[76].mxu0  ;;  %v1388_v27 = vadd.f32 %v1321_v22, %v1320_v16 }
 0x1e6   :  { %v1322_v28 = vmul.f32 %v2048_v39, %v1246_v24  ;;  %v1184_v29 = vadd.f32 %v2038_v35, %v810_v26  ;;  %v812_v30 = vpop.f32.mrb[77].mxu0 }
 0x1e7   :  { %v1323_v31 = vmul.f32 %v2052_v41, %v1247_v25  ;;  %v1185_v32 = vadd.f32 %v2041_v36, %v812_v30  ;;  %1389 = vadd.xlane.f32.xlu0 %v1388_v27 }
 0x1e8   :  { %v1248_v33 = vmax.f32 %v1184_v29, 0.0 }
 0x1e9   :  { %v1249_v34 = vmax.f32 %v1185_v32, 0.0  ;;  %v816_v21 = vpop.f32.mrb[0].mxu1  ;;  %v1391_v1 = vadd.f32 %v1323_v31, %v1322_v28 }
 0x1ea   :  { %v1324_v37 = vmul.f32 %v2048_v39, %v1248_v33  ;;  %v1186_v38 = vadd.f32 %v2038_v35, %v816_v21  ;;  %v818_v40 = vpop.f32.mrb[1].mxu1 }
 0x1eb   :  { %v1325_v42 = vmul.f32 %v2052_v41, %v1249_v34  ;;  %v1187_v43 = vadd.f32 %v2041_v36, %v818_v40  ;;  %1392 = vadd.xlane.f32.xlu1 %v1391_v1 }
 0x1ec   :  { %v1250_v44 = vmax.f32 %v1186_v38, 0.0 }
 0x1ed   :  { %v1251_v45 = vmax.f32 %v1187_v43, 0.0  ;;  %v822_v46 = vpop.f32.mrb[2].mxu1  ;;  %v1394_v47 = vadd.f32 %v1325_v42, %v1324_v37 }
 0x1ee   :  { %v1326_v48 = vmul.f32 %v2048_v39, %v1250_v44  ;;  %v1188_v49 = vadd.f32 %v2038_v35, %v822_v46  ;;  %v824_v50 = vpop.f32.mrb[3].mxu1 }
 0x1ef   :  { %v1327_v18 = vmul.f32 %v2052_v41, %v1251_v45  ;;  %v1189_v51 = vadd.f32 %v2041_v36, %v824_v50  ;;  %1395 = vadd.xlane.f32.xlu0 %v1394_v47 }
 0x1f0   :  { %v1252_v52 = vmax.f32 %v1188_v49, 0.0 }
 0x1f1   :  { %v1253_v53 = vmax.f32 %v1189_v51, 0.0  ;;  %v828_v20 = vpop.f32.mrb[4].mxu1  ;;  %v1397_v54 = vadd.f32 %v1327_v18, %v1326_v48 }
 0x1f2   :  { %v1328_v55 = vmul.f32 %v2048_v39, %v1252_v52  ;;  %v1190_v56 = vadd.f32 %v2038_v35, %v828_v20  ;;  %v830_v57 = vpop.f32.mrb[5].mxu1 }
 0x1f3   :  { %v1329_v58 = vmul.f32 %v2052_v41, %v1253_v53  ;;  %v1191_v59 = vadd.f32 %v2041_v36, %v830_v57  ;;  %1398 = vadd.xlane.f32.xlu1 %v1397_v54 }
 0x1f4   :  { %v1254_v60 = vmax.f32 %v1190_v56, 0.0 }
 0x1f5   :  { %v1255_v61 = vmax.f32 %v1191_v59, 0.0  ;;  %v834_v62 = vpop.f32.mrb[6].mxu1  ;;  %v1400_v63 = vadd.f32 %v1329_v58, %v1328_v55 }
 0x1f6   :  { %v1330_v0 = vmul.f32 %v2048_v39, %v1254_v60  ;;  %v1192_v2 = vadd.f32 %v2038_v35, %v834_v62  ;;  %v836_v3 = vpop.f32.mrb[7].mxu1 }
 0x1f7   :  { %v1331_v4 = vmul.f32 %v2052_v41, %v1255_v61  ;;  %v1193_v5 = vadd.f32 %v2041_v36, %v836_v3  ;;  %1401 = vadd.xlane.f32.xlu0 %v1400_v63 }
 0x1f8   :  { %v1256_v6 = vmax.f32 %v1192_v2, 0.0 }
 0x1f9   :  { %v1257_v7 = vmax.f32 %v1193_v5, 0.0  ;;  %v840_v8 = vpop.f32.mrb[8].mxu1  ;;  %v1403_v9 = vadd.f32 %v1331_v4, %v1330_v0 }
 0x1fa   :  { %v1332_v10 = vmul.f32 %v2048_v39, %v1256_v6  ;;  %v1194_v11 = vadd.f32 %v2038_v35, %v840_v8  ;;  %v842_v12 = vpop.f32.mrb[9].mxu1 }
 0x1fb   :  { %v1333_v13 = vmul.f32 %v2052_v41, %v1257_v7  ;;  %v1195_v14 = vadd.f32 %v2041_v36, %v842_v12  ;;  %1404 = vadd.xlane.f32.xlu1 %v1403_v9 }
 0x1fc   :  { %v1258_v15 = vmax.f32 %v1194_v11, 0.0 }
 0x1fd   :  { %v1259_v16 = vmax.f32 %v1195_v14, 0.0  ;;  %v846_v17 = vpop.f32.mrb[10].mxu1  ;;  %v1406_v19 = vadd.f32 %v1333_v13, %v1332_v10 }
 0x1fe   :  { %v1334_v22 = vmul.f32 %v2048_v39, %v1258_v15  ;;  %v1196_v23 = vadd.f32 %v2038_v35, %v846_v17  ;;  %v848_v24 = vpop.f32.mrb[11].mxu1 }
 0x1ff   :  { %v1335_v25 = vmul.f32 %v2052_v41, %v1259_v16  ;;  %v1197_v26 = vadd.f32 %v2041_v36, %v848_v24  ;;  %1407 = vadd.xlane.f32.xlu0 %v1406_v19 }
 0x200   :  { %v1260_v27 = vmax.f32 %v1196_v23, 0.0 }
 0x201   :  { %v1261_v28 = vmax.f32 %v1197_v26, 0.0  ;;  %v852_v29 = vpop.f32.mrb[12].mxu1  ;;  %v1409_v30 = vadd.f32 %v1335_v25, %v1334_v22 }
 0x202   :  { %v1336_v31 = vmul.f32 %v2048_v39, %v1260_v27  ;;  %v1198_v32 = vadd.f32 %v2038_v35, %v852_v29  ;;  %v854_v33 = vpop.f32.mrb[13].mxu1 }
 0x203   :  { %v1337_v34 = vmul.f32 %v2052_v41, %v1261_v28  ;;  %v1199_v21 = vadd.f32 %v2041_v36, %v854_v33  ;;  %1410 = vadd.xlane.f32.xlu1 %v1409_v30 }
 0x204   :  { %v1262_v1 = vmax.f32 %v1198_v32, 0.0 }
 0x205   :  { %v1263_v37 = vmax.f32 %v1199_v21, 0.0  ;;  %v858_v38 = vpop.f32.mrb[14].mxu1  ;;  %v1412_v40 = vadd.f32 %v1337_v34, %v1336_v31 }
 0x206   :  { %v1338_v42 = vmul.f32 %v2048_v39, %v1262_v1  ;;  %v1200_v43 = vadd.f32 %v2038_v35, %v858_v38  ;;  %v860_v44 = vpop.f32.mrb[15].mxu1 }
 0x207   :  { %v1339_v45 = vmul.f32 %v2052_v41, %v1263_v37  ;;  %v1201_v46 = vadd.f32 %v2041_v36, %v860_v44  ;;  %1413 = vadd.xlane.f32.xlu0 %v1412_v40 }
 0x208   :  { %v1264_v47 = vmax.f32 %v1200_v43, 0.0 }
 0x209   :  { %v1265_v48 = vmax.f32 %v1201_v46, 0.0  ;;  %v864_v49 = vpop.f32.mrb[16].mxu1  ;;  %v1415_v50 = vadd.f32 %v1339_v45, %v1338_v42 }
 0x20a   :  { %v1340_v18 = vmul.f32 %v2048_v39, %v1264_v47  ;;  %v1202_v51 = vadd.f32 %v2038_v35, %v864_v49  ;;  %v866_v52 = vpop.f32.mrb[17].mxu1 }
 0x20b   :  { %v1341_v53 = vmul.f32 %v2052_v41, %v1265_v48  ;;  %v1203_v20 = vadd.f32 %v2041_v36, %v866_v52  ;;  %1416 = vadd.xlane.f32.xlu1 %v1415_v50 }
 0x20c   :  { %v1266_v54 = vmax.f32 %v1202_v51, 0.0 }
 0x20d   :  { %v1267_v55 = vmax.f32 %v1203_v20, 0.0  ;;  %v870_v56 = vpop.f32.mrb[18].mxu1  ;;  %v1418_v57 = vadd.f32 %v1341_v53, %v1340_v18 }
 0x20e   :  { %v1342_v58 = vmul.f32 %v2048_v39, %v1266_v54  ;;  %v1204_v59 = vadd.f32 %v2038_v35, %v870_v56  ;;  %v872_v60 = vpop.f32.mrb[19].mxu1 }
 0x20f   :  { %v1343_v61 = vmul.f32 %v2052_v41, %v1267_v55  ;;  %v1205_v62 = vadd.f32 %v2041_v36, %v872_v60  ;;  %1419 = vadd.xlane.f32.xlu0 %v1418_v57 }
 0x210   :  { %v1268_v63 = vmax.f32 %v1204_v59, 0.0 }
 0x211   :  { %v1269_v0 = vmax.f32 %v1205_v62, 0.0  ;;  %v876_v2 = vpop.f32.mrb[20].mxu1  ;;  %v1421_v3 = vadd.f32 %v1343_v61, %v1342_v58 }
 0x212   :  { %v1344_v4 = vmul.f32 %v2048_v39, %v1268_v63  ;;  %v1206_v5 = vadd.f32 %v2038_v35, %v876_v2  ;;  %v878_v6 = vpop.f32.mrb[21].mxu1 }
 0x213   :  { %v1345_v7 = vmul.f32 %v2052_v41, %v1269_v0  ;;  %v1207_v8 = vadd.f32 %v2041_v36, %v878_v6  ;;  %1422 = vadd.xlane.f32.xlu1 %v1421_v3 }
 0x214   :  { %v1270_v9 = vmax.f32 %v1206_v5, 0.0 }
 0x215   :  { %v1271_v10 = vmax.f32 %v1207_v8, 0.0  ;;  %v882_v11 = vpop.f32.mrb[22].mxu1  ;;  %v1424_v12 = vadd.f32 %v1345_v7, %v1344_v4 }
 0x216   :  { %v1346_v13 = vmul.f32 %v2048_v39, %v1270_v9  ;;  %v1208_v14 = vadd.f32 %v2038_v35, %v882_v11  ;;  %v884_v15 = vpop.f32.mrb[23].mxu1 }
 0x217   :  { %v1347_v16 = vmul.f32 %v2052_v41, %v1271_v10  ;;  %v1209_v17 = vadd.f32 %v2041_v36, %v884_v15  ;;  %1425 = vadd.xlane.f32.xlu0 %v1424_v12 }
 0x218   :  { %v1272_v19 = vmax.f32 %v1208_v14, 0.0 }
 0x219   :  { %v1273_v22 = vmax.f32 %v1209_v17, 0.0  ;;  %v888_v23 = vpop.f32.mrb[24].mxu1  ;;  %v1427_v24 = vadd.f32 %v1347_v16, %v1346_v13 }
 0x21a   :  { %v1348_v25 = vmul.f32 %v2048_v39, %v1272_v19  ;;  %v1210_v26 = vadd.f32 %v2038_v35, %v888_v23  ;;  %v890_v27 = vpop.f32.mrb[25].mxu1 }
 0x21b   :  { %v1349_v28 = vmul.f32 %v2052_v41, %v1273_v22  ;;  %v1211_v29 = vadd.f32 %v2041_v36, %v890_v27  ;;  %1428 = vadd.xlane.f32.xlu1 %v1427_v24 }
 0x21c   :  { %v1274_v30 = vmax.f32 %v1210_v26, 0.0 }
 0x21d   :  { %v1275_v31 = vmax.f32 %v1211_v29, 0.0  ;;  %v894_v32 = vpop.f32.mrb[26].mxu1  ;;  %v1430_v33 = vadd.f32 %v1349_v28, %v1348_v25 }
 0x21e   :  { %v1350_v34 = vmul.f32 %v2048_v39, %v1274_v30  ;;  %v1212_v21 = vadd.f32 %v2038_v35, %v894_v32  ;;  %v896_v1 = vpop.f32.mrb[27].mxu1 }
 0x21f   :  { %v1351_v37 = vmul.f32 %v2052_v41, %v1275_v31  ;;  %v1213_v38 = vadd.f32 %v2041_v36, %v896_v1  ;;  %1431 = vadd.xlane.f32.xlu0 %v1430_v33 }
 0x220   :  { %v1276_v40 = vmax.f32 %v1212_v21, 0.0 }
 0x221   :  { %v1277_v42 = vmax.f32 %v1213_v38, 0.0  ;;  %v900_v43 = vpop.f32.mrb[28].mxu1  ;;  %v1433_v44 = vadd.f32 %v1351_v37, %v1350_v34 }
 0x222   :  { %v1352_v45 = vmul.f32 %v2048_v39, %v1276_v40  ;;  %v1214_v46 = vadd.f32 %v2038_v35, %v900_v43  ;;  %v902_v47 = vpop.f32.mrb[29].mxu1 }
 0x223   :  { %v1353_v48 = vmul.f32 %v2052_v41, %v1277_v42  ;;  %v1215_v49 = vadd.f32 %v2041_v36, %v902_v47  ;;  %1434 = vadd.xlane.f32.xlu1 %v1433_v44 }
 0x224   :  { %v1278_v50 = vmax.f32 %v1214_v46, 0.0 }
 0x225   :  { %v1279_v18 = vmax.f32 %v1215_v49, 0.0  ;;  %v906_v51 = vpop.f32.mrb[30].mxu1  ;;  %v1436_v52 = vadd.f32 %v1353_v48, %v1352_v45 }
 0x226   :  { %v1354_v53 = vmul.f32 %v2048_v39, %v1278_v50  ;;  %v1216_v20 = vadd.f32 %v2038_v35, %v906_v51  ;;  %v908_v54 = vpop.f32.mrb[31].mxu1 }
 0x227   :  { %v1355_v55 = vmul.f32 %v2052_v41, %v1279_v18  ;;  %v1217_v56 = vadd.f32 %v2041_v36, %v908_v54  ;;  %1437 = vadd.xlane.f32.xlu0 %v1436_v52 }
 0x228   :  { %v1280_v57 = vmax.f32 %v1216_v20, 0.0 }
 0x229   :  { %v1281_v58 = vmax.f32 %v1217_v56, 0.0  ;;  %v912_v59 = vpop.f32.mrb[32].mxu1  ;;  %v1439_v60 = vadd.f32 %v1355_v55, %v1354_v53 }
 0x22a   :  { %v1356_v61 = vmul.f32 %v2048_v39, %v1280_v57  ;;  %v1218_v62 = vadd.f32 %v2038_v35, %v912_v59  ;;  %v914_v63 = vpop.f32.mrb[33].mxu1 }
 0x22b   :  { %v1357_v0 = vmul.f32 %v2052_v41, %v1281_v58  ;;  %v1219_v2 = vadd.f32 %v2041_v36, %v914_v63  ;;  %1440 = vadd.xlane.f32.xlu1 %v1439_v60 }
 0x22c   :  { %v1282_v3 = vmax.f32 %v1218_v62, 0.0 }
 0x22d   :  { %v1283_v4 = vmax.f32 %v1219_v2, 0.0  ;;  %v918_v5 = vpop.f32.mrb[34].mxu1  ;;  %v1442_v6 = vadd.f32 %v1357_v0, %v1356_v61 }
 0x22e   :  { %v1358_v7 = vmul.f32 %v2048_v39, %v1282_v3  ;;  %v1220_v8 = vadd.f32 %v2038_v35, %v918_v5  ;;  %v920_v9 = vpop.f32.mrb[35].mxu1 }
 0x22f   :  { %v1359_v10 = vmul.f32 %v2052_v41, %v1283_v4  ;;  %v1221_v11 = vadd.f32 %v2041_v36, %v920_v9  ;;  %1443 = vadd.xlane.f32.xlu0 %v1442_v6 }
 0x230   :  { %v1284_v12 = vmax.f32 %v1220_v8, 0.0 }
 0x231   :  { %v1285_v13 = vmax.f32 %v1221_v11, 0.0  ;;  %v924_v14 = vpop.f32.mrb[36].mxu1  ;;  %v1445_v15 = vadd.f32 %v1359_v10, %v1358_v7 }
 0x232   :  { %v1360_v16 = vmul.f32 %v2048_v39, %v1284_v12  ;;  %v1222_v17 = vadd.f32 %v2038_v35, %v924_v14  ;;  %v926_v19 = vpop.f32.mrb[37].mxu1 }
 0x233   :  { %v1361_v22 = vmul.f32 %v2052_v41, %v1285_v13  ;;  %v1223_v23 = vadd.f32 %v2041_v36, %v926_v19  ;;  %1446 = vadd.xlane.f32.xlu1 %v1445_v15 }
 0x234   :  { %v1286_v24 = vmax.f32 %v1222_v17, 0.0 }
 0x235   :  { %v1287_v25 = vmax.f32 %v1223_v23, 0.0  ;;  %v930_v26 = vpop.f32.mrb[38].mxu1  ;;  %v1448_v27 = vadd.f32 %v1361_v22, %v1360_v16 }
 0x236   :  { %v1362_v28 = vmul.f32 %v2048_v39, %v1286_v24  ;;  %v1224_v29 = vadd.f32 %v2038_v35, %v930_v26  ;;  %v932_v30 = vpop.f32.mrb[39].mxu1  ;;  %v2180_v24 = vld [vmem:[#allocation3] ss:$0 sm:$0xff] }
 0x237   :  { %v1363_v31 = vmul.f32 %v2052_v41, %v1287_v25  ;;  %v1225_v32 = vadd.f32 %v2041_v36, %v932_v30  ;;  %1449 = vadd.xlane.f32.xlu0 %v1448_v27 }
 0x238   :  { %v1288_v33 = vmax.f32 %v1224_v29, 0.0 }
 0x239   :  { %v1289_v34 = vmax.f32 %v1225_v32, 0.0  ;;  %v936_v21 = vpop.f32.mrb[40].mxu1  ;;  %v1451_v1 = vadd.f32 %v1363_v31, %v1362_v28 }
 0x23a   :  { %v1364_v37 = vmul.f32 %v2048_v39, %v1288_v33  ;;  %v1226_v38 = vadd.f32 %v2038_v35, %v936_v21  ;;  %v938_v40 = vpop.f32.mrb[41].mxu1 }
 0x23b   :  { %v1365_v42 = vmul.f32 %v2052_v41, %v1289_v34  ;;  %v1227_v43 = vadd.f32 %v2041_v36, %v938_v40  ;;  %1452 = vadd.xlane.f32.xlu1 %v1451_v1 }
 0x23c   :  { %v1290_v44 = vmax.f32 %v1226_v38, 0.0 }
 0x23d   :  { %v1291_v45 = vmax.f32 %v1227_v43, 0.0  ;;  %v942_v46 = vpop.f32.mrb[42].mxu1  ;;  %v1454_v47 = vadd.f32 %v1365_v42, %v1364_v37 }
 0x23e   :  { %v1366_v48 = vmul.f32 %v2048_v39, %v1290_v44  ;;  %v1228_v49 = vadd.f32 %v2038_v35, %v942_v46  ;;  %v944_v50 = vpop.f32.mrb[43].mxu1 }
 0x23f   :  { %v1367_v18 = vmul.f32 %v2052_v41, %v1291_v45  ;;  %v1229_v51 = vadd.f32 %v2041_v36, %v944_v50  ;;  %1455 = vadd.xlane.f32.xlu0 %v1454_v47 }
 0x240   :  { %v1292_v52 = vmax.f32 %v1228_v49, 0.0 }
 0x241   :  { %v1293_v53 = vmax.f32 %v1229_v51, 0.0  ;;  %v948_v20 = vpop.f32.mrb[44].mxu1  ;;  %v1457_v54 = vadd.f32 %v1367_v18, %v1366_v48 }
 0x242   :  { %v1368_v55 = vmul.f32 %v2048_v39, %v1292_v52  ;;  %v1230_v56 = vadd.f32 %v2038_v35, %v948_v20  ;;  %v950_v57 = vpop.f32.mrb[45].mxu1 }
 0x243   :  { %v1369_v58 = vmul.f32 %v2052_v41, %v1293_v53  ;;  %v1231_v59 = vadd.f32 %v2041_v36, %v950_v57  ;;  %1458 = vadd.xlane.f32.xlu1 %v1457_v54 }
 0x244   :  { %v1294_v60 = vmax.f32 %v1230_v56, 0.0 }
 0x245   :  { %v1295_v61 = vmax.f32 %v1231_v59, 0.0  ;;  %v954_v62 = vpop.f32.mrb[46].mxu1  ;;  %v1460_v63 = vadd.f32 %v1369_v58, %v1368_v55 }
 0x246   :  { %v1370_v0 = vmul.f32 %v2048_v39, %v1294_v60  ;;  %v1232_v2 = vadd.f32 %v2038_v35, %v954_v62  ;;  %v956_v3 = vpop.f32.mrb[47].mxu1 }
 0x247   :  { %v1371_v4 = vmul.f32 %v2052_v41, %v1295_v61  ;;  %v1233_v5 = vadd.f32 %v2041_v36, %v956_v3  ;;  %1461 = vadd.xlane.f32.xlu0 %v1460_v63 }
 0x248   :  { %v1296_v6 = vmax.f32 %v1232_v2, 0.0 }
 0x249   :  { %v1297_v7 = vmax.f32 %v1233_v5, 0.0  ;;  %v960_v8 = vpop.f32.mrb[48].mxu1  ;;  %v1463_v9 = vadd.f32 %v1371_v4, %v1370_v0 }
 0x24a   :  { %v1372_v10 = vmul.f32 %v2048_v39, %v1296_v6  ;;  %v1234_v11 = vadd.f32 %v2038_v35, %v960_v8  ;;  %v962_v12 = vpop.f32.mrb[49].mxu1 }
 0x24b   :  { %v1373_v13 = vmul.f32 %v2052_v41, %v1297_v7  ;;  %v1235_v14 = vadd.f32 %v2041_v36, %v962_v12  ;;  %1464 = vadd.xlane.f32.xlu1 %v1463_v9 }
 0x24c   :  { %v1298_v15 = vmax.f32 %v1234_v11, 0.0 }
 0x24d   :  { %v1299_v16 = vmax.f32 %v1235_v14, 0.0  ;;  %v1466_v17 = vadd.f32 %v1373_v13, %v1372_v10 }
 0x24e   :  { %v1374_v19 = vmul.f32 %v2048_v39, %v1298_v15 }
 0x24f   :  { %v1375_v22 = vmul.f32 %v2052_v41, %v1299_v16  ;;  %1467 = vadd.xlane.f32.xlu0 %v1466_v17 }
 0x251   :  { %v1469_v23 = vadd.f32 %v1375_v22, %v1374_v19 }
 0x253   :  { %1470 = vadd.xlane.f32.xlu1 %v1469_v23 }
 0x264   :  { %v1378_v35 = vpop.xlane.xlu0 %1377 }
 0x265   :  { %v1479_v25 = vadd.f32 %v2180_v24, %v1378_v35 }
 0x267   :  { %1512 = vst.msk [vmem:[%s2349_s7] sm:$0xff] %vm1511_vm1, %v1479_v25 }
 0x268   :  { %v1381_v36 = vpop.xlane.xlu0 %1380 }
 0x269   :  { %v1480_v26 = vadd.f32 %v2180_v24, %v1381_v36 }
 0x26b   :  { %1513 = vst.msk [vmem:[%s2349_s7 + $0x8] sm:$0xff] %vm1511_vm1, %v1480_v26 }
 0x26c   :  { %v1384_v39 = vpop.xlane.xlu1 %1383 }
 0x26d   :  { %v1481_v41 = vadd.f32 %v2180_v24, %v1384_v39 }
 0x26f   :  { %1514 = vst.msk [vmem:[%s2349_s7 + $0x10] sm:$0xff] %vm1511_vm1, %v1481_v41 }
 0x270   :  { %v1387_v27 = vpop.xlane.xlu1 %1386 }
 0x271   :  { %v1482_v28 = vadd.f32 %v2180_v24, %v1387_v27 }
 0x273   :  { %1515 = vst.msk [vmem:[%s2349_s7 + $0x18] sm:$0xff] %vm1511_vm1, %v1482_v28 }
 0x274   :  { %v1390_v29 = vpop.xlane.xlu0 %1389 }
 0x275   :  { %v1483_v30 = vadd.f32 %v2180_v24, %v1390_v29 }
 0x277   :  { %1516 = vst.msk [vmem:[%s2349_s7 + $0x20] sm:$0xff] %vm1511_vm1, %v1483_v30 }
 0x278   :  { %v1393_v31 = vpop.xlane.xlu1 %1392 }
 0x279   :  { %v1484_v32 = vadd.f32 %v2180_v24, %v1393_v31 }
 0x27b   :  { %1517 = vst.msk [vmem:[%s2349_s7 + $0x28] sm:$0xff] %vm1511_vm1, %v1484_v32 }
 0x27c   :  { %v1396_v33 = vpop.xlane.xlu0 %1395 }
 0x27d   :  { %v1485_v34 = vadd.f32 %v2180_v24, %v1396_v33 }
 0x27f   :  { %1518 = vst.msk [vmem:[%s2349_s7 + $0x30] sm:$0xff] %vm1511_vm1, %v1485_v34 }
 0x280   :  { %v1399_v21 = vpop.xlane.xlu1 %1398 }
 0x281   :  { %v1486_v1 = vadd.f32 %v2180_v24, %v1399_v21 }
 0x283   :  { %1519 = vst.msk [vmem:[%s2349_s7 + $0x38] sm:$0xff] %vm1511_vm1, %v1486_v1 }
 0x284   :  { %v1402_v37 = vpop.xlane.xlu0 %1401 }
 0x285   :  { %v1487_v38 = vadd.f32 %v2180_v24, %v1402_v37 }
 0x287   :  { %1520 = vst.msk [vmem:[%s2349_s7 + $0x40] sm:$0xff] %vm1511_vm1, %v1487_v38 }
 0x288   :  { %v1405_v40 = vpop.xlane.xlu1 %1404 }
 0x289   :  { %v1488_v42 = vadd.f32 %v2180_v24, %v1405_v40 }
 0x28b   :  { %1521 = vst.msk [vmem:[%s2349_s7 + $0x48] sm:$0xff] %vm1511_vm1, %v1488_v42 }
 0x28c   :  { %v1408_v43 = vpop.xlane.xlu0 %1407 }
 0x28d   :  { %v1489_v44 = vadd.f32 %v2180_v24, %v1408_v43 }
 0x28f   :  { %1522 = vst.msk [vmem:[%s2349_s7 + $0x50] sm:$0xff] %vm1511_vm1, %v1489_v44 }
 0x290   :  { %v1411_v45 = vpop.xlane.xlu1 %1410 }
 0x291   :  { %v1490_v46 = vadd.f32 %v2180_v24, %v1411_v45 }
 0x293   :  { %1523 = vst.msk [vmem:[%s2349_s7 + $0x58] sm:$0xff] %vm1511_vm1, %v1490_v46 }
 0x294   :  { %v1414_v47 = vpop.xlane.xlu0 %1413 }
 0x295   :  { %v1491_v48 = vadd.f32 %v2180_v24, %v1414_v47 }
 0x297   :  { %1524 = vst.msk [vmem:[%s2349_s7 + $0x60] sm:$0xff] %vm1511_vm1, %v1491_v48 }
 0x298   :  { %v1417_v49 = vpop.xlane.xlu1 %1416 }
 0x299   :  { %v1492_v50 = vadd.f32 %v2180_v24, %v1417_v49 }
 0x29b   :  { %1525 = vst.msk [vmem:[%s2349_s7 + $0x68] sm:$0xff] %vm1511_vm1, %v1492_v50 }
 0x29c   :  { %v1420_v18 = vpop.xlane.xlu0 %1419 }
 0x29d   :  { %v1493_v51 = vadd.f32 %v2180_v24, %v1420_v18 }
 0x29f   :  { %1526 = vst.msk [vmem:[%s2349_s7 + $0x70] sm:$0xff] %vm1511_vm1, %v1493_v51 }
 0x2a0   :  { %v1423_v52 = vpop.xlane.xlu1 %1422 }
 0x2a1   :  { %v1494_v53 = vadd.f32 %v2180_v24, %v1423_v52 }
 0x2a3   :  { %1527 = vst.msk [vmem:[%s2349_s7 + $0x78] sm:$0xff] %vm1511_vm1, %v1494_v53 }
 0x2a4   :  { %v1426_v20 = vpop.xlane.xlu0 %1425 }
 0x2a5   :  { %v1495_v54 = vadd.f32 %v2180_v24, %v1426_v20 }
 0x2a7   :  { %1528 = vst.msk [vmem:[%s2349_s7 + $0x80] sm:$0xff] %vm1511_vm1, %v1495_v54 }
 0x2a8   :  { %v1429_v55 = vpop.xlane.xlu1 %1428 }
 0x2a9   :  { %v1496_v56 = vadd.f32 %v2180_v24, %v1429_v55 }
 0x2ab   :  { %1529 = vst.msk [vmem:[%s2349_s7 + $0x88] sm:$0xff] %vm1511_vm1, %v1496_v56 }
 0x2ac   :  { %v1432_v57 = vpop.xlane.xlu0 %1431 }
 0x2ad   :  { %v1497_v58 = vadd.f32 %v2180_v24, %v1432_v57 }
 0x2af   :  { %1530 = vst.msk [vmem:[%s2349_s7 + $0x90] sm:$0xff] %vm1511_vm1, %v1497_v58 }
 0x2b0   :  { %v1435_v59 = vpop.xlane.xlu1 %1434 }
 0x2b1   :  { %v1498_v60 = vadd.f32 %v2180_v24, %v1435_v59 }
 0x2b3   :  { %1531 = vst.msk [vmem:[%s2349_s7 + $0x98] sm:$0xff] %vm1511_vm1, %v1498_v60 }
 0x2b4   :  { %v1438_v61 = vpop.xlane.xlu0 %1437 }
 0x2b5   :  { %v1499_v62 = vadd.f32 %v2180_v24, %v1438_v61 }
 0x2b7   :  { %1532 = vst.msk [vmem:[%s2349_s7 + $0xa0] sm:$0xff] %vm1511_vm1, %v1499_v62 }
 0x2b8   :  { %v1441_v63 = vpop.xlane.xlu1 %1440 }
 0x2b9   :  { %v1500_v0 = vadd.f32 %v2180_v24, %v1441_v63 }
 0x2bb   :  { %1533 = vst.msk [vmem:[%s2349_s7 + $0xa8] sm:$0xff] %vm1511_vm1, %v1500_v0 }
 0x2bc   :  { %v1444_v2 = vpop.xlane.xlu0 %1443 }
 0x2bd   :  { %v1501_v3 = vadd.f32 %v2180_v24, %v1444_v2 }
 0x2bf   :  { %1534 = vst.msk [vmem:[%s2349_s7 + $0xb0] sm:$0xff] %vm1511_vm1, %v1501_v3 }
 0x2c0   :  { %v1447_v4 = vpop.xlane.xlu1 %1446 }
 0x2c1   :  { %v1502_v5 = vadd.f32 %v2180_v24, %v1447_v4 }
 0x2c3   :  { %1535 = vst.msk [vmem:[%s2349_s7 + $0xb8] sm:$0xff] %vm1511_vm1, %v1502_v5 }
 0x2c4   :  { %v1450_v6 = vpop.xlane.xlu0 %1449 }
 0x2c5   :  { %v1503_v7 = vadd.f32 %v2180_v24, %v1450_v6 }
 0x2c7   :  { %1536 = vst.msk [vmem:[%s2349_s7 + $0xc0] sm:$0xff] %vm1511_vm1, %v1503_v7 }
 0x2c8   :  { %v1453_v8 = vpop.xlane.xlu1 %1452 }
 0x2c9   :  { %v1504_v9 = vadd.f32 %v2180_v24, %v1453_v8 }
 0x2cb   :  { %1537 = vst.msk [vmem:[%s2349_s7 + $0xc8] sm:$0xff] %vm1511_vm1, %v1504_v9 }
 0x2cc   :  { %v1456_v10 = vpop.xlane.xlu0 %1455 }
 0x2cd   :  { %v1505_v11 = vadd.f32 %v2180_v24, %v1456_v10 }
 0x2cf   :  { %1538 = vst.msk [vmem:[%s2349_s7 + $0xd0] sm:$0xff] %vm1511_vm1, %v1505_v11 }
 0x2d0   :  { %v1459_v12 = vpop.xlane.xlu1 %1458 }
 0x2d1   :  { %v1506_v13 = vadd.f32 %v2180_v24, %v1459_v12 }
 0x2d3   :  { %1539 = vst.msk [vmem:[%s2349_s7 + $0xd8] sm:$0xff] %vm1511_vm1, %v1506_v13 }
 0x2d4   :  { %v1462_v14 = vpop.xlane.xlu0 %1461 }
 0x2d5   :  { %v1507_v15 = vadd.f32 %v2180_v24, %v1462_v14 }
 0x2d7   :  { %1540 = vst.msk [vmem:[%s2349_s7 + $0xe0] sm:$0xff] %vm1511_vm1, %v1507_v15 }
 0x2d8   :  { %v1465_v16 = vpop.xlane.xlu1 %1464 }
 0x2d9   :  { %v1508_v17 = vadd.f32 %v2180_v24, %v1465_v16 }
 0x2db   :  { %1541 = vst.msk [vmem:[%s2349_s7 + $0xe8] sm:$0xff] %vm1511_vm1, %v1508_v17 }
 0x2dc   :  { %v1468_v19 = vpop.xlane.xlu0 %1467 }
 0x2dd   :  { %v1509_v22 = vadd.f32 %v2180_v24, %v1468_v19 }
 0x2df   :  { %1542 = vst.msk [vmem:[%s2349_s7 + $0xf0] sm:$0xff] %vm1511_vm1, %v1509_v22 }
 0x2e0   :  { %v1471_v23 = vpop.xlane.xlu1 %1470 }
 0x2e1   :  { %v1510_v35 = vadd.f32 %v2180_v24, %v1471_v23 }
 0x2e3   :  { %1543 = vst.msk [vmem:[%s2349_s7 + $0xf8] sm:$0xff] %vm1511_vm1, %v1510_v35 }
 0x2e4   :  { %1548 = vsyncpa [#allocation5], 1 }

// kernel: tpu_custom_call.1
= control target key start
LH: loop header
LB: loop body
LE: loop exit
PB: predicated region body
PF: predicated region fallthrough
CT: control target
= control target key end

     0   :  { %s2342_s0 = inlined_call_operand.vmem [shape: f32[256,32], index: 0, kind: input, shape index: {}]   ;;  %s2343_s1 = inlined_call_operand.vmem [shape: f32[32,256], index: 1, kind: input, shape index: {}]   ;;  %s2344_s2 = inlined_call_operand.vmem [shape: f32[1,256], index: 2, kind: input, shape index: {}]   ;;  %s2345_s3 = inlined_call_operand.hbm [shape: f32[256,256], index: 3, kind: input, shape index: {}]   ;;  %s2346_s4 = inlined_call_operand.vmem [shape: f32[1,256], index: 4, kind: input, shape index: {}]   ;;  %s2347_s5 = inlined_call_operand.vmem [shape: f32[1,256], index: 5, kind: input, shape index: {}]   ;;  %s2348_s6 = inlined_call_operand.<no memory space> [shape: f32[1,1], index: 6, kind: input, shape index: {}]   ;;  %s2349_s7 = inlined_call_operand.vmem [shape: f32[256,1], index: 7, kind: output, shape index: {}]  }
   0x1   :  { %v12_v0 = vstv %s2348_s6 }
   0x2   :  { %13 = vst [vmem:[#allocation3] sm:$0x1] %v12_v0 }
   0x3   :  { %14 = vsyncpa [#allocation5], 0  ;;  %s1714_s26 = smov [#allocation4]   ;;  %s1690_s30 = scalar_lea.hbm %s2345_s3, 8192 }
   0x4   :  { %s26_s27 = sshll.u32 %s1714_s26, 4  ;;  %p1691_p0 = scmp.ne.s32.totalorder %s2345_s3, %s1690_s30  ;;  %s27_s27 = int_to_ptr.vmem [resolvable:$true] %s26_s27 }
   0x5   :  { %p1694_p1 = scmp.lt.u32.totalorder %s1690_s30, %s2345_s3 }
   0x7   :  { %p1696_p2 = pnand %p1694_p1, %p1691_p0 }
   0x9   :  { %1699 = shalt.err (!%p1696_p2)
}
   0xa   :  { %s1700_s6 = scalar_lea.vmem %s27_s27, 8192  ;;  %p1705_p4 = scmp.lt.s32.totalorder %s27_s27, %s27_s27 }
   0xb   :  { %p1701_p3 = scmp.ne.s32.totalorder %s27_s27, %s1700_s6  ;;  %p1706_p5 = scmp.lt.s32.totalorder %s1700_s6, %s1700_s6 }
   0xd   :  { %p1707_p6 = por %p1706_p5, %p1705_p4 }
   0xf   :  { %p1708_p7 = pnand %p1707_p6, %p1701_p3 }
  0x11   :  { %1711 = shalt.err (!%p1708_p7)
}
  0x12   :  { %s1715_s12 = smov 256   ;;  %s1716_s13 = smov 16  }
  0x13   :  { %32 = dma.hbm_to_vmem [thread:$0]  %s2345_s3, 8192, %s27_s27, [#allocation5], %s1715_s12, %s1715_s12, %s1716_s13  }
  0x14   :  { %1712 = dma.done.wait [#allocation5], 8192  }
  0x15   :  { %1713 = vsyncadd [#allocation5], 4294959104  ;;  %v1717_v1 = vmov 0.0   ;;  %v143_v2 = vld [vmem:[%s2343_s1 + $0x8] sm:$0xff]  ;;  %v145_v3 = vld [vmem:[%s2343_s1 + $0x18] sm:$0xff]  ;;  %vm162_vm0 = vcmask 261120  }
  0x16   :  { %323 = vmatprep.mubr.f32.mxu0 %v1717_v1  ;;  %v142_v4 = vld [vmem:[%s2343_s1] sm:$0xff]  ;;  %v1582_v5 = vpack.c.bf16 %v145_v3, %v143_v2  ;;  %v144_v6 = vld [vmem:[%s2343_s1 + $0x10] sm:$0xff]  ;;  %v147_v7 = vld [vmem:[%s2343_s1 + $0x28] sm:$0xff]  ;;  %vm1511_vm1 = vcmask 7168  }
  0x17   :  { %v149_v8 = vld [vmem:[%s2343_s1 + $0x38] sm:$0xff]  ;;  %v1584_v9 = vpack.c.bf16 %v144_v6, %v142_v4  ;;  %v146_v11 = vld [vmem:[%s2343_s1 + $0x20] sm:$0xff]  ;;  %v148_v12 = vld [vmem:[%s2343_s1 + $0x30] sm:$0xff] }
  0x18   :  { %v1586_v10 = vpack.c.bf16 %v149_v8, %v147_v7  ;;  %1583 = vmatprep.subr.bf16.mxu0 %v1582_v5  ;;  %v1588_v13 = vpack.c.bf16 %v148_v12, %v146_v11  ;;  %v110_v14 = vld [vmem:[%s2342_s0] sm:$0xff]  ;;  %v111_v15 = vld [vmem:[%s2342_s0 + $0x8] sm:$0xff]  ;;  %v646_v20 = vld [vmem:[#allocation4 + $0x10] sm:$0xff] }
  0x19   :  { %1585 = vmatpush1.bf16.msra.mxu0 %v1584_v9  ;;  %v645_v16 = vld [vmem:[#allocation4 + $0x8] sm:$0xff]  ;;  %v647_v17 = vld [vmem:[#allocation4 + $0x18] sm:$0xff]  ;;  %v644_v19 = vld [vmem:[#allocation4] sm:$0xff] }
  0x1a   :  { %1587 = vmatprep.subr.bf16.mxu0 %v1586_v10  ;;  %v1590_v18 = vpack.c.bf16 %v647_v17, %v645_v16  ;;  %v649_v21 = vld [vmem:[#allocation4 + $0x28] sm:$0xff]  ;;  %v1592_v22 = vpack.c.bf16 %v646_v20, %v644_v19  ;;  %v651_v23 = vld [vmem:[#allocation4 + $0x38] sm:$0xff]  ;;  %v648_v24 = vld [vmem:[#allocation4 + $0x20] sm:$0xff] }
  0x1b   :  { %v650_v25 = vld [vmem:[#allocation4 + $0x30] sm:$0xff]  ;;  %v1594_v27 = vpack.c.bf16 %v651_v23, %v649_v21  ;;  %v653_v28 = vld [vmem:[#allocation4 + $0x48] sm:$0xff]  ;;  %v655_v29 = vld [vmem:[#allocation4 + $0x58] sm:$0xff] }
  0x1c   :  { %v112_v26 = vld [vmem:[%s2342_s0 + $0x10] sm:$0xff]  ;;  %v1596_v30 = vpack.c.bf16 %v650_v25, %v648_v24  ;;  %1654 = vmatprep.subr.bf16.mxu1 %v1590_v18  ;;  %v1598_v31 = vpack.c.bf16 %v655_v29, %v653_v28  ;;  %v652_v32 = vld [vmem:[#allocation4 + $0x40] sm:$0xff]  ;;  %v659_v35 = vld [vmem:[#allocation4 + $0x78] sm:$0xff] }
  0x1d   :  { %1589 = vmatpush1.bf16.msra.mxu0 %v1588_v13  ;;  %v654_v33 = vld [vmem:[#allocation4 + $0x50] sm:$0xff]  ;;  %1670 = vmatpush1.bf16.msra.mxu1 %v1592_v22  ;;  %v657_v34 = vld [vmem:[#allocation4 + $0x68] sm:$0xff]  ;;  %v656_v39 = vld [vmem:[#allocation4 + $0x60] sm:$0xff] }
  0x1e   :  { %1591 = vmatprep.subr.bf16.mxu0 %v1590_v18  ;;  %1655 = vmatprep.subr.bf16.mxu1 %v1594_v27  ;;  %v113_v36 = vld [vmem:[%s2342_s0 + $0x18] sm:$0xff]  ;;  %v1600_v37 = vpack.c.bf16 %v654_v33, %v652_v32  ;;  %v1602_v38 = vpack.c.bf16 %v659_v35, %v657_v34  ;;  %v661_v41 = vld [vmem:[#allocation4 + $0x88] sm:$0xff]  ;;  %v114_v43 = vld [vmem:[%s2342_s0 + $0x20] sm:$0xff] }
  0x1f   :  { %v658_v40 = vld [vmem:[#allocation4 + $0x70] sm:$0xff]  ;;  %v663_v42 = vld [vmem:[#allocation4 + $0x98] sm:$0xff]  ;;  %v660_v46 = vld [vmem:[#allocation4 + $0x80] sm:$0xff] }
  0x20   :  { %1549 = vmatmul.mubr.msk.f32.vlgmr.msra.gmra.mrb[0].mxu0 %vm162_vm0, %v110_v14  ;;  %v1604_v44 = vpack.c.bf16 %v658_v40, %v656_v39  ;;  %v1606_v45 = vpack.c.bf16 %v663_v42, %v661_v41  ;;  %v662_v47 = vld [vmem:[#allocation4 + $0x90] sm:$0xff]  ;;  %v665_v48 = vld [vmem:[#allocation4 + $0xa8] sm:$0xff]  ;;  %v667_v49 = vld [vmem:[#allocation4 + $0xb8] sm:$0xff] }
  0x21   :  { %329 = vmatprep.mubr.f32.mxu0 %v1717_v1  ;;  %1593 = vmatpush1.bf16.msra.mxu0 %v1592_v22  ;;  %v115_v50 = vld [vmem:[%s2342_s0 + $0x28] sm:$0xff]  ;;  %v1608_v51 = vpack.c.bf16 %v662_v47, %v660_v46  ;;  %v1610_v52 = vpack.c.bf16 %v667_v49, %v665_v48  ;;  %v666_v54 = vld [vmem:[#allocation4 + $0xb0] sm:$0xff]  ;;  %v671_v56 = vld [vmem:[#allocation4 + $0xd8] sm:$0xff] }
  0x22   :  { %1595 = vmatprep.subr.bf16.mxu0 %v1594_v27  ;;  %1671 = vmatpush1.bf16.msra.mxu1 %v1596_v30  ;;  %v664_v53 = vld [vmem:[#allocation4 + $0xa0] sm:$0xff]  ;;  %v669_v55 = vld [vmem:[#allocation4 + $0xc8] sm:$0xff]  ;;  %v670_v61 = vld [vmem:[#allocation4 + $0xd0] sm:$0xff] }
  0x23   :  { %1656 = vmatprep.subr.bf16.mxu1 %v1598_v31  ;;  %v116_v57 = vld [vmem:[%s2342_s0 + $0x30] sm:$0xff]  ;;  %v1612_v58 = vpack.c.bf16 %v666_v54, %v664_v53  ;;  %v1614_v59 = vpack.c.bf16 %v671_v56, %v669_v55  ;;  %v668_v60 = vld [vmem:[#allocation4 + $0xc0] sm:$0xff]  ;;  %v675_v63 = vld [vmem:[#allocation4 + $0xf8] sm:$0xff] }
  0x24   :  { %1550 = vmatmul.mubr.msk.f32.gmra.mrb[2].mxu0 %vm162_vm0, %v111_v15  ;;  %v673_v62 = vld [vmem:[#allocation4 + $0xe8] sm:$0xff]  ;;  %v117_v0 = vld [vmem:[%s2342_s0 + $0x38] sm:$0xff]  ;;  %v1616_v2 = vpack.c.bf16 %v670_v61, %v668_v60  ;;  %v672_v4 = vld [vmem:[#allocation4 + $0xe0] sm:$0xff] }
  0x25   :  { %335 = vmatprep.mubr.f32.mxu0 %v1717_v1  ;;  %1597 = vmatpush1.bf16.msra.mxu0 %v1596_v30  ;;  %v1618_v3 = vpack.c.bf16 %v675_v63, %v673_v62  ;;  %v674_v5 = vld [vmem:[#allocation4 + $0xf0] sm:$0xff]  ;;  %v677_v6 = vld [vmem:[#allocation4 + $0x108] sm:$0xff]  ;;  %v679_v7 = vld [vmem:[#allocation4 + $0x118] sm:$0xff] }
  0x26   :  { %1599 = vmatprep.subr.bf16.mxu0 %v1598_v31  ;;  %1672 = vmatpush1.bf16.msra.mxu1 %v1600_v37  ;;  %v118_v8 = vld [vmem:[%s2342_s0 + $0x40] sm:$0xff]  ;;  %v1620_v9 = vpack.c.bf16 %v674_v5, %v672_v4  ;;  %v1622_v10 = vpack.c.bf16 %v679_v7, %v677_v6  ;;  %v678_v12 = vld [vmem:[#allocation4 + $0x110] sm:$0xff]  ;;  %v681_v13 = vld [vmem:[#allocation4 + $0x128] sm:$0xff] }
  0x27   :  { %1657 = vmatprep.subr.bf16.mxu1 %v1602_v38  ;;  %v676_v11 = vld [vmem:[#allocation4 + $0x100] sm:$0xff]  ;;  %v683_v14 = vld [vmem:[#allocation4 + $0x138] sm:$0xff]  ;;  %v682_v19 = vld [vmem:[#allocation4 + $0x130] sm:$0xff] }
  0x28   :  { %1551 = vmatmul.mubr.msk.f32.gmra.mrb[4].mxu0 %vm162_vm0, %v112_v26  ;;  %v119_v15 = vld [vmem:[%s2342_s0 + $0x48] sm:$0xff]  ;;  %v1624_v16 = vpack.c.bf16 %v678_v12, %v676_v11  ;;  %v1626_v17 = vpack.c.bf16 %v683_v14, %v681_v13  ;;  %v687_v21 = vld [vmem:[#allocation4 + $0x158] sm:$0xff]  ;;  %v120_v22 = vld [vmem:[%s2342_s0 + $0x50] sm:$0xff] }
  0x29   :  { %341 = vmatprep.mubr.f32.mxu0 %v1717_v1  ;;  %1601 = vmatpush1.bf16.msra.mxu0 %v1600_v37  ;;  %v680_v18 = vld [vmem:[#allocation4 + $0x120] sm:$0xff]  ;;  %v685_v20 = vld [vmem:[#allocation4 + $0x148] sm:$0xff]  ;;  %v686_v26 = vld [vmem:[#allocation4 + $0x150] sm:$0xff] }
  0x2a   :  { %1603 = vmatprep.subr.bf16.mxu0 %v1602_v38  ;;  %1673 = vmatpush1.bf16.msra.mxu1 %v1604_v44  ;;  %v1628_v23 = vpack.c.bf16 %v682_v19, %v680_v18  ;;  %v1630_v24 = vpack.c.bf16 %v687_v21, %v685_v20  ;;  %v684_v25 = vld [vmem:[#allocation4 + $0x140] sm:$0xff]  ;;  %v689_v27 = vld [vmem:[#allocation4 + $0x168] sm:$0xff]  ;;  %v691_v28 = vld [vmem:[#allocation4 + $0x178] sm:$0xff] }
  0x2b   :  { %1658 = vmatprep.subr.bf16.mxu1 %v1606_v45  ;;  %v121_v29 = vld [vmem:[%s2342_s0 + $0x58] sm:$0xff]  ;;  %v1632_v30 = vpack.c.bf16 %v686_v26, %v684_v25  ;;  %v1634_v31 = vpack.c.bf16 %v691_v28, %v689_v27  ;;  %v688_v32 = vld [vmem:[#allocation4 + $0x160] sm:$0xff]  ;;  %v693_v34 = vld [vmem:[#allocation4 + $0x188] sm:$0xff] }
  0x2c   :  { %1552 = vmatmul.mubr.msk.f32.gmra.mrb[6].mxu0 %vm162_vm0, %v113_v36  ;;  %v690_v33 = vld [vmem:[#allocation4 + $0x170] sm:$0xff]  ;;  %v695_v35 = vld [vmem:[#allocation4 + $0x198] sm:$0xff]  ;;  %v692_v39 = vld [vmem:[#allocation4 + $0x180] sm:$0xff] }
  0x2d   :  { %347 = vmatprep.mubr.f32.mxu0 %v1717_v1  ;;  %1605 = vmatpush1.bf16.msra.mxu0 %v1604_v44  ;;  %v122_v36 = vld [vmem:[%s2342_s0 + $0x60] sm:$0xff]  ;;  %v1636_v37 = vpack.c.bf16 %v690_v33, %v688_v32  ;;  %v1638_v38 = vpack.c.bf16 %v695_v35, %v693_v34  ;;  %v694_v40 = vld [vmem:[#allocation4 + $0x190] sm:$0xff]  ;;  %v697_v41 = vld [vmem:[#allocation4 + $0x1a8] sm:$0xff] }
  0x2e   :  { %1607 = vmatprep.subr.bf16.mxu0 %v1606_v45  ;;  %1674 = vmatpush1.bf16.msra.mxu1 %v1608_v51  ;;  %v699_v42 = vld [vmem:[#allocation4 + $0x1b8] sm:$0xff]  ;;  %v1640_v44 = vpack.c.bf16 %v694_v40, %v692_v39  ;;  %v696_v46 = vld [vmem:[#allocation4 + $0x1a0] sm:$0xff]  ;;  %v698_v47 = vld [vmem:[#allocation4 + $0x1b0] sm:$0xff] }
  0x2f   :  { %1659 = vmatprep.subr.bf16.mxu1 %v1610_v52  ;;  %v1642_v45 = vpack.c.bf16 %v699_v42, %v697_v41  ;;  %v701_v48 = vld [vmem:[#allocation4 + $0x1c8] sm:$0xff]  ;;  %v703_v49 = vld [vmem:[#allocation4 + $0x1d8] sm:$0xff]  ;;  %v702_v60 = vld [vmem:[#allocation4 + $0x1d0] sm:$0xff] }
  0x30   :  { %1553 = vmatmul.mubr.msk.f32.gmra.mrb[8].mxu0 %vm162_vm0, %v114_v43  ;;  %v123_v43 = vld [vmem:[%s2342_s0 + $0x68] sm:$0xff]  ;;  %v125_v53 = vld [vmem:[%s2342_s0 + $0x78] sm:$0xff]  ;;  %v126_v54 = vld [vmem:[%s2342_s0 + $0x80] sm:$0xff] }
  0x31   :  { %353 = vmatprep.mubr.f32.mxu0 %v1717_v1  ;;  %1609 = vmatpush1.bf16.msra.mxu0 %v1608_v51  ;;  %v1644_v51 = vpack.c.bf16 %v698_v47, %v696_v46  ;;  %v127_v55 = vld [vmem:[%s2342_s0 + $0x88] sm:$0xff]  ;;  %v128_v56 = vld [vmem:[%s2342_s0 + $0x90] sm:$0xff]  ;;  %v133_v7 = vld [vmem:[%s2342_s0 + $0xb8] sm:$0xff] }
  0x32   :  { %1611 = vmatprep.subr.bf16.mxu0 %v1610_v52  ;;  %1675 = vmatpush1.bf16.msra.mxu1 %v1612_v58  ;;  %v1646_v52 = vpack.c.bf16 %v703_v49, %v701_v48  ;;  %v131_v61 = vld [vmem:[%s2342_s0 + $0xa8] sm:$0xff]  ;;  %v706_v4 = vld [vmem:[#allocation4 + $0x1f0] sm:$0xff]  ;;  %v138_v12 = vld [vmem:[%s2342_s0 + $0xe0] sm:$0xff] }
  0x33   :  { %1660 = vmatprep.subr.bf16.mxu1 %v1614_v59  ;;  %v705_v63 = vld [vmem:[#allocation4 + $0x1e8] sm:$0xff]  ;;  %v137_v11 = vld [vmem:[%s2342_s0 + $0xd8] sm:$0xff]  ;;  %v150_v19 = vld [vmem:[%s2344_s2] sm:$0x3] }
  0x34   :  { %1554 = vmatmul.mubr.msk.f32.gmra.mrb[10].mxu0 %vm162_vm0, %v115_v50  ;;  %v124_v50 = vld [vmem:[%s2342_s0 + $0x70] sm:$0xff]  ;;  %v139_v13 = vld [vmem:[%s2342_s0 + $0xe8] sm:$0xff] }
  0x35   :  { %359 = vmatprep.mubr.f32.mxu0 %v1717_v1  ;;  %1613 = vmatpush1.bf16.msra.mxu0 %v1612_v58  ;;  %v130_v58 = vld [vmem:[%s2342_s0 + $0xa0] sm:$0xff]  ;;  %v132_v5 = vld [vmem:[%s2342_s0 + $0xb0] sm:$0xff] }
  0x36   :  { %1615 = vmatprep.subr.bf16.mxu0 %v1614_v59  ;;  %1676 = vmatpush1.bf16.msra.mxu1 %v1616_v2  ;;  %v700_v59 = vld [vmem:[#allocation4 + $0x1c0] sm:$0xff]  ;;  %v140_v14 = vld [vmem:[%s2342_s0 + $0xf0] sm:$0xff] }
  0x37   :  { %1661 = vmatprep.subr.bf16.mxu1 %v1618_v3  ;;  %v1648_v62 = vpack.c.bf16 %v702_v60, %v700_v59 }
  0x38   :  { %1555 = vmatmul.mubr.msk.f32.gmra.mrb[12].mxu0 %vm162_vm0, %v116_v57  ;;  %v129_v57 = vld [vmem:[%s2342_s0 + $0x98] sm:$0xff] }
  0x39   :  { %365 = vmatprep.mubr.f32.mxu0 %v1717_v1  ;;  %1617 = vmatpush1.bf16.msra.mxu0 %v1616_v2 }
  0x3a   :  { %1619 = vmatprep.subr.bf16.mxu0 %v1618_v3  ;;  %1677 = vmatpush1.bf16.msra.mxu1 %v1620_v9  ;;  %v704_v3 = vld [vmem:[#allocation4 + $0x1e0] sm:$0xff] }
  0x3b   :  { %1662 = vmatprep.subr.bf16.mxu1 %v1622_v10  ;;  %v1652_v6 = vpack.c.bf16 %v706_v4, %v704_v3 }
  0x3c   :  { %1556 = vmatmul.mubr.msk.f32.gmra.mrb[14].mxu0 %vm162_vm0, %v117_v0  ;;  %v707_v0 = vld [vmem:[#allocation4 + $0x1f8] sm:$0xff] }
  0x3d   :  { %371 = vmatprep.mubr.f32.mxu0 %v1717_v1  ;;  %1621 = vmatpush1.bf16.msra.mxu0 %v1620_v9  ;;  %v1650_v2 = vpack.c.bf16 %v707_v0, %v705_v63  ;;  %v135_v9 = vld [vmem:[%s2342_s0 + $0xc8] sm:$0xff] }
  0x3e   :  { %1623 = vmatprep.subr.bf16.mxu0 %v1622_v10  ;;  %1678 = vmatpush1.bf16.msra.mxu1 %v1624_v16  ;;  %v136_v10 = vld [vmem:[%s2342_s0 + $0xd0] sm:$0xff] }
  0x3f   :  { %1663 = vmatprep.subr.bf16.mxu1 %v1626_v17 }
  0x40   :  { %1557 = vmatmul.mubr.msk.f32.gmra.mrb[16].mxu0 %vm162_vm0, %v118_v8  ;;  %v134_v8 = vld [vmem:[%s2342_s0 + $0xc0] sm:$0xff] }
  0x41   :  { %377 = vmatprep.mubr.f32.mxu0 %v1717_v1  ;;  %1625 = vmatpush1.bf16.msra.mxu0 %v1624_v16  ;;  %v152_v16 = vlaneseq }
  0x42   :  { %1627 = vmatprep.subr.bf16.mxu0 %v1626_v17  ;;  %1679 = vmatpush1.bf16.msra.mxu1 %v1628_v23 }
  0x43   :  { %1664 = vmatprep.subr.bf16.mxu1 %v1630_v24  ;;  %v153_v17 = vshrl.u32 %v152_v16, 7 }
  0x44   :  { %1558 = vmatmul.mubr.msk.f32.gmra.mrb[18].mxu0 %vm162_vm0, %v119_v15  ;;  %v141_v15 = vld [vmem:[%s2342_s0 + $0xf8] sm:$0xff] }
  0x45   :  { %383 = vmatprep.mubr.f32.mxu0 %v1717_v1  ;;  %1629 = vmatpush1.bf16.msra.mxu0 %v1628_v23  ;;  %v1957_v18 = vsub.s32 0, %v153_v17  ;;  %v1962_v20 = vsub.s32 1, %v153_v17 }
  0x46   :  { %1631 = vmatprep.subr.bf16.mxu0 %v1630_v24  ;;  %1680 = vmatpush1.bf16.msra.mxu1 %v1632_v30 }
  0x47   :  { %1665 = vmatprep.subr.bf16.mxu1 %v1634_v31  ;;  %v1965_v21 = vrot.slane %v150_v19, %v1957_v18 }
  0x48   :  { %1559 = vmatmul.mubr.msk.f32.gmra.mrb[20].mxu0 %vm162_vm0, %v120_v22 }
  0x49   :  { %389 = vmatprep.mubr.f32.mxu0 %v1717_v1  ;;  %1633 = vmatpush1.bf16.msra.mxu0 %v1632_v30 }
  0x4a   :  { %1635 = vmatprep.subr.bf16.mxu0 %v1634_v31  ;;  %1681 = vmatpush1.bf16.msra.mxu1 %v1636_v37 }
  0x4b   :  { %1666 = vmatprep.subr.bf16.mxu1 %v1638_v38 }
  0x4c   :  { %1560 = vmatmul.mubr.msk.f32.gmra.mrb[22].mxu0 %vm162_vm0, %v121_v29 }
  0x4d   :  { %395 = vmatprep.mubr.f32.mxu0 %v1717_v1  ;;  %1637 = vmatpush1.bf16.msra.mxu0 %v1636_v37 }
  0x4e   :  { %1639 = vmatprep.subr.bf16.mxu0 %v1638_v38  ;;  %1682 = vmatpush1.bf16.msra.mxu1 %v1640_v44 }
  0x4f   :  { %1667 = vmatprep.subr.bf16.mxu1 %v1642_v45 }
  0x50   :  { %1561 = vmatmul.mubr.msk.f32.gmra.mrb[24].mxu0 %vm162_vm0, %v122_v36 }
  0x51   :  { %401 = vmatprep.mubr.f32.mxu0 %v1717_v1  ;;  %1641 = vmatpush1.bf16.msra.mxu0 %v1640_v44 }
  0x52   :  { %1643 = vmatprep.subr.bf16.mxu0 %v1642_v45  ;;  %1683 = vmatpush1.bf16.msra.mxu1 %v1644_v51 }
  0x53   :  { %1668 = vmatprep.subr.bf16.mxu1 %v1646_v52 }
  0x54   :  { %1562 = vmatmul.mubr.msk.f32.gmra.mrb[26].mxu0 %vm162_vm0, %v123_v43 }
  0x55   :  { %407 = vmatprep.mubr.f32.mxu0 %v1717_v1  ;;  %1645 = vmatpush1.bf16.msra.mxu0 %v1644_v51 }
  0x56   :  { %1647 = vmatprep.subr.bf16.mxu0 %v1646_v52  ;;  %1684 = vmatpush1.bf16.msra.mxu1 %v1648_v62 }
  0x57   :  { %1669 = vmatprep.subr.bf16.mxu1 %v1650_v2 }
  0x58   :  { %1563 = vmatmul.mubr.msk.f32.gmra.mrb[28].mxu0 %vm162_vm0, %v124_v50 }
  0x59   :  { %413 = vmatprep.mubr.f32.mxu0 %v1717_v1  ;;  %1649 = vmatpush1.bf16.msra.mxu0 %v1648_v62 }
  0x5a   :  { %1651 = vmatprep.subr.bf16.mxu0 %v1650_v2  ;;  %1685 = vmatpush1.bf16.msra.mxu1 %v1652_v6 }
  0x5c   :  { %1564 = vmatmul.mubr.msk.f32.gmra.mrb[30].mxu0 %vm162_vm0, %v125_v53 }
  0x5d   :  { %419 = vmatprep.mubr.f32.mxu0 %v1717_v1  ;;  %1653 = vmatpush1.bf16.msra.mxu0 %v1652_v6 }
  0x60   :  { %1565 = vmatmul.mubr.msk.f32.gmra.mrb[32].mxu0 %vm162_vm0, %v126_v54 }
  0x61   :  { %425 = vmatprep.mubr.f32.mxu0 %v1717_v1 }
  0x64   :  { %1566 = vmatmul.mubr.msk.f32.gmra.mrb[34].mxu0 %vm162_vm0, %v127_v55 }
  0x65   :  { %431 = vmatprep.mubr.f32.mxu0 %v1717_v1 }
  0x68   :  { %1567 = vmatmul.mubr.msk.f32.gmra.mrb[36].mxu0 %vm162_vm0, %v128_v56 }
  0x69   :  { %437 = vmatprep.mubr.f32.mxu0 %v1717_v1 }
  0x6c   :  { %1568 = vmatmul.mubr.msk.f32.gmra.mrb[38].mxu0 %vm162_vm0, %v129_v57 }
  0x6d   :  { %443 = vmatprep.mubr.f32.mxu0 %v1717_v1 }
  0x70   :  { %1569 = vmatmul.mubr.msk.f32.gmra.mrb[40].mxu0 %vm162_vm0, %v130_v58 }
  0x71   :  { %449 = vmatprep.mubr.f32.mxu0 %v1717_v1 }
  0x74   :  { %1570 = vmatmul.mubr.msk.f32.gmra.mrb[42].mxu0 %vm162_vm0, %v131_v61 }
  0x75   :  { %455 = vmatprep.mubr.f32.mxu0 %v1717_v1 }
  0x78   :  { %1571 = vmatmul.mubr.msk.f32.gmra.mrb[44].mxu0 %vm162_vm0, %v132_v5 }
  0x79   :  { %461 = vmatprep.mubr.f32.mxu0 %v1717_v1 }
  0x7c   :  { %1572 = vmatmul.mubr.msk.f32.gmra.mrb[46].mxu0 %vm162_vm0, %v133_v7 }
  0x7d   :  { %467 = vmatprep.mubr.f32.mxu0 %v1717_v1 }
  0x80   :  { %1573 = vmatmul.mubr.msk.f32.gmra.mrb[48].mxu0 %vm162_vm0, %v134_v8 }
  0x81   :  { %473 = vmatprep.mubr.f32.mxu0 %v1717_v1 }
  0x84   :  { %1574 = vmatmul.mubr.msk.f32.gmra.mrb[50].mxu0 %vm162_vm0, %v135_v9 }
  0x85   :  { %479 = vmatprep.mubr.f32.mxu0 %v1717_v1 }
  0x88   :  { %1575 = vmatmul.mubr.msk.f32.gmra.mrb[52].mxu0 %vm162_vm0, %v136_v10 }
  0x89   :  { %485 = vmatprep.mubr.f32.mxu0 %v1717_v1 }
  0x8c   :  { %1576 = vmatmul.mubr.msk.f32.gmra.mrb[54].mxu0 %vm162_vm0, %v137_v11 }
  0x8d   :  { %491 = vmatprep.mubr.f32.mxu0 %v1717_v1 }
  0x90   :  { %1577 = vmatmul.mubr.msk.f32.gmra.mrb[56].mxu0 %vm162_vm0, %v138_v12 }
  0x91   :  { %497 = vmatprep.mubr.f32.mxu0 %v1717_v1 }
  0x94   :  { %1578 = vmatmul.mubr.msk.f32.gmra.mrb[58].mxu0 %vm162_vm0, %v139_v13 }
  0x95   :  { %503 = vmatprep.mubr.f32.mxu0 %v1717_v1 }
  0x98   :  { %1579 = vmatmul.mubr.msk.f32.gmra.mrb[60].mxu0 %vm162_vm0, %v140_v14 }
  0x99   :  { %509 = vmatprep.mubr.f32.mxu0 %v1717_v1  ;;  %v1968_v1 = vrot.slane %v150_v19, %v1962_v20 }
  0x9c   :  { %1580 = vmatmul.mubr.msk.f32.gmra.mrb[62].mxu0 %vm162_vm0, %v141_v15 }
  0xf3   :  { %v325_v22 = vpop.f32.mrb[0].mxu0 }
  0xf4   :  { %v326_v23 = vadd.f32 %v325_v22, %v1965_v21  ;;  %v327_v24 = vpop.f32.mrb[1].mxu0 }
  0xf5   :  { %v328_v25 = vadd.f32 %v327_v24, %v1968_v1 }
  0xf6   :  { %v516_v28 = vmax.f32 %v326_v23, 0.0 }
  0xf7   :  { %v517_v26 = vmax.f32 %v328_v25, 0.0  ;;  %v331_v27 = vpop.f32.mrb[2].mxu0 }
  0xf8   :  { %v332_v29 = vadd.f32 %v331_v27, %v1965_v21  ;;  %v333_v30 = vpop.f32.mrb[3].mxu0 }
  0xf9   :  { %v334_v31 = vadd.f32 %v333_v30, %v1968_v1  ;;  %772 = vmatprep.mubr.f32.mxu0 %v517_v26 }
  0xfa   :  { %773 = vmatmul.mubr.f32.vlgmr.msra.gmra.mrb[64].mxu0 %v516_v28  ;;  %v518_v34 = vmax.f32 %v332_v29, 0.0 }
  0xfb   :  { %v519_v32 = vmax.f32 %v334_v31, 0.0  ;;  %v337_v33 = vpop.f32.mrb[4].mxu0 }
  0xfc   :  { %v338_v35 = vadd.f32 %v337_v33, %v1965_v21  ;;  %v339_v36 = vpop.f32.mrb[5].mxu0 }
  0xfd   :  { %v340_v37 = vadd.f32 %v339_v36, %v1968_v1  ;;  %778 = vmatprep.mubr.f32.mxu0 %v519_v32 }
  0xfe   :  { %779 = vmatmul.mubr.f32.gmra.mrb[66].mxu0 %v518_v34  ;;  %v520_v40 = vmax.f32 %v338_v35, 0.0 }
  0xff   :  { %v521_v38 = vmax.f32 %v340_v37, 0.0  ;;  %v343_v39 = vpop.f32.mrb[6].mxu0 }
 0x100   :  { %v344_v41 = vadd.f32 %v343_v39, %v1965_v21  ;;  %v345_v42 = vpop.f32.mrb[7].mxu0 }
 0x101   :  { %v346_v43 = vadd.f32 %v345_v42, %v1968_v1  ;;  %784 = vmatprep.mubr.f32.mxu0 %v521_v38 }
 0x102   :  { %785 = vmatmul.mubr.f32.gmra.mrb[68].mxu0 %v520_v40  ;;  %v522_v46 = vmax.f32 %v344_v41, 0.0 }
 0x103   :  { %v523_v44 = vmax.f32 %v346_v43, 0.0  ;;  %v349_v45 = vpop.f32.mrb[8].mxu0 }
 0x104   :  { %v350_v47 = vadd.f32 %v349_v45, %v1965_v21  ;;  %v351_v48 = vpop.f32.mrb[9].mxu0 }
 0x105   :  { %v352_v49 = vadd.f32 %v351_v48, %v1968_v1  ;;  %790 = vmatprep.mubr.f32.mxu0 %v523_v44 }
 0x106   :  { %791 = vmatmul.mubr.f32.gmra.mrb[70].mxu0 %v522_v46  ;;  %v524_v52 = vmax.f32 %v350_v47, 0.0 }
 0x107   :  { %v525_v50 = vmax.f32 %v352_v49, 0.0  ;;  %v355_v51 = vpop.f32.mrb[10].mxu0 }
 0x108   :  { %v356_v53 = vadd.f32 %v355_v51, %v1965_v21  ;;  %v357_v54 = vpop.f32.mrb[11].mxu0 }
 0x109   :  { %v358_v55 = vadd.f32 %v357_v54, %v1968_v1  ;;  %796 = vmatprep.mubr.f32.mxu0 %v525_v50 }
 0x10a   :  { %797 = vmatmul.mubr.f32.gmra.mrb[72].mxu0 %v524_v52  ;;  %v526_v58 = vmax.f32 %v356_v53, 0.0 }
 0x10b   :  { %v527_v56 = vmax.f32 %v358_v55, 0.0  ;;  %v361_v57 = vpop.f32.mrb[12].mxu0 }
 0x10c   :  { %v362_v59 = vadd.f32 %v361_v57, %v1965_v21  ;;  %v363_v60 = vpop.f32.mrb[13].mxu0 }
 0x10d   :  { %v364_v61 = vadd.f32 %v363_v60, %v1968_v1  ;;  %802 = vmatprep.mubr.f32.mxu0 %v527_v56 }
 0x10e   :  { %803 = vmatmul.mubr.f32.gmra.mrb[74].mxu0 %v526_v58  ;;  %v528_v0 = vmax.f32 %v362_v59, 0.0 }
 0x10f   :  { %v529_v62 = vmax.f32 %v364_v61, 0.0  ;;  %v367_v63 = vpop.f32.mrb[14].mxu0 }
 0x110   :  { %v368_v2 = vadd.f32 %v367_v63, %v1965_v21  ;;  %v369_v3 = vpop.f32.mrb[15].mxu0 }
 0x111   :  { %808 = vmatprep.mubr.f32.mxu0 %v529_v62  ;;  %v370_v4 = vadd.f32 %v369_v3, %v1968_v1 }
 0x112   :  { %809 = vmatmul.mubr.f32.gmra.mrb[76].mxu0 %v528_v0  ;;  %v530_v7 = vmax.f32 %v368_v2, 0.0 }
 0x113   :  { %v373_v5 = vpop.f32.mrb[16].mxu0  ;;  %v531_v6 = vmax.f32 %v370_v4, 0.0 }
 0x114   :  { %v374_v8 = vadd.f32 %v373_v5, %v1965_v21  ;;  %v375_v9 = vpop.f32.mrb[17].mxu0 }
 0x115   :  { %v376_v10 = vadd.f32 %v375_v9, %v1968_v1  ;;  %814 = vmatprep.mubr.f32.mxu1 %v531_v6 }
 0x116   :  { %815 = vmatmul.mubr.f32.vlgmr.msra.gmra.mrb[0].mxu1 %v530_v7  ;;  %v532_v13 = vmax.f32 %v374_v8, 0.0 }
 0x117   :  { %v533_v11 = vmax.f32 %v376_v10, 0.0  ;;  %v379_v12 = vpop.f32.mrb[18].mxu0 }
 0x118   :  { %v380_v14 = vadd.f32 %v379_v12, %v1965_v21  ;;  %v381_v15 = vpop.f32.mrb[19].mxu0 }
 0x119   :  { %v382_v16 = vadd.f32 %v381_v15, %v1968_v1  ;;  %820 = vmatprep.mubr.f32.mxu1 %v533_v11 }
 0x11a   :  { %821 = vmatmul.mubr.f32.gmra.mrb[2].mxu1 %v532_v13  ;;  %v534_v22 = vmax.f32 %v380_v14, 0.0 }
 0x11b   :  { %v535_v17 = vmax.f32 %v382_v16, 0.0  ;;  %v385_v19 = vpop.f32.mrb[20].mxu0 }
 0x11c   :  { %v386_v23 = vadd.f32 %v385_v19, %v1965_v21  ;;  %v387_v24 = vpop.f32.mrb[21].mxu0 }
 0x11d   :  { %v388_v25 = vadd.f32 %v387_v24, %v1968_v1  ;;  %826 = vmatprep.mubr.f32.mxu1 %v535_v17 }
 0x11e   :  { %827 = vmatmul.mubr.f32.gmra.mrb[4].mxu1 %v534_v22  ;;  %v536_v28 = vmax.f32 %v386_v23, 0.0 }
 0x11f   :  { %v537_v26 = vmax.f32 %v388_v25, 0.0  ;;  %v391_v27 = vpop.f32.mrb[22].mxu0 }
 0x120   :  { %v392_v29 = vadd.f32 %v391_v27, %v1965_v21  ;;  %v393_v30 = vpop.f32.mrb[23].mxu0 }
 0x121   :  { %v394_v31 = vadd.f32 %v393_v30, %v1968_v1  ;;  %832 = vmatprep.mubr.f32.mxu1 %v537_v26 }
 0x122   :  { %833 = vmatmul.mubr.f32.gmra.mrb[6].mxu1 %v536_v28  ;;  %v538_v34 = vmax.f32 %v392_v29, 0.0 }
 0x123   :  { %v539_v32 = vmax.f32 %v394_v31, 0.0  ;;  %v397_v33 = vpop.f32.mrb[24].mxu0 }
 0x124   :  { %v398_v35 = vadd.f32 %v397_v33, %v1965_v21  ;;  %v399_v36 = vpop.f32.mrb[25].mxu0 }
 0x125   :  { %v400_v37 = vadd.f32 %v399_v36, %v1968_v1  ;;  %838 = vmatprep.mubr.f32.mxu1 %v539_v32 }
 0x126   :  { %839 = vmatmul.mubr.f32.gmra.mrb[8].mxu1 %v538_v34  ;;  %v540_v40 = vmax.f32 %v398_v35, 0.0 }
 0x127   :  { %v541_v38 = vmax.f32 %v400_v37, 0.0  ;;  %v403_v39 = vpop.f32.mrb[26].mxu0 }
 0x128   :  { %v404_v41 = vadd.f32 %v403_v39, %v1965_v21  ;;  %v405_v42 = vpop.f32.mrb[27].mxu0 }
 0x129   :  { %v406_v43 = vadd.f32 %v405_v42, %v1968_v1  ;;  %844 = vmatprep.mubr.f32.mxu1 %v541_v38 }
 0x12a   :  { %845 = vmatmul.mubr.f32.gmra.mrb[10].mxu1 %v540_v40  ;;  %v542_v46 = vmax.f32 %v404_v41, 0.0 }
 0x12b   :  { %v543_v44 = vmax.f32 %v406_v43, 0.0  ;;  %v409_v45 = vpop.f32.mrb[28].mxu0 }
 0x12c   :  { %v410_v47 = vadd.f32 %v409_v45, %v1965_v21  ;;  %v411_v48 = vpop.f32.mrb[29].mxu0 }
 0x12d   :  { %v412_v49 = vadd.f32 %v411_v48, %v1968_v1  ;;  %850 = vmatprep.mubr.f32.mxu1 %v543_v44 }
 0x12e   :  { %851 = vmatmul.mubr.f32.gmra.mrb[12].mxu1 %v542_v46  ;;  %v544_v52 = vmax.f32 %v410_v47, 0.0 }
 0x12f   :  { %v545_v50 = vmax.f32 %v412_v49, 0.0  ;;  %v415_v51 = vpop.f32.mrb[30].mxu0 }
 0x130   :  { %v416_v53 = vadd.f32 %v415_v51, %v1965_v21  ;;  %v417_v54 = vpop.f32.mrb[31].mxu0 }
 0x131   :  { %v418_v55 = vadd.f32 %v417_v54, %v1968_v1  ;;  %856 = vmatprep.mubr.f32.mxu1 %v545_v50 }
 0x132   :  { %857 = vmatmul.mubr.f32.gmra.mrb[14].mxu1 %v544_v52  ;;  %v546_v58 = vmax.f32 %v416_v53, 0.0 }
 0x133   :  { %v547_v56 = vmax.f32 %v418_v55, 0.0  ;;  %v421_v57 = vpop.f32.mrb[32].mxu0 }
 0x134   :  { %v422_v59 = vadd.f32 %v421_v57, %v1965_v21  ;;  %v423_v60 = vpop.f32.mrb[33].mxu0 }
 0x135   :  { %v424_v61 = vadd.f32 %v423_v60, %v1968_v1  ;;  %862 = vmatprep.mubr.f32.mxu1 %v547_v56 }
 0x136   :  { %863 = vmatmul.mubr.f32.gmra.mrb[16].mxu1 %v546_v58  ;;  %v548_v0 = vmax.f32 %v422_v59, 0.0 }
 0x137   :  { %v549_v62 = vmax.f32 %v424_v61, 0.0  ;;  %v427_v63 = vpop.f32.mrb[34].mxu0 }
 0x138   :  { %v428_v2 = vadd.f32 %v427_v63, %v1965_v21  ;;  %v429_v3 = vpop.f32.mrb[35].mxu0 }
 0x139   :  { %v430_v4 = vadd.f32 %v429_v3, %v1968_v1  ;;  %868 = vmatprep.mubr.f32.mxu1 %v549_v62 }
 0x13a   :  { %869 = vmatmul.mubr.f32.gmra.mrb[18].mxu1 %v548_v0  ;;  %v550_v7 = vmax.f32 %v428_v2, 0.0 }
 0x13b   :  { %v551_v5 = vmax.f32 %v430_v4, 0.0  ;;  %v433_v6 = vpop.f32.mrb[36].mxu0 }
 0x13c   :  { %v434_v8 = vadd.f32 %v433_v6, %v1965_v21  ;;  %v435_v9 = vpop.f32.mrb[37].mxu0 }
 0x13d   :  { %v436_v10 = vadd.f32 %v435_v9, %v1968_v1  ;;  %874 = vmatprep.mubr.f32.mxu1 %v551_v5 }
 0x13e   :  { %875 = vmatmul.mubr.f32.gmra.mrb[20].mxu1 %v550_v7  ;;  %v552_v13 = vmax.f32 %v434_v8, 0.0 }
 0x13f   :  { %v553_v11 = vmax.f32 %v436_v10, 0.0  ;;  %v439_v12 = vpop.f32.mrb[38].mxu0 }
 0x140   :  { %v440_v14 = vadd.f32 %v439_v12, %v1965_v21  ;;  %v441_v15 = vpop.f32.mrb[39].mxu0 }
 0x141   :  { %v442_v16 = vadd.f32 %v441_v15, %v1968_v1  ;;  %880 = vmatprep.mubr.f32.mxu1 %v553_v11 }
 0x142   :  { %881 = vmatmul.mubr.f32.gmra.mrb[22].mxu1 %v552_v13  ;;  %v554_v22 = vmax.f32 %v440_v14, 0.0 }
 0x143   :  { %v555_v17 = vmax.f32 %v442_v16, 0.0  ;;  %v445_v19 = vpop.f32.mrb[40].mxu0 }
 0x144   :  { %v446_v23 = vadd.f32 %v445_v19, %v1965_v21  ;;  %v447_v24 = vpop.f32.mrb[41].mxu0 }
 0x145   :  { %v448_v25 = vadd.f32 %v447_v24, %v1968_v1  ;;  %886 = vmatprep.mubr.f32.mxu1 %v555_v17 }
 0x146   :  { %887 = vmatmul.mubr.f32.gmra.mrb[24].mxu1 %v554_v22  ;;  %v556_v28 = vmax.f32 %v446_v23, 0.0 }
 0x147   :  { %v557_v26 = vmax.f32 %v448_v25, 0.0  ;;  %v451_v27 = vpop.f32.mrb[42].mxu0 }
 0x148   :  { %v452_v29 = vadd.f32 %v451_v27, %v1965_v21  ;;  %v453_v30 = vpop.f32.mrb[43].mxu0 }
 0x149   :  { %v454_v31 = vadd.f32 %v453_v30, %v1968_v1  ;;  %892 = vmatprep.mubr.f32.mxu1 %v557_v26 }
 0x14a   :  { %893 = vmatmul.mubr.f32.gmra.mrb[26].mxu1 %v556_v28  ;;  %v558_v34 = vmax.f32 %v452_v29, 0.0 }
 0x14b   :  { %v559_v32 = vmax.f32 %v454_v31, 0.0  ;;  %v457_v33 = vpop.f32.mrb[44].mxu0 }
 0x14c   :  { %v458_v35 = vadd.f32 %v457_v33, %v1965_v21  ;;  %v459_v36 = vpop.f32.mrb[45].mxu0 }
 0x14d   :  { %v460_v37 = vadd.f32 %v459_v36, %v1968_v1  ;;  %898 = vmatprep.mubr.f32.mxu1 %v559_v32 }
 0x14e   :  { %899 = vmatmul.mubr.f32.gmra.mrb[28].mxu1 %v558_v34  ;;  %v560_v40 = vmax.f32 %v458_v35, 0.0  ;;  %v1160_v34 = vld [vmem:[%s2346_s4] sm:$0x3] }
 0x14f   :  { %v561_v38 = vmax.f32 %v460_v37, 0.0  ;;  %v463_v39 = vpop.f32.mrb[46].mxu0  ;;  %v2038_v35 = vrot.slane %v1160_v34, %v1957_v18  ;;  %v2041_v36 = vrot.slane %v1160_v34, %v1962_v20 }
 0x150   :  { %v464_v41 = vadd.f32 %v463_v39, %v1965_v21  ;;  %v465_v42 = vpop.f32.mrb[47].mxu0 }
 0x151   :  { %v466_v43 = vadd.f32 %v465_v42, %v1968_v1  ;;  %904 = vmatprep.mubr.f32.mxu1 %v561_v38 }
 0x152   :  { %905 = vmatmul.mubr.f32.gmra.mrb[30].mxu1 %v560_v40  ;;  %v562_v46 = vmax.f32 %v464_v41, 0.0 }
 0x153   :  { %v563_v44 = vmax.f32 %v466_v43, 0.0  ;;  %v469_v45 = vpop.f32.mrb[48].mxu0 }
 0x154   :  { %v470_v47 = vadd.f32 %v469_v45, %v1965_v21  ;;  %v471_v48 = vpop.f32.mrb[49].mxu0 }
 0x155   :  { %v472_v49 = vadd.f32 %v471_v48, %v1968_v1  ;;  %910 = vmatprep.mubr.f32.mxu1 %v563_v44 }
 0x156   :  { %911 = vmatmul.mubr.f32.gmra.mrb[32].mxu1 %v562_v46  ;;  %v564_v52 = vmax.f32 %v470_v47, 0.0 }
 0x157   :  { %v565_v50 = vmax.f32 %v472_v49, 0.0  ;;  %v475_v51 = vpop.f32.mrb[50].mxu0 }
 0x158   :  { %v476_v53 = vadd.f32 %v475_v51, %v1965_v21  ;;  %v477_v54 = vpop.f32.mrb[51].mxu0 }
 0x159   :  { %v478_v55 = vadd.f32 %v477_v54, %v1968_v1  ;;  %916 = vmatprep.mubr.f32.mxu1 %v565_v50 }
 0x15a   :  { %917 = vmatmul.mubr.f32.gmra.mrb[34].mxu1 %v564_v52  ;;  %v566_v58 = vmax.f32 %v476_v53, 0.0 }
 0x15b   :  { %v567_v56 = vmax.f32 %v478_v55, 0.0  ;;  %v481_v57 = vpop.f32.mrb[52].mxu0 }
 0x15c   :  { %v482_v59 = vadd.f32 %v481_v57, %v1965_v21  ;;  %v483_v60 = vpop.f32.mrb[53].mxu0 }
 0x15d   :  { %v484_v61 = vadd.f32 %v483_v60, %v1968_v1  ;;  %922 = vmatprep.mubr.f32.mxu1 %v567_v56 }
 0x15e   :  { %923 = vmatmul.mubr.f32.gmra.mrb[36].mxu1 %v566_v58  ;;  %v568_v0 = vmax.f32 %v482_v59, 0.0 }
 0x15f   :  { %v569_v62 = vmax.f32 %v484_v61, 0.0  ;;  %v487_v63 = vpop.f32.mrb[54].mxu0 }
 0x160   :  { %v488_v2 = vadd.f32 %v487_v63, %v1965_v21  ;;  %v489_v3 = vpop.f32.mrb[55].mxu0 }
 0x161   :  { %v490_v4 = vadd.f32 %v489_v3, %v1968_v1  ;;  %928 = vmatprep.mubr.f32.mxu1 %v569_v62 }
 0x162   :  { %929 = vmatmul.mubr.f32.gmra.mrb[38].mxu1 %v568_v0  ;;  %v570_v7 = vmax.f32 %v488_v2, 0.0 }
 0x163   :  { %v571_v5 = vmax.f32 %v490_v4, 0.0  ;;  %v493_v6 = vpop.f32.mrb[56].mxu0 }
 0x164   :  { %v494_v8 = vadd.f32 %v493_v6, %v1965_v21  ;;  %v495_v9 = vpop.f32.mrb[57].mxu0 }
 0x165   :  { %v496_v10 = vadd.f32 %v495_v9, %v1968_v1  ;;  %934 = vmatprep.mubr.f32.mxu1 %v571_v5 }
 0x166   :  { %935 = vmatmul.mubr.f32.gmra.mrb[40].mxu1 %v570_v7  ;;  %v572_v13 = vmax.f32 %v494_v8, 0.0 }
 0x167   :  { %v573_v11 = vmax.f32 %v496_v10, 0.0  ;;  %v499_v12 = vpop.f32.mrb[58].mxu0 }
 0x168   :  { %v500_v14 = vadd.f32 %v499_v12, %v1965_v21  ;;  %v501_v15 = vpop.f32.mrb[59].mxu0 }
 0x169   :  { %v502_v16 = vadd.f32 %v501_v15, %v1968_v1  ;;  %940 = vmatprep.mubr.f32.mxu1 %v573_v11 }
 0x16a   :  { %941 = vmatmul.mubr.f32.gmra.mrb[42].mxu1 %v572_v13  ;;  %v574_v22 = vmax.f32 %v500_v14, 0.0 }
 0x16b   :  { %v575_v17 = vmax.f32 %v502_v16, 0.0  ;;  %v505_v19 = vpop.f32.mrb[60].mxu0 }
 0x16c   :  { %v506_v23 = vadd.f32 %v505_v19, %v1965_v21  ;;  %v507_v24 = vpop.f32.mrb[61].mxu0 }
 0x16d   :  { %v508_v25 = vadd.f32 %v507_v24, %v1968_v1  ;;  %946 = vmatprep.mubr.f32.mxu1 %v575_v17 }
 0x16e   :  { %947 = vmatmul.mubr.f32.gmra.mrb[44].mxu1 %v574_v22  ;;  %v576_v28 = vmax.f32 %v506_v23, 0.0 }
 0x16f   :  { %v577_v26 = vmax.f32 %v508_v25, 0.0  ;;  %v511_v27 = vpop.f32.mrb[62].mxu0 }
 0x170   :  { %v512_v29 = vadd.f32 %v511_v27, %v1965_v21  ;;  %v513_v30 = vpop.f32.mrb[63].mxu0  ;;  %v1300_v21 = vld [vmem:[%s2347_s5] sm:$0x3] }
 0x171   :  { %v514_v31 = vadd.f32 %v513_v30, %v1968_v1  ;;  %952 = vmatprep.mubr.f32.mxu1 %v577_v26  ;;  %v2048_v39 = vrot.slane %v1300_v21, %v1957_v18  ;;  %v2052_v41 = vrot.slane %v1300_v21, %v1962_v20 }
 0x172   :  { %953 = vmatmul.mubr.f32.gmra.mrb[46].mxu1 %v576_v28  ;;  %v578_v33 = vmax.f32 %v512_v29, 0.0 }
 0x173   :  { %v579_v32 = vmax.f32 %v514_v31, 0.0 }
 0x175   :  { %958 = vmatprep.mubr.f32.mxu1 %v579_v32 }
 0x176   :  { %959 = vmatmul.mubr.f32.gmra.mrb[48].mxu1 %v578_v33 }
 0x1cd   :  { %v774_v1 = vpop.f32.mrb[64].mxu0 }
 0x1ce   :  { %v1172_v37 = vadd.f32 %v2038_v35, %v774_v1  ;;  %v776_v38 = vpop.f32.mrb[65].mxu0 }
 0x1cf   :  { %v1173_v40 = vadd.f32 %v2041_v36, %v776_v38 }
 0x1d0   :  { %v1236_v42 = vmax.f32 %v1172_v37, 0.0 }
 0x1d1   :  { %v1237_v43 = vmax.f32 %v1173_v40, 0.0  ;;  %v780_v44 = vpop.f32.mrb[66].mxu0 }
 0x1d2   :  { %v1174_v45 = vadd.f32 %v2038_v35, %v780_v44  ;;  %v782_v46 = vpop.f32.mrb[67].mxu0  ;;  %v1312_v47 = vmul.f32 %v2048_v39, %v1236_v42 }
 0x1d3   :  { %v1175_v48 = vadd.f32 %v2041_v36, %v782_v46  ;;  %v1313_v49 = vmul.f32 %v2052_v41, %v1237_v43 }
 0x1d4   :  { %v1238_v50 = vmax.f32 %v1174_v45, 0.0 }
 0x1d5   :  { %v1239_v18 = vmax.f32 %v1175_v48, 0.0  ;;  %v786_v51 = vpop.f32.mrb[68].mxu0  ;;  %v1376_v52 = vadd.f32 %v1313_v49, %v1312_v47 }
 0x1d6   :  { %v1314_v53 = vmul.f32 %v2048_v39, %v1238_v50  ;;  %v1176_v20 = vadd.f32 %v2038_v35, %v786_v51  ;;  %v788_v54 = vpop.f32.mrb[69].mxu0 }
 0x1d7   :  { %v1315_v55 = vmul.f32 %v2052_v41, %v1239_v18  ;;  %v1177_v56 = vadd.f32 %v2041_v36, %v788_v54  ;;  %1377 = vadd.xlane.f32.xlu0 %v1376_v52 }
 0x1d8   :  { %v1240_v57 = vmax.f32 %v1176_v20, 0.0 }
 0x1d9   :  { %v1241_v58 = vmax.f32 %v1177_v56, 0.0  ;;  %v792_v59 = vpop.f32.mrb[70].mxu0  ;;  %v1379_v60 = vadd.f32 %v1315_v55, %v1314_v53 }
 0x1da   :  { %v1178_v61 = vadd.f32 %v2038_v35, %v792_v59  ;;  %v794_v62 = vpop.f32.mrb[71].mxu0  ;;  %v1316_v63 = vmul.f32 %v2048_v39, %v1240_v57 }
 0x1db   :  { %v1179_v0 = vadd.f32 %v2041_v36, %v794_v62  ;;  %1380 = vadd.xlane.f32.xlu0 %v1379_v60  ;;  %v1317_v2 = vmul.f32 %v2052_v41, %v1241_v58 }
 0x1dc   :  { %v1242_v3 = vmax.f32 %v1178_v61, 0.0 }
 0x1dd   :  { %v1243_v4 = vmax.f32 %v1179_v0, 0.0  ;;  %v798_v5 = vpop.f32.mrb[72].mxu0  ;;  %v1382_v6 = vadd.f32 %v1317_v2, %v1316_v63 }
 0x1de   :  { %v1318_v7 = vmul.f32 %v2048_v39, %v1242_v3  ;;  %v1180_v8 = vadd.f32 %v2038_v35, %v798_v5  ;;  %v800_v9 = vpop.f32.mrb[73].mxu0 }
 0x1df   :  { %v1319_v10 = vmul.f32 %v2052_v41, %v1243_v4  ;;  %v1181_v11 = vadd.f32 %v2041_v36, %v800_v9  ;;  %1383 = vadd.xlane.f32.xlu1 %v1382_v6 }
 0x1e0   :  { %v1244_v12 = vmax.f32 %v1180_v8, 0.0 }
 0x1e1   :  { %v1245_v13 = vmax.f32 %v1181_v11, 0.0  ;;  %v804_v14 = vpop.f32.mrb[74].mxu0  ;;  %v1385_v15 = vadd.f32 %v1319_v10, %v1318_v7 }
 0x1e2   :  { %v1320_v16 = vmul.f32 %v2048_v39, %v1244_v12  ;;  %v1182_v17 = vadd.f32 %v2038_v35, %v804_v14  ;;  %v806_v19 = vpop.f32.mrb[75].mxu0 }
 0x1e3   :  { %v1321_v22 = vmul.f32 %v2052_v41, %v1245_v13  ;;  %v1183_v23 = vadd.f32 %v2041_v36, %v806_v19  ;;  %1386 = vadd.xlane.f32.xlu1 %v1385_v15 }
 0x1e4   :  { %v1246_v24 = vmax.f32 %v1182_v17, 0.0 }
 0x1e5   :  { %v1247_v25 = vmax.f32 %v1183_v23, 0.0  ;;  %v810_v26 = vpop.f32.mrb[76].mxu0  ;;  %v1388_v27 = vadd.f32 %v1321_v22, %v1320_v16 }
 0x1e6   :  { %v1322_v28 = vmul.f32 %v2048_v39, %v1246_v24  ;;  %v1184_v29 = vadd.f32 %v2038_v35, %v810_v26  ;;  %v812_v30 = vpop.f32.mrb[77].mxu0 }
 0x1e7   :  { %v1323_v31 = vmul.f32 %v2052_v41, %v1247_v25  ;;  %v1185_v32 = vadd.f32 %v2041_v36, %v812_v30  ;;  %1389 = vadd.xlane.f32.xlu0 %v1388_v27 }
 0x1e8   :  { %v1248_v33 = vmax.f32 %v1184_v29, 0.0 }
 0x1e9   :  { %v1249_v34 = vmax.f32 %v1185_v32, 0.0  ;;  %v816_v21 = vpop.f32.mrb[0].mxu1  ;;  %v1391_v1 = vadd.f32 %v1323_v31, %v1322_v28 }
 0x1ea   :  { %v1324_v37 = vmul.f32 %v2048_v39, %v1248_v33  ;;  %v1186_v38 = vadd.f32 %v2038_v35, %v816_v21  ;;  %v818_v40 = vpop.f32.mrb[1].mxu1 }
 0x1eb   :  { %v1325_v42 = vmul.f32 %v2052_v41, %v1249_v34  ;;  %v1187_v43 = vadd.f32 %v2041_v36, %v818_v40  ;;  %1392 = vadd.xlane.f32.xlu1 %v1391_v1 }
 0x1ec   :  { %v1250_v44 = vmax.f32 %v1186_v38, 0.0 }
 0x1ed   :  { %v1251_v45 = vmax.f32 %v1187_v43, 0.0  ;;  %v822_v46 = vpop.f32.mrb[2].mxu1  ;;  %v1394_v47 = vadd.f32 %v1325_v42, %v1324_v37 }
 0x1ee   :  { %v1326_v48 = vmul.f32 %v2048_v39, %v1250_v44  ;;  %v1188_v49 = vadd.f32 %v2038_v35, %v822_v46  ;;  %v824_v50 = vpop.f32.mrb[3].mxu1 }
 0x1ef   :  { %v1327_v18 = vmul.f32 %v2052_v41, %v1251_v45  ;;  %v1189_v51 = vadd.f32 %v2041_v36, %v824_v50  ;;  %1395 = vadd.xlane.f32.xlu0 %v1394_v47 }
 0x1f0   :  { %v1252_v52 = vmax.f32 %v1188_v49, 0.0 }
 0x1f1   :  { %v1253_v53 = vmax.f32 %v1189_v51, 0.0  ;;  %v828_v20 = vpop.f32.mrb[4].mxu1  ;;  %v1397_v54 = vadd.f32 %v1327_v18, %v1326_v48 }
 0x1f2   :  { %v1328_v55 = vmul.f32 %v2048_v39, %v1252_v52  ;;  %v1190_v56 = vadd.f32 %v2038_v35, %v828_v20  ;;  %v830_v57 = vpop.f32.mrb[5].mxu1 }
 0x1f3   :  { %v1329_v58 = vmul.f32 %v2052_v41, %v1253_v53  ;;  %v1191_v59 = vadd.f32 %v2041_v36, %v830_v57  ;;  %1398 = vadd.xlane.f32.xlu1 %v1397_v54 }
 0x1f4   :  { %v1254_v60 = vmax.f32 %v1190_v56, 0.0 }
 0x1f5   :  { %v1255_v61 = vmax.f32 %v1191_v59, 0.0  ;;  %v834_v62 = vpop.f32.mrb[6].mxu1  ;;  %v1400_v63 = vadd.f32 %v1329_v58, %v1328_v55 }
 0x1f6   :  { %v1330_v0 = vmul.f32 %v2048_v39, %v1254_v60  ;;  %v1192_v2 = vadd.f32 %v2038_v35, %v834_v62  ;;  %v836_v3 = vpop.f32.mrb[7].mxu1 }
 0x1f7   :  { %v1331_v4 = vmul.f32 %v2052_v41, %v1255_v61  ;;  %v1193_v5 = vadd.f32 %v2041_v36, %v836_v3  ;;  %1401 = vadd.xlane.f32.xlu0 %v1400_v63 }
 0x1f8   :  { %v1256_v6 = vmax.f32 %v1192_v2, 0.0 }
 0x1f9   :  { %v1257_v7 = vmax.f32 %v1193_v5, 0.0  ;;  %v840_v8 = vpop.f32.mrb[8].mxu1  ;;  %v1403_v9 = vadd.f32 %v1331_v4, %v1330_v0 }
 0x1fa   :  { %v1332_v10 = vmul.f32 %v2048_v39, %v1256_v6  ;;  %v1194_v11 = vadd.f32 %v2038_v35, %v840_v8  ;;  %v842_v12 = vpop.f32.mrb[9].mxu1 }
 0x1fb   :  { %v1333_v13 = vmul.f32 %v2052_v41, %v1257_v7  ;;  %v1195_v14 = vadd.f32 %v2041_v36, %v842_v12  ;;  %1404 = vadd.xlane.f32.xlu1 %v1403_v9 }
 0x1fc   :  { %v1258_v15 = vmax.f32 %v1194_v11, 0.0 }
 0x1fd   :  { %v1259_v16 = vmax.f32 %v1195_v14, 0.0  ;;  %v846_v17 = vpop.f32.mrb[10].mxu1  ;;  %v1406_v19 = vadd.f32 %v1333_v13, %v1332_v10 }
 0x1fe   :  { %v1334_v22 = vmul.f32 %v2048_v39, %v1258_v15  ;;  %v1196_v23 = vadd.f32 %v2038_v35, %v846_v17  ;;  %v848_v24 = vpop.f32.mrb[11].mxu1 }
 0x1ff   :  { %v1335_v25 = vmul.f32 %v2052_v41, %v1259_v16  ;;  %v1197_v26 = vadd.f32 %v2041_v36, %v848_v24  ;;  %1407 = vadd.xlane.f32.xlu0 %v1406_v19 }
 0x200   :  { %v1260_v27 = vmax.f32 %v1196_v23, 0.0 }
 0x201   :  { %v1261_v28 = vmax.f32 %v1197_v26, 0.0  ;;  %v852_v29 = vpop.f32.mrb[12].mxu1  ;;  %v1409_v30 = vadd.f32 %v1335_v25, %v1334_v22 }
 0x202   :  { %v1336_v31 = vmul.f32 %v2048_v39, %v1260_v27  ;;  %v1198_v32 = vadd.f32 %v2038_v35, %v852_v29  ;;  %v854_v33 = vpop.f32.mrb[13].mxu1 }
 0x203   :  { %v1337_v34 = vmul.f32 %v2052_v41, %v1261_v28  ;;  %v1199_v21 = vadd.f32 %v2041_v36, %v854_v33  ;;  %1410 = vadd.xlane.f32.xlu1 %v1409_v30 }
 0x204   :  { %v1262_v1 = vmax.f32 %v1198_v32, 0.0 }
 0x205   :  { %v1263_v37 = vmax.f32 %v1199_v21, 0.0  ;;  %v858_v38 = vpop.f32.mrb[14].mxu1  ;;  %v1412_v40 = vadd.f32 %v1337_v34, %v1336_v31 }
 0x206   :  { %v1338_v42 = vmul.f32 %v2048_v39, %v1262_v1  ;;  %v1200_v43 = vadd.f32 %v2038_v35, %v858_v38  ;;  %v860_v44 = vpop.f32.mrb[15].mxu1 }
 0x207   :  { %v1339_v45 = vmul.f32 %v2052_v41, %v1263_v37  ;;  %v1201_v46 = vadd.f32 %v2041_v36, %v860_v44  ;;  %1413 = vadd.xlane.f32.xlu0 %v1412_v40 }
 0x208   :  { %v1264_v47 = vmax.f32 %v1200_v43, 0.0 }
 0x209   :  { %v1265_v48 = vmax.f32 %v1201_v46, 0.0  ;;  %v864_v49 = vpop.f32.mrb[16].mxu1  ;;  %v1415_v50 = vadd.f32 %v1339_v45, %v1338_v42 }
 0x20a   :  { %v1340_v18 = vmul.f32 %v2048_v39, %v1264_v47  ;;  %v1202_v51 = vadd.f32 %v2038_v35, %v864_v49  ;;  %v866_v52 = vpop.f32.mrb[17].mxu1 }
 0x20b   :  { %v1341_v53 = vmul.f32 %v2052_v41, %v1265_v48  ;;  %v1203_v20 = vadd.f32 %v2041_v36, %v866_v52  ;;  %1416 = vadd.xlane.f32.xlu1 %v1415_v50 }
 0x20c   :  { %v1266_v54 = vmax.f32 %v1202_v51, 0.0 }
 0x20d   :  { %v1267_v55 = vmax.f32 %v1203_v20, 0.0  ;;  %v870_v56 = vpop.f32.mrb[18].mxu1  ;;  %v1418_v57 = vadd.f32 %v1341_v53, %v1340_v18 }
 0x20e   :  { %v1342_v58 = vmul.f32 %v2048_v39, %v1266_v54  ;;  %v1204_v59 = vadd.f32 %v2038_v35, %v870_v56  ;;  %v872_v60 = vpop.f32.mrb[19].mxu1 }
 0x20f   :  { %v1343_v61 = vmul.f32 %v2052_v41, %v1267_v55  ;;  %v1205_v62 = vadd.f32 %v2041_v36, %v872_v60  ;;  %1419 = vadd.xlane.f32.xlu0 %v1418_v57 }
 0x210   :  { %v1268_v63 = vmax.f32 %v1204_v59, 0.0 }
 0x211   :  { %v1269_v0 = vmax.f32 %v1205_v62, 0.0  ;;  %v876_v2 = vpop.f32.mrb[20].mxu1  ;;  %v1421_v3 = vadd.f32 %v1343_v61, %v1342_v58 }
 0x212   :  { %v1344_v4 = vmul.f32 %v2048_v39, %v1268_v63  ;;  %v1206_v5 = vadd.f32 %v2038_v35, %v876_v2  ;;  %v878_v6 = vpop.f32.mrb[21].mxu1 }
 0x213   :  { %v1345_v7 = vmul.f32 %v2052_v41, %v1269_v0  ;;  %v1207_v8 = vadd.f32 %v2041_v36, %v878_v6  ;;  %1422 = vadd.xlane.f32.xlu1 %v1421_v3 }
 0x214   :  { %v1270_v9 = vmax.f32 %v1206_v5, 0.0 }
 0x215   :  { %v1271_v10 = vmax.f32 %v1207_v8, 0.0  ;;  %v882_v11 = vpop.f32.mrb[22].mxu1  ;;  %v1424_v12 = vadd.f32 %v1345_v7, %v1344_v4 }
 0x216   :  { %v1346_v13 = vmul.f32 %v2048_v39, %v1270_v9  ;;  %v1208_v14 = vadd.f32 %v2038_v35, %v882_v11  ;;  %v884_v15 = vpop.f32.mrb[23].mxu1 }
 0x217   :  { %v1347_v16 = vmul.f32 %v2052_v41, %v1271_v10  ;;  %v1209_v17 = vadd.f32 %v2041_v36, %v884_v15  ;;  %1425 = vadd.xlane.f32.xlu0 %v1424_v12 }
 0x218   :  { %v1272_v19 = vmax.f32 %v1208_v14, 0.0 }
 0x219   :  { %v1273_v22 = vmax.f32 %v1209_v17, 0.0  ;;  %v888_v23 = vpop.f32.mrb[24].mxu1  ;;  %v1427_v24 = vadd.f32 %v1347_v16, %v1346_v13 }
 0x21a   :  { %v1348_v25 = vmul.f32 %v2048_v39, %v1272_v19  ;;  %v1210_v26 = vadd.f32 %v2038_v35, %v888_v23  ;;  %v890_v27 = vpop.f32.mrb[25].mxu1 }
 0x21b   :  { %v1349_v28 = vmul.f32 %v2052_v41, %v1273_v22  ;;  %v1211_v29 = vadd.f32 %v2041_v36, %v890_v27  ;;  %1428 = vadd.xlane.f32.xlu1 %v1427_v24 }
 0x21c   :  { %v1274_v30 = vmax.f32 %v1210_v26, 0.0 }
 0x21d   :  { %v1275_v31 = vmax.f32 %v1211_v29, 0.0  ;;  %v894_v32 = vpop.f32.mrb[26].mxu1  ;;  %v1430_v33 = vadd.f32 %v1349_v28, %v1348_v25 }
 0x21e   :  { %v1350_v34 = vmul.f32 %v2048_v39, %v1274_v30  ;;  %v1212_v21 = vadd.f32 %v2038_v35, %v894_v32  ;;  %v896_v1 = vpop.f32.mrb[27].mxu1 }
 0x21f   :  { %v1351_v37 = vmul.f32 %v2052_v41, %v1275_v31  ;;  %v1213_v38 = vadd.f32 %v2041_v36, %v896_v1  ;;  %1431 = vadd.xlane.f32.xlu0 %v1430_v33 }
 0x220   :  { %v1276_v40 = vmax.f32 %v1212_v21, 0.0 }
 0x221   :  { %v1277_v42 = vmax.f32 %v1213_v38, 0.0  ;;  %v900_v43 = vpop.f32.mrb[28].mxu1  ;;  %v1433_v44 = vadd.f32 %v1351_v37, %v1350_v34 }
 0x222   :  { %v1352_v45 = vmul.f32 %v2048_v39, %v1276_v40  ;;  %v1214_v46 = vadd.f32 %v2038_v35, %v900_v43  ;;  %v902_v47 = vpop.f32.mrb[29].mxu1 }
 0x223   :  { %v1353_v48 = vmul.f32 %v2052_v41, %v1277_v42  ;;  %v1215_v49 = vadd.f32 %v2041_v36, %v902_v47  ;;  %1434 = vadd.xlane.f32.xlu1 %v1433_v44 }
 0x224   :  { %v1278_v50 = vmax.f32 %v1214_v46, 0.0 }
 0x225   :  { %v1279_v18 = vmax.f32 %v1215_v49, 0.0  ;;  %v906_v51 = vpop.f32.mrb[30].mxu1  ;;  %v1436_v52 = vadd.f32 %v1353_v48, %v1352_v45 }
 0x226   :  { %v1354_v53 = vmul.f32 %v2048_v39, %v1278_v50  ;;  %v1216_v20 = vadd.f32 %v2038_v35, %v906_v51  ;;  %v908_v54 = vpop.f32.mrb[31].mxu1 }
 0x227   :  { %v1355_v55 = vmul.f32 %v2052_v41, %v1279_v18  ;;  %v1217_v56 = vadd.f32 %v2041_v36, %v908_v54  ;;  %1437 = vadd.xlane.f32.xlu0 %v1436_v52 }
 0x228   :  { %v1280_v57 = vmax.f32 %v1216_v20, 0.0 }
 0x229   :  { %v1281_v58 = vmax.f32 %v1217_v56, 0.0  ;;  %v912_v59 = vpop.f32.mrb[32].mxu1  ;;  %v1439_v60 = vadd.f32 %v1355_v55, %v1354_v53 }
 0x22a   :  { %v1356_v61 = vmul.f32 %v2048_v39, %v1280_v57  ;;  %v1218_v62 = vadd.f32 %v2038_v35, %v912_v59  ;;  %v914_v63 = vpop.f32.mrb[33].mxu1 }
 0x22b   :  { %v1357_v0 = vmul.f32 %v2052_v41, %v1281_v58  ;;  %v1219_v2 = vadd.f32 %v2041_v36, %v914_v63  ;;  %1440 = vadd.xlane.f32.xlu1 %v1439_v60 }
 0x22c   :  { %v1282_v3 = vmax.f32 %v1218_v62, 0.0 }
 0x22d   :  { %v1283_v4 = vmax.f32 %v1219_v2, 0.0  ;;  %v918_v5 = vpop.f32.mrb[34].mxu1  ;;  %v1442_v6 = vadd.f32 %v1357_v0, %v1356_v61 }
 0x22e   :  { %v1358_v7 = vmul.f32 %v2048_v39, %v1282_v3  ;;  %v1220_v8 = vadd.f32 %v2038_v35, %v918_v5  ;;  %v920_v9 = vpop.f32.mrb[35].mxu1 }
 0x22f   :  { %v1359_v10 = vmul.f32 %v2052_v41, %v1283_v4  ;;  %v1221_v11 = vadd.f32 %v2041_v36, %v920_v9  ;;  %1443 = vadd.xlane.f32.xlu0 %v1442_v6 }
 0x230   :  { %v1284_v12 = vmax.f32 %v1220_v8, 0.0 }
 0x231   :  { %v1285_v13 = vmax.f32 %v1221_v11, 0.0  ;;  %v924_v14 = vpop.f32.mrb[36].mxu1  ;;  %v1445_v15 = vadd.f32 %v1359_v10, %v1358_v7 }
 0x232   :  { %v1360_v16 = vmul.f32 %v2048_v39, %v1284_v12  ;;  %v1222_v17 = vadd.f32 %v2038_v35, %v924_v14  ;;  %v926_v19 = vpop.f32.mrb[37].mxu1 }
 0x233   :  { %v1361_v22 = vmul.f32 %v2052_v41, %v1285_v13  ;;  %v1223_v23 = vadd.f32 %v2041_v36, %v926_v19  ;;  %1446 = vadd.xlane.f32.xlu1 %v1445_v15 }
 0x234   :  { %v1286_v24 = vmax.f32 %v1222_v17, 0.0 }
 0x235   :  { %v1287_v25 = vmax.f32 %v1223_v23, 0.0  ;;  %v930_v26 = vpop.f32.mrb[38].mxu1  ;;  %v1448_v27 = vadd.f32 %v1361_v22, %v1360_v16 }
 0x236   :  { %v1362_v28 = vmul.f32 %v2048_v39, %v1286_v24  ;;  %v1224_v29 = vadd.f32 %v2038_v35, %v930_v26  ;;  %v932_v30 = vpop.f32.mrb[39].mxu1  ;;  %v2180_v24 = vld [vmem:[#allocation3] ss:$0 sm:$0xff] }
 0x237   :  { %v1363_v31 = vmul.f32 %v2052_v41, %v1287_v25  ;;  %v1225_v32 = vadd.f32 %v2041_v36, %v932_v30  ;;  %1449 = vadd.xlane.f32.xlu0 %v1448_v27 }
 0x238   :  { %v1288_v33 = vmax.f32 %v1224_v29, 0.0 }
 0x239   :  { %v1289_v34 = vmax.f32 %v1225_v32, 0.0  ;;  %v936_v21 = vpop.f32.mrb[40].mxu1  ;;  %v1451_v1 = vadd.f32 %v1363_v31, %v1362_v28 }
 0x23a   :  { %v1364_v37 = vmul.f32 %v2048_v39, %v1288_v33  ;;  %v1226_v38 = vadd.f32 %v2038_v35, %v936_v21  ;;  %v938_v40 = vpop.f32.mrb[41].mxu1 }
 0x23b   :  { %v1365_v42 = vmul.f32 %v2052_v41, %v1289_v34  ;;  %v1227_v43 = vadd.f32 %v2041_v36, %v938_v40  ;;  %1452 = vadd.xlane.f32.xlu1 %v1451_v1 }
 0x23c   :  { %v1290_v44 = vmax.f32 %v1226_v38, 0.0 }
 0x23d   :  { %v1291_v45 = vmax.f32 %v1227_v43, 0.0  ;;  %v942_v46 = vpop.f32.mrb[42].mxu1  ;;  %v1454_v47 = vadd.f32 %v1365_v42, %v1364_v37 }
 0x23e   :  { %v1366_v48 = vmul.f32 %v2048_v39, %v1290_v44  ;;  %v1228_v49 = vadd.f32 %v2038_v35, %v942_v46  ;;  %v944_v50 = vpop.f32.mrb[43].mxu1 }
 0x23f   :  { %v1367_v18 = vmul.f32 %v2052_v41, %v1291_v45  ;;  %v1229_v51 = vadd.f32 %v2041_v36, %v944_v50  ;;  %1455 = vadd.xlane.f32.xlu0 %v1454_v47 }
 0x240   :  { %v1292_v52 = vmax.f32 %v1228_v49, 0.0 }
 0x241   :  { %v1293_v53 = vmax.f32 %v1229_v51, 0.0  ;;  %v948_v20 = vpop.f32.mrb[44].mxu1  ;;  %v1457_v54 = vadd.f32 %v1367_v18, %v1366_v48 }
 0x242   :  { %v1368_v55 = vmul.f32 %v2048_v39, %v1292_v52  ;;  %v1230_v56 = vadd.f32 %v2038_v35, %v948_v20  ;;  %v950_v57 = vpop.f32.mrb[45].mxu1 }
 0x243   :  { %v1369_v58 = vmul.f32 %v2052_v41, %v1293_v53  ;;  %v1231_v59 = vadd.f32 %v2041_v36, %v950_v57  ;;  %1458 = vadd.xlane.f32.xlu1 %v1457_v54 }
 0x244   :  { %v1294_v60 = vmax.f32 %v1230_v56, 0.0 }
 0x245   :  { %v1295_v61 = vmax.f32 %v1231_v59, 0.0  ;;  %v954_v62 = vpop.f32.mrb[46].mxu1  ;;  %v1460_v63 = vadd.f32 %v1369_v58, %v1368_v55 }
 0x246   :  { %v1370_v0 = vmul.f32 %v2048_v39, %v1294_v60  ;;  %v1232_v2 = vadd.f32 %v2038_v35, %v954_v62  ;;  %v956_v3 = vpop.f32.mrb[47].mxu1 }
 0x247   :  { %v1371_v4 = vmul.f32 %v2052_v41, %v1295_v61  ;;  %v1233_v5 = vadd.f32 %v2041_v36, %v956_v3  ;;  %1461 = vadd.xlane.f32.xlu0 %v1460_v63 }
 0x248   :  { %v1296_v6 = vmax.f32 %v1232_v2, 0.0 }
 0x249   :  { %v1297_v7 = vmax.f32 %v1233_v5, 0.0  ;;  %v960_v8 = vpop.f32.mrb[48].mxu1  ;;  %v1463_v9 = vadd.f32 %v1371_v4, %v1370_v0 }
 0x24a   :  { %v1372_v10 = vmul.f32 %v2048_v39, %v1296_v6  ;;  %v1234_v11 = vadd.f32 %v2038_v35, %v960_v8  ;;  %v962_v12 = vpop.f32.mrb[49].mxu1 }
 0x24b   :  { %v1373_v13 = vmul.f32 %v2052_v41, %v1297_v7  ;;  %v1235_v14 = vadd.f32 %v2041_v36, %v962_v12  ;;  %1464 = vadd.xlane.f32.xlu1 %v1463_v9 }
 0x24c   :  { %v1298_v15 = vmax.f32 %v1234_v11, 0.0 }
 0x24d   :  { %v1299_v16 = vmax.f32 %v1235_v14, 0.0  ;;  %v1466_v17 = vadd.f32 %v1373_v13, %v1372_v10 }
 0x24e   :  { %v1374_v19 = vmul.f32 %v2048_v39, %v1298_v15 }
 0x24f   :  { %v1375_v22 = vmul.f32 %v2052_v41, %v1299_v16  ;;  %1467 = vadd.xlane.f32.xlu0 %v1466_v17 }
 0x251   :  { %v1469_v23 = vadd.f32 %v1375_v22, %v1374_v19 }
 0x253   :  { %1470 = vadd.xlane.f32.xlu1 %v1469_v23 }
 0x264   :  { %v1378_v35 = vpop.xlane.xlu0 %1377 }
 0x265   :  { %v1479_v25 = vadd.f32 %v2180_v24, %v1378_v35 }
 0x267   :  { %1512 = vst.msk [vmem:[%s2349_s7] sm:$0xff] %vm1511_vm1, %v1479_v25 }
 0x268   :  { %v1381_v36 = vpop.xlane.xlu0 %1380 }
 0x269   :  { %v1480_v26 = vadd.f32 %v2180_v24, %v1381_v36 }
 0x26b   :  { %1513 = vst.msk [vmem:[%s2349_s7 + $0x8] sm:$0xff] %vm1511_vm1, %v1480_v26 }
 0x26c   :  { %v1384_v39 = vpop.xlane.xlu1 %1383 }
 0x26d   :  { %v1481_v41 = vadd.f32 %v2180_v24, %v1384_v39 }
 0x26f   :  { %1514 = vst.msk [vmem:[%s2349_s7 + $0x10] sm:$0xff] %vm1511_vm1, %v1481_v41 }
 0x270   :  { %v1387_v27 = vpop.xlane.xlu1 %1386 }
 0x271   :  { %v1482_v28 = vadd.f32 %v2180_v24, %v1387_v27 }
 0x273   :  { %1515 = vst.msk [vmem:[%s2349_s7 + $0x18] sm:$0xff] %vm1511_vm1, %v1482_v28 }
 0x274   :  { %v1390_v29 = vpop.xlane.xlu0 %1389 }
 0x275   :  { %v1483_v30 = vadd.f32 %v2180_v24, %v1390_v29 }
 0x277   :  { %1516 = vst.msk [vmem:[%s2349_s7 + $0x20] sm:$0xff] %vm1511_vm1, %v1483_v30 }
 0x278   :  { %v1393_v31 = vpop.xlane.xlu1 %1392 }
 0x279   :  { %v1484_v32 = vadd.f32 %v2180_v24, %v1393_v31 }
 0x27b   :  { %1517 = vst.msk [vmem:[%s2349_s7 + $0x28] sm:$0xff] %vm1511_vm1, %v1484_v32 }
 0x27c   :  { %v1396_v33 = vpop.xlane.xlu0 %1395 }
 0x27d   :  { %v1485_v34 = vadd.f32 %v2180_v24, %v1396_v33 }
 0x27f   :  { %1518 = vst.msk [vmem:[%s2349_s7 + $0x30] sm:$0xff] %vm1511_vm1, %v1485_v34 }
 0x280   :  { %v1399_v21 = vpop.xlane.xlu1 %1398 }
 0x281   :  { %v1486_v1 = vadd.f32 %v2180_v24, %v1399_v21 }
 0x283   :  { %1519 = vst.msk [vmem:[%s2349_s7 + $0x38] sm:$0xff] %vm1511_vm1, %v1486_v1 }
 0x284   :  { %v1402_v37 = vpop.xlane.xlu0 %1401 }
 0x285   :  { %v1487_v38 = vadd.f32 %v2180_v24, %v1402_v37 }
 0x287   :  { %1520 = vst.msk [vmem:[%s2349_s7 + $0x40] sm:$0xff] %vm1511_vm1, %v1487_v38 }
 0x288   :  { %v1405_v40 = vpop.xlane.xlu1 %1404 }
 0x289   :  { %v1488_v42 = vadd.f32 %v2180_v24, %v1405_v40 }
 0x28b   :  { %1521 = vst.msk [vmem:[%s2349_s7 + $0x48] sm:$0xff] %vm1511_vm1, %v1488_v42 }
 0x28c   :  { %v1408_v43 = vpop.xlane.xlu0 %1407 }
 0x28d   :  { %v1489_v44 = vadd.f32 %v2180_v24, %v1408_v43 }
 0x28f   :  { %1522 = vst.msk [vmem:[%s2349_s7 + $0x50] sm:$0xff] %vm1511_vm1, %v1489_v44 }
 0x290   :  { %v1411_v45 = vpop.xlane.xlu1 %1410 }
 0x291   :  { %v1490_v46 = vadd.f32 %v2180_v24, %v1411_v45 }
 0x293   :  { %1523 = vst.msk [vmem:[%s2349_s7 + $0x58] sm:$0xff] %vm1511_vm1, %v1490_v46 }
 0x294   :  { %v1414_v47 = vpop.xlane.xlu0 %1413 }
 0x295   :  { %v1491_v48 = vadd.f32 %v2180_v24, %v1414_v47 }
 0x297   :  { %1524 = vst.msk [vmem:[%s2349_s7 + $0x60] sm:$0xff] %vm1511_vm1, %v1491_v48 }
 0x298   :  { %v1417_v49 = vpop.xlane.xlu1 %1416 }
 0x299   :  { %v1492_v50 = vadd.f32 %v2180_v24, %v1417_v49 }
 0x29b   :  { %1525 = vst.msk [vmem:[%s2349_s7 + $0x68] sm:$0xff] %vm1511_vm1, %v1492_v50 }
 0x29c   :  { %v1420_v18 = vpop.xlane.xlu0 %1419 }
 0x29d   :  { %v1493_v51 = vadd.f32 %v2180_v24, %v1420_v18 }
 0x29f   :  { %1526 = vst.msk [vmem:[%s2349_s7 + $0x70] sm:$0xff] %vm1511_vm1, %v1493_v51 }
 0x2a0   :  { %v1423_v52 = vpop.xlane.xlu1 %1422 }
 0x2a1   :  { %v1494_v53 = vadd.f32 %v2180_v24, %v1423_v52 }
 0x2a3   :  { %1527 = vst.msk [vmem:[%s2349_s7 + $0x78] sm:$0xff] %vm1511_vm1, %v1494_v53 }
 0x2a4   :  { %v1426_v20 = vpop.xlane.xlu0 %1425 }
 0x2a5   :  { %v1495_v54 = vadd.f32 %v2180_v24, %v1426_v20 }
 0x2a7   :  { %1528 = vst.msk [vmem:[%s2349_s7 + $0x80] sm:$0xff] %vm1511_vm1, %v1495_v54 }
 0x2a8   :  { %v1429_v55 = vpop.xlane.xlu1 %1428 }
 0x2a9   :  { %v1496_v56 = vadd.f32 %v2180_v24, %v1429_v55 }
 0x2ab   :  { %1529 = vst.msk [vmem:[%s2349_s7 + $0x88] sm:$0xff] %vm1511_vm1, %v1496_v56 }
 0x2ac   :  { %v1432_v57 = vpop.xlane.xlu0 %1431 }
 0x2ad   :  { %v1497_v58 = vadd.f32 %v2180_v24, %v1432_v57 }
 0x2af   :  { %1530 = vst.msk [vmem:[%s2349_s7 + $0x90] sm:$0xff] %vm1511_vm1, %v1497_v58 }
 0x2b0   :  { %v1435_v59 = vpop.xlane.xlu1 %1434 }
 0x2b1   :  { %v1498_v60 = vadd.f32 %v2180_v24, %v1435_v59 }
 0x2b3   :  { %1531 = vst.msk [vmem:[%s2349_s7 + $0x98] sm:$0xff] %vm1511_vm1, %v1498_v60 }
 0x2b4   :  { %v1438_v61 = vpop.xlane.xlu0 %1437 }
 0x2b5   :  { %v1499_v62 = vadd.f32 %v2180_v24, %v1438_v61 }
 0x2b7   :  { %1532 = vst.msk [vmem:[%s2349_s7 + $0xa0] sm:$0xff] %vm1511_vm1, %v1499_v62 }
 0x2b8   :  { %v1441_v63 = vpop.xlane.xlu1 %1440 }
 0x2b9   :  { %v1500_v0 = vadd.f32 %v2180_v24, %v1441_v63 }
 0x2bb   :  { %1533 = vst.msk [vmem:[%s2349_s7 + $0xa8] sm:$0xff] %vm1511_vm1, %v1500_v0 }
 0x2bc   :  { %v1444_v2 = vpop.xlane.xlu0 %1443 }
 0x2bd   :  { %v1501_v3 = vadd.f32 %v2180_v24, %v1444_v2 }
 0x2bf   :  { %1534 = vst.msk [vmem:[%s2349_s7 + $0xb0] sm:$0xff] %vm1511_vm1, %v1501_v3 }
 0x2c0   :  { %v1447_v4 = vpop.xlane.xlu1 %1446 }
 0x2c1   :  { %v1502_v5 = vadd.f32 %v2180_v24, %v1447_v4 }
 0x2c3   :  { %1535 = vst.msk [vmem:[%s2349_s7 + $0xb8] sm:$0xff] %vm1511_vm1, %v1502_v5 }
 0x2c4   :  { %v1450_v6 = vpop.xlane.xlu0 %1449 }
 0x2c5   :  { %v1503_v7 = vadd.f32 %v2180_v24, %v1450_v6 }
 0x2c7   :  { %1536 = vst.msk [vmem:[%s2349_s7 + $0xc0] sm:$0xff] %vm1511_vm1, %v1503_v7 }
 0x2c8   :  { %v1453_v8 = vpop.xlane.xlu1 %1452 }
 0x2c9   :  { %v1504_v9 = vadd.f32 %v2180_v24, %v1453_v8 }
 0x2cb   :  { %1537 = vst.msk [vmem:[%s2349_s7 + $0xc8] sm:$0xff] %vm1511_vm1, %v1504_v9 }
 0x2cc   :  { %v1456_v10 = vpop.xlane.xlu0 %1455 }
 0x2cd   :  { %v1505_v11 = vadd.f32 %v2180_v24, %v1456_v10 }
 0x2cf   :  { %1538 = vst.msk [vmem:[%s2349_s7 + $0xd0] sm:$0xff] %vm1511_vm1, %v1505_v11 }
 0x2d0   :  { %v1459_v12 = vpop.xlane.xlu1 %1458 }
 0x2d1   :  { %v1506_v13 = vadd.f32 %v2180_v24, %v1459_v12 }
 0x2d3   :  { %1539 = vst.msk [vmem:[%s2349_s7 + $0xd8] sm:$0xff] %vm1511_vm1, %v1506_v13 }
 0x2d4   :  { %v1462_v14 = vpop.xlane.xlu0 %1461 }
 0x2d5   :  { %v1507_v15 = vadd.f32 %v2180_v24, %v1462_v14 }
 0x2d7   :  { %1540 = vst.msk [vmem:[%s2349_s7 + $0xe0] sm:$0xff] %vm1511_vm1, %v1507_v15 }
 0x2d8   :  { %v1465_v16 = vpop.xlane.xlu1 %1464 }
 0x2d9   :  { %v1508_v17 = vadd.f32 %v2180_v24, %v1465_v16 }
 0x2db   :  { %1541 = vst.msk [vmem:[%s2349_s7 + $0xe8] sm:$0xff] %vm1511_vm1, %v1508_v17 }
 0x2dc   :  { %v1468_v19 = vpop.xlane.xlu0 %1467 }
 0x2dd   :  { %v1509_v22 = vadd.f32 %v2180_v24, %v1468_v19 }
 0x2df   :  { %1542 = vst.msk [vmem:[%s2349_s7 + $0xf0] sm:$0xff] %vm1511_vm1, %v1509_v22 }
 0x2e0   :  { %v1471_v23 = vpop.xlane.xlu1 %1470 }
 0x2e1   :  { %v1510_v35 = vadd.f32 %v2180_v24, %v1471_v23 }
 0x2e3   :  { %1543 = vst.msk [vmem:[%s2349_s7 + $0xf8] sm:$0xff] %vm1511_vm1, %v1510_v35 }
 0x2e4   :  { %1548 = vsyncpa [#allocation5], 1 }

</bundles_post_ra>
